<compile_context>
chip_gen: v7x
topology: tpu7x:2x2x1
jax: 0.10.0
libtpu: 0.0.40
codegen_flags: <defaults>
</compile_context>

<pallas_src>
import functools
import math

import jax
import jax.numpy as jnp
from jax.experimental import pallas as pl
from jax.experimental.pallas import tpu as pltpu


def _layernorm(a, gamma, beta, eps=1e-5):
    mu = jnp.mean(a, axis=-1, keepdims=True)
    var = jnp.mean((a - mu) ** 2, axis=-1, keepdims=True)   # biased var (PyTorch)
    return (a - mu) * jax.lax.rsqrt(var + eps) * gamma + beta


def encoder_layer_kernel(num_heads, head_dim,
                         xq_ref, xkv_ref, bias_ref,
                         wq_ref, bq_ref, wk_ref, bk_ref, wv_ref, bv_ref,
                         wo_ref, bo_ref,
                         w1_ref, b1_ref, w2_ref, b2_ref,
                         g1_ref, be1_ref, g2_ref, be2_ref,
                         out_ref,
                         k_scr, v_scr):
    """grid = (batch, query-tile); the q axis is sequential ('arbitrary')."""
    bf16 = jnp.bfloat16

    # -------- K/V projection: once per batch, cached in bf16 VMEM scratch --------
    # (q axis is "arbitrary" => q==0 always executes before the other q tiles
    #  of the same batch on the same core, so the cache is valid.)
    @pl.when(pl.program_id(1) == 0)
    def _project_kv():
        xkv = xkv_ref[0]                                         # (S, D) bf16
        kf = jnp.dot(xkv, wk_ref[...],
                     preferred_element_type=jnp.float32) + bk_ref[...]
        vf = jnp.dot(xkv, wv_ref[...],
                     preferred_element_type=jnp.float32) + bv_ref[...]
        k_scr[...] = kf.astype(bf16)                             # (S, D) lane-dense
        v_scr[...] = vf.astype(bf16)

    # -------- Q projection: fused (TQ,D)@(D,D), scale folded in once --------
    xq = xq_ref[0]                                               # (TQ, D) f32
    qf = jnp.dot(xq.astype(bf16), wq_ref[...],
                 preferred_element_type=jnp.float32) + bq_ref[...]
    qf = (qf * (1.0 / math.sqrt(head_dim))).astype(bf16)         # (TQ, D)

    bias = bias_ref[0]                                           # (1, S) additive mask

    # -------- per-head attention: heads are static lane slices --------
    attn = None
    for h in range(num_heads):
        lo = h * head_dim
        q_h = qf[:, lo:lo + head_dim]                            # (TQ, hd) bf16
        k_h = k_scr[:, lo:lo + head_dim]                         # (S,  hd) bf16
        v_h = v_scr[:, lo:lo + head_dim]                         # (S,  hd) bf16

        s = jnp.einsum("qd,kd->qk", q_h, k_h,
                       preferred_element_type=jnp.float32)       # (TQ, S) f32
        s = s + bias
        s = s - jnp.max(s, axis=-1, keepdims=True)
        p = jnp.exp(s)
        p = p * pl.reciprocal(jnp.sum(p, axis=-1, keepdims=True), approx=True)

        ctx = jnp.dot(p.astype(bf16), v_h,
                      preferred_element_type=jnp.float32)        # (TQ, hd)
        o_h = jnp.dot(ctx.astype(bf16), wo_ref[h],
                      preferred_element_type=jnp.float32)        # (TQ, D)
        attn = o_h if attn is None else attn + o_h
    attn = attn + bo_ref[...]

    # -------- residual + norm1 (dropout == identity in eval mode) --------
    x1 = _layernorm(xq + attn, g1_ref[...], be1_ref[...])        # (TQ, D) f32

    # -------- position-wise FFN: weights fully resident in VMEM --------
    h1 = jnp.dot(x1.astype(bf16), w1_ref[...],
                 preferred_element_type=jnp.float32) + b1_ref[...]
    h1 = jnp.maximum(h1, 0.0)
    ff = jnp.dot(h1.astype(bf16), w2_ref[...],
                 preferred_element_type=jnp.float32) + b2_ref[...]

    out_ref[0] = _layernorm(x1 + ff, g2_ref[...], be2_ref[...])


def encoder_layer(x, mask, params, num_heads, *, tq=None):
    """x: (B, S, D) f32, mask: (B, 1, 1, S).  Returns (B, S, D) f32."""
    B, S, D = x.shape
    d_ff = params["w1"].shape[1]
    assert D % num_heads == 0
    hd = D // num_heads

    if tq is None:
        tq = min(S, 128)     # bounds the (TQ, S) score tile; v7x (64 MiB VMEM) safe
    assert S % tq == 0 and (tq == S or tq % 8 == 0)
    nq = S // tq

    f32, bf16 = jnp.float32, jnp.bfloat16
    x_f32 = x.astype(f32)
    x_bf = x.astype(bf16)                       # K/V operand pre-cast on the host
    # mask -> additive bias on the host (0 => masked out, matches masked_fill)
    bias = jnp.where(mask.reshape(B, 1, S) == 0, -10000000000.0, 0.0).astype(f32)

    wq = params["wq"].astype(bf16)
    wk = params["wk"].astype(bf16)
    wv = params["wv"].astype(bf16)
    wo_h = params["wo"].reshape(num_heads, hd, D).astype(bf16)   # per-head out slabs
    w1 = params["w1"].astype(bf16)
    w2 = params["w2"].astype(bf16)

    def const(shape):
        return pl.BlockSpec(shape, lambda b, q: (0,) * len(shape))

    in_specs = [
        pl.BlockSpec((1, tq, D), lambda b, q: (b, q, 0)),        # x query rows (f32)
        pl.BlockSpec((1, S, D), lambda b, q: (b, 0, 0)),         # x keys/values (bf16)
        pl.BlockSpec((1, 1, S), lambda b, q: (b, 0, 0)),         # additive mask bias
        const((D, D)), const((1, D)),                            # q_linear
        const((D, D)), const((1, D)),                            # k_linear
        const((D, D)), const((1, D)),                            # v_linear
        const((num_heads, hd, D)), const((1, D)),                # attn out proj
        const((D, d_ff)), const((1, d_ff)),                      # fc1
        const((d_ff, D)), const((1, D)),                         # fc2
        const((1, D)), const((1, D)),                            # norm1 gamma/beta
        const((1, D)), const((1, D)),                            # norm2 gamma/beta
    ]

    # ---------------- VMEM budget (explicit x2 double-buffer accounting) ----------------
    weights_b = 2 * (3 * D * D + num_heads * hd * D + D * d_ff + d_ff * D)   # bf16
    smalls_b = 4 * 8 * (9 * D + d_ff)                # (1, X) f32 consts, sublane-padded
    blocks_b = 4 * tq * D + 2 * S * D + 4 * 8 * S + 4 * tq * D   # xq, xkv, bias, out
    scratch_b = 2 * 2 * S * D                                     # K/V bf16 caches
    temps_b = 4 * (2 * tq * S + tq * d_ff + 4 * tq * D)           # scores/probs/fc1/etc.
    est = 2 * (weights_b + smalls_b + blocks_b) + scratch_b + temps_b
    try:
        vmem_cap = int(getattr(pltpu.get_tpu_info(), "vmem_capacity_bytes", 64 * 2 ** 20))
    except Exception:
        vmem_cap = 64 * 2 ** 20
    vmem_limit = int(min(int(0.75 * vmem_cap), max(16 * 2 ** 20, int(1.25 * est))))

    # ---------------- advisory cost estimate (K/V projected once per batch) ----------------
    flops = int(2 * B * S * D * D                      # q proj
                + 2 * 2 * B * S * D * D                # k, v proj (once per batch)
                + 2 * B * S * D * D                    # output proj
                + 2 * 2 * B * num_heads * S * S * hd   # QK^T + attn@V
                + 2 * 2 * B * S * D * d_ff)            # fc1 + fc2
    transcendentals = int(B * num_heads * S * S + 4 * B * S)
    bytes_accessed = int(4 * B * S * D + 2 * B * S * D + 4 * B * S + 4 * B * S * D
                         + weights_b + smalls_b)

    kernel = functools.partial(encoder_layer_kernel, num_heads, hd)
    return pl.pallas_call(
        kernel,
        out_shape=jax.ShapeDtypeStruct((B, S, D), jnp.float32),
        grid=(B, nq),
        in_specs=in_specs,
        out_specs=pl.BlockSpec((1, tq, D), lambda b, q: (b, q, 0)),
        scratch_shapes=[pltpu.VMEM((S, D), jnp.bfloat16),     # cached K (per batch)
                        pltpu.VMEM((S, D), jnp.bfloat16)],    # cached V (per batch)
        # q axis must stay "arbitrary" (sequential) so the K/V cache written at
        # q==0 is valid for the remaining query tiles of the same batch; the
        # batch axis is "parallel" so v7x's two TensorCores split work when B>=2.
        compiler_params=pltpu.CompilerParams(
            dimension_semantics=("parallel", "arbitrary"),
            vmem_limit_bytes=vmem_limit),
        cost_estimate=pl.CostEstimate(flops=flops,
                                      transcendentals=transcendentals,
                                      bytes_accessed=bytes_accessed),
    )(x_f32, x_bf, bias,
      wq, params["bq"].astype(f32), wk, params["bk"].astype(f32),
      wv, params["bv"].astype(f32),
      wo_h, params["bo"].astype(f32),
      w1, params["b1"].astype(f32), w2, params["b2"].astype(f32),
      params["g1"].astype(f32), params["be1"].astype(f32),
      params["g2"].astype(f32), params["be2"].astype(f32))


# ----------------------- pure-JAX f32 reference (PyTorch semantics) -----------------------
def encoder_layer_ref(x, mask, params, num_heads):
    B, S, D = x.shape
    hd = D // num_heads

    def lin(a, w, b):
        return a @ w + b[0]

    def ln(a, g, b, eps=1e-5):
        mu = a.mean(-1, keepdims=True)
        var = ((a - mu) ** 2).mean(-1, keepdims=True)
        return (a - mu) / jnp.sqrt(var + eps) * g[0] + b[0]

    q = lin(x, params["wq"], params["bq"]).reshape(B, S, num_heads, hd).transpose(0, 2, 1, 3)
    k = lin(x, params["wk"], params["bk"]).reshape(B, S, num_heads, hd).transpose(0, 2, 1, 3)
    v = lin(x, params["wv"], params["bv"]).reshape(B, S, num_heads, hd).transpose(0, 2, 1, 3)
    energy = jnp.einsum("bhqd,bhkd->bhqk", q, k) / jnp.sqrt(float(hd))
    energy = jnp.where(mask == 0, -10000000000.0, energy)
    attn = jax.nn.softmax(energy, axis=-1)
    out = jnp.einsum("bhqk,bhkd->bhqd", attn, v).transpose(0, 2, 1, 3).reshape(B, S, D)
    out = lin(out, params["wo"], params["bo"])
    x1 = ln(x + out, params["g1"], params["be1"])
    ff = lin(jnp.maximum(lin(x1, params["w1"], params["b1"]), 0.0),
             params["w2"], params["b2"])
    return ln(x1 + ff, params["g2"], params["be2"])


if __name__ == "__main__":
    # Small, TPU-tile-friendly shapes: 2 batches (feeds both v7x TCs), 2 query
    # tiles per batch (exercises the K/V caching path), lane-dense D / d_ff.
    B, S, D, H, DFF = 2, 128, 128, 4, 256

    key = jax.random.PRNGKey(0)
    ks = jax.random.split(key, 16)

    def w(k, din, dout):
        return 0.02 * jax.random.normal(k, (din, dout), jnp.float32)

    def b(k, dout):
        return 0.01 * jax.random.normal(k, (1, dout), jnp.float32)

    params = {
        "wq": w(ks[0], D, D), "bq": b(ks[1], D),
        "wk": w(ks[2], D, D), "bk": b(ks[3], D),
        "wv": w(ks[4], D, D), "bv": b(ks[5], D),
        "wo": w(ks[6], D, D), "bo": b(ks[7], D),
        "w1": w(ks[8], D, DFF), "b1": b(ks[9], DFF),
        "w2": w(ks[10], DFF, D), "b2": b(ks[11], D),
        "g1": jnp.ones((1, D), jnp.float32), "be1": jnp.zeros((1, D), jnp.float32),
        "g2": jnp.ones((1, D), jnp.float32), "be2": jnp.zeros((1, D), jnp.float32),
    }

    x = jax.random.normal(ks[12], (B, S, D), jnp.float32)
    # padding-style mask (B, 1, 1, S): last 16 tokens of batch 1 are masked out
    lengths = jnp.array([S, S - 16])
    mask = (jnp.arange(S)[None, :] < lengths[:, None]).astype(jnp.int32).reshape(B, 1, 1, S)

    out = encoder_layer(x, mask, params, H, tq=64)
    out = jax.block_until_ready(out)

    ref = encoder_layer_ref(x, mask, params, H)
    assert out.shape == (B, S, D)
    # Kernel runs bf16 matmuls with f32 accumulation; reference is pure f32.
    err = jnp.max(jnp.abs(out - ref))
    assert jnp.allclose(out, ref, atol=2e-2, rtol=2e-2), (
        f"mismatch vs reference (max |err| = {err})")

    print("KERNEL_OK")
</pallas_src>

<mosaic_0001>
module attributes {stable_mosaic.version = 11 : i64} {
  func.func @encoder_layer_kernel(%arg0: i32, %arg1: i32, %arg2: memref<1x64x128xf32, #tpu.memory_space<vmem>>, %arg3: memref<1x128x128xbf16, #tpu.memory_space<vmem>>, %arg4: memref<1x1x128xf32, #tpu.memory_space<vmem>>, %arg5: memref<128x128xbf16, #tpu.memory_space<vmem>>, %arg6: memref<1x128xf32, #tpu.memory_space<vmem>>, %arg7: memref<128x128xbf16, #tpu.memory_space<vmem>>, %arg8: memref<1x128xf32, #tpu.memory_space<vmem>>, %arg9: memref<128x128xbf16, #tpu.memory_space<vmem>>, %arg10: memref<1x128xf32, #tpu.memory_space<vmem>>, %arg11: memref<4x32x128xbf16, #tpu.memory_space<vmem>>, %arg12: memref<1x128xf32, #tpu.memory_space<vmem>>, %arg13: memref<128x256xbf16, #tpu.memory_space<vmem>>, %arg14: memref<1x256xf32, #tpu.memory_space<vmem>>, %arg15: memref<256x128xbf16, #tpu.memory_space<vmem>>, %arg16: memref<1x128xf32, #tpu.memory_space<vmem>>, %arg17: memref<1x128xf32, #tpu.memory_space<vmem>>, %arg18: memref<1x128xf32, #tpu.memory_space<vmem>>, %arg19: memref<1x128xf32, #tpu.memory_space<vmem>>, %arg20: memref<1x128xf32, #tpu.memory_space<vmem>>, %arg21: memref<1x64x128xf32, #tpu.memory_space<vmem>>, %arg22: memref<128x128xbf16, #tpu.memory_space<vmem>>, %arg23: memref<128x128xbf16, #tpu.memory_space<vmem>>) attributes {dimension_semantics = [#tpu.dimension_semantics<parallel>, #tpu.dimension_semantics<arbitrary>], iteration_bounds = array<i64: 2, 2>, scalar_prefetch = 0 : i64, scratch_operands = 2 : i64, tpu.core_type = #tpu.core_type<tc>, window_params = [{transform_indices = @transform_0, window_bounds = array<i64: 1, 64, 128>}, {transform_indices = @transform_1, window_bounds = array<i64: 1, 128, 128>}, {transform_indices = @transform_2, window_bounds = array<i64: 1, 1, 128>}, {pipeline_mode = #tpu.pipeline_mode<synchronous>, transform_indices = @transform_3, window_bounds = array<i64: 128, 128>}, {pipeline_mode = #tpu.pipeline_mode<synchronous>, transform_indices = @transform_4, window_bounds = array<i64: 1, 128>}, {pipeline_mode = #tpu.pipeline_mode<synchronous>, transform_indices = @transform_5, window_bounds = array<i64: 128, 128>}, {pipeline_mode = #tpu.pipeline_mode<synchronous>, transform_indices = @transform_6, window_bounds = array<i64: 1, 128>}, {pipeline_mode = #tpu.pipeline_mode<synchronous>, transform_indices = @transform_7, window_bounds = array<i64: 128, 128>}, {pipeline_mode = #tpu.pipeline_mode<synchronous>, transform_indices = @transform_8, window_bounds = array<i64: 1, 128>}, {pipeline_mode = #tpu.pipeline_mode<synchronous>, transform_indices = @transform_9, window_bounds = array<i64: 4, 32, 128>}, {pipeline_mode = #tpu.pipeline_mode<synchronous>, transform_indices = @transform_10, window_bounds = array<i64: 1, 128>}, {pipeline_mode = #tpu.pipeline_mode<synchronous>, transform_indices = @transform_11, window_bounds = array<i64: 128, 256>}, {pipeline_mode = #tpu.pipeline_mode<synchronous>, transform_indices = @transform_12, window_bounds = array<i64: 1, 256>}, {pipeline_mode = #tpu.pipeline_mode<synchronous>, transform_indices = @transform_13, window_bounds = array<i64: 256, 128>}, {pipeline_mode = #tpu.pipeline_mode<synchronous>, transform_indices = @transform_14, window_bounds = array<i64: 1, 128>}, {pipeline_mode = #tpu.pipeline_mode<synchronous>, transform_indices = @transform_15, window_bounds = array<i64: 1, 128>}, {pipeline_mode = #tpu.pipeline_mode<synchronous>, transform_indices = @transform_16, window_bounds = array<i64: 1, 128>}, {pipeline_mode = #tpu.pipeline_mode<synchronous>, transform_indices = @transform_17, window_bounds = array<i64: 1, 128>}, {pipeline_mode = #tpu.pipeline_mode<synchronous>, transform_indices = @transform_18, window_bounds = array<i64: 1, 128>}, {transform_indices = @transform_19, window_bounds = array<i64: 1, 64, 128>}]} {
    %c0_i32 = arith.constant 0 : i32
    %0 = arith.cmpi eq, %arg1, %c0_i32 : i32
    %1 = arith.extui %0 : i1 to i32
    %c0_i32_0 = arith.constant 0 : i32
    %2 = arith.cmpi ne, %1, %c0_i32_0 : i32
    scf.if %2 {
      %c0_87 = arith.constant 0 : index
      %c0_88 = arith.constant 0 : index
      %c0_89 = arith.constant 0 : index
      %177 = vector.load %arg3[%c0_87, %c0_88, %c0_89] : memref<1x128x128xbf16, #tpu.memory_space<vmem>>, vector<1x128x128xbf16>
      %178 = vector.shape_cast %177 : vector<1x128x128xbf16> to vector<128x128xbf16>
      %c0_90 = arith.constant 0 : index
      %c0_91 = arith.constant 0 : index
      %179 = vector.load %arg7[%c0_90, %c0_91] : memref<128x128xbf16, #tpu.memory_space<vmem>>, vector<128x128xbf16>
      %cst_92 = arith.constant dense<0.000000e+00> : vector<128x128xf32>
      %180 = tpu.matmul %178, %179, %cst_92 {dimension_numbers = #tpu.dot_dimension_numbers<[1], [0], [0], [1], [0, 0, 1, 1], [], []>} : vector<128x128xbf16>, vector<128x128xbf16>, vector<128x128xf32> -> vector<128x128xf32>
      %c0_93 = arith.constant 0 : index
      %c0_94 = arith.constant 0 : index
      %181 = vector.load %arg8[%c0_93, %c0_94] : memref<1x128xf32, #tpu.memory_space<vmem>>, vector<1x128xf32>
      %182 = vector.broadcast %181 : vector<1x128xf32> to vector<128x128xf32>
      %183 = arith.addf %180, %182 : vector<128x128xf32>
      %c0_95 = arith.constant 0 : index
      %c0_96 = arith.constant 0 : index
      %184 = vector.load %arg9[%c0_95, %c0_96] : memref<128x128xbf16, #tpu.memory_space<vmem>>, vector<128x128xbf16>
      %cst_97 = arith.constant dense<0.000000e+00> : vector<128x128xf32>
      %185 = tpu.matmul %178, %184, %cst_97 {dimension_numbers = #tpu.dot_dimension_numbers<[1], [0], [0], [1], [0, 0, 1, 1], [], []>} : vector<128x128xbf16>, vector<128x128xbf16>, vector<128x128xf32> -> vector<128x128xf32>
      %c0_98 = arith.constant 0 : index
      %c0_99 = arith.constant 0 : index
      %186 = vector.load %arg10[%c0_98, %c0_99] : memref<1x128xf32, #tpu.memory_space<vmem>>, vector<1x128xf32>
      %187 = vector.broadcast %186 : vector<1x128xf32> to vector<128x128xf32>
      %188 = arith.addf %185, %187 : vector<128x128xf32>
      %189 = arith.truncf %183 : vector<128x128xf32> to vector<128x128xbf16>
      %c0_100 = arith.constant 0 : index
      %c0_101 = arith.constant 0 : index
      %190 = vector.load %arg22[%c0_100, %c0_101] : memref<128x128xbf16, #tpu.memory_space<vmem>>, vector<128x128xbf16>
      tpu.vector_store %arg22[%c0_100, %c0_101], %189 {strides = array<i32>} : memref<128x128xbf16, #tpu.memory_space<vmem>>, vector<128x128xbf16>,
      %191 = arith.truncf %188 : vector<128x128xf32> to vector<128x128xbf16>
      %c0_102 = arith.constant 0 : index
      %c0_103 = arith.constant 0 : index
      %192 = vector.load %arg23[%c0_102, %c0_103] : memref<128x128xbf16, #tpu.memory_space<vmem>>, vector<128x128xbf16>
      tpu.vector_store %arg23[%c0_102, %c0_103], %191 {strides = array<i32>} : memref<128x128xbf16, #tpu.memory_space<vmem>>, vector<128x128xbf16>,
    } else {
    }
    %c0 = arith.constant 0 : index
    %c0_1 = arith.constant 0 : index
    %c0_2 = arith.constant 0 : index
    %3 = vector.load %arg2[%c0, %c0_1, %c0_2] : memref<1x64x128xf32, #tpu.memory_space<vmem>>, vector<1x64x128xf32>
    %4 = vector.shape_cast %3 : vector<1x64x128xf32> to vector<64x128xf32>
    %5 = arith.truncf %4 : vector<64x128xf32> to vector<64x128xbf16>
    %c0_3 = arith.constant 0 : index
    %c0_4 = arith.constant 0 : index
    %6 = vector.load %arg5[%c0_3, %c0_4] : memref<128x128xbf16, #tpu.memory_space<vmem>>, vector<128x128xbf16>
    %cst = arith.constant dense<0.000000e+00> : vector<64x128xf32>
    %7 = tpu.matmul %5, %6, %cst {dimension_numbers = #tpu.dot_dimension_numbers<[1], [0], [0], [1], [0, 0, 1, 1], [], []>} : vector<64x128xbf16>, vector<128x128xbf16>, vector<64x128xf32> -> vector<64x128xf32>
    %c0_5 = arith.constant 0 : index
    %c0_6 = arith.constant 0 : index
    %8 = vector.load %arg6[%c0_5, %c0_6] : memref<1x128xf32, #tpu.memory_space<vmem>>, vector<1x128xf32>
    %9 = vector.broadcast %8 : vector<1x128xf32> to vector<64x128xf32>
    %10 = arith.addf %7, %9 : vector<64x128xf32>
    %cst_7 = arith.constant 0.176776692 : f32
    %11 = vector.broadcast %cst_7 : f32 to vector<64x128xf32>
    %12 = arith.mulf %10, %11 : vector<64x128xf32>
    %13 = arith.truncf %12 : vector<64x128xf32> to vector<64x128xbf16>
    %c0_8 = arith.constant 0 : index
    %c0_9 = arith.constant 0 : index
    %c0_10 = arith.constant 0 : index
    %14 = vector.load %arg4[%c0_8, %c0_9, %c0_10] : memref<1x1x128xf32, #tpu.memory_space<vmem>>, vector<1x1x128xf32>
    %15 = vector.shape_cast %14 : vector<1x1x128xf32> to vector<1x128xf32>
    %16 = vector.extract_strided_slice %13 {offsets = [0, 0], sizes = [64, 32], strides = [1, 1]} : vector<64x128xbf16> to vector<64x32xbf16>
    %c0_11 = arith.constant 0 : index
    %c0_12 = arith.constant 0 : index
    %17 = vector.load %arg22[%c0_11, %c0_12] : memref<128x128xbf16, #tpu.memory_space<vmem>>, vector<128x32xbf16>
    %c0_13 = arith.constant 0 : index
    %c0_14 = arith.constant 0 : index
    %18 = vector.load %arg23[%c0_13, %c0_14] : memref<128x128xbf16, #tpu.memory_space<vmem>>, vector<128x32xbf16>
    "tpu.trace_start"() <{level = 10 : i32, message = "qd,kd->qk"}> : () -> ()
    %cst_15 = arith.constant dense<0.000000e+00> : vector<64x128xf32>
    %19 = tpu.matmul %16, %17, %cst_15 {dimension_numbers = #tpu.dot_dimension_numbers<[1], [1], [0], [0], [0, 0, 1, 0], [], []>} : vector<64x32xbf16>, vector<128x32xbf16>, vector<64x128xf32> -> vector<64x128xf32>
    "tpu.trace_stop"() : () -> ()
    %20 = vector.broadcast %15 : vector<1x128xf32> to vector<64x128xf32>
    %21 = arith.addf %19, %20 : vector<64x128xf32>
    %cst_16 = arith.constant dense<0xFF800000> : vector<64xf32>
    %22 = vector.multi_reduction <maximumf>, %21, %cst_16 [1] : vector<64x128xf32> to vector<64xf32>
    %23 = vector.shape_cast %22 : vector<64xf32> to vector<64x1xf32>
    %24 = vector.broadcast %23 : vector<64x1xf32> to vector<64x128xf32>
    %25 = arith.subf %21, %24 : vector<64x128xf32>
    %26 = math.exp %25 : vector<64x128xf32>
    %cst_17 = arith.constant dense<0.000000e+00> : vector<64xf32>
    %27 = vector.multi_reduction <add>, %26, %cst_17 [1] : vector<64x128xf32> to vector<64xf32>
    %28 = vector.shape_cast %27 : vector<64xf32> to vector<64x1xf32>
    %29 = tpu.reciprocal %28 {approx = true} : vector<64x1xf32> -> vector<64x1xf32>
    %30 = vector.broadcast %29 : vector<64x1xf32> to vector<64x128xf32>
    %31 = arith.mulf %26, %30 : vector<64x128xf32>
    %32 = arith.truncf %31 : vector<64x128xf32> to vector<64x128xbf16>
    %cst_18 = arith.constant dense<0.000000e+00> : vector<64x32xf32>
    %33 = tpu.matmul %32, %18, %cst_18 {dimension_numbers = #tpu.dot_dimension_numbers<[1], [0], [0], [1], [0, 0, 1, 1], [], []>} : vector<64x128xbf16>, vector<128x32xbf16>, vector<64x32xf32> -> vector<64x32xf32>
    %34 = arith.truncf %33 : vector<64x32xf32> to vector<64x32xbf16>
    %c0_19 = arith.constant 0 : index
    %c0_20 = arith.constant 0 : index
    %c0_21 = arith.constant 0 : index
    %35 = vector.load %arg11[%c0_19, %c0_20, %c0_21] : memref<4x32x128xbf16, #tpu.memory_space<vmem>>, vector<1x32x128xbf16>
    %36 = vector.shape_cast %35 : vector<1x32x128xbf16> to vector<32x128xbf16>
    %cst_22 = arith.constant dense<0.000000e+00> : vector<64x128xf32>
    %37 = tpu.matmul %34, %36, %cst_22 {dimension_numbers = #tpu.dot_dimension_numbers<[1], [0], [0], [1], [0, 0, 1, 1], [], []>} : vector<64x32xbf16>, vector<32x128xbf16>, vector<64x128xf32> -> vector<64x128xf32>
    %38 = vector.extract_strided_slice %13 {offsets = [0, 32], sizes = [64, 32], strides = [1, 1]} : vector<64x128xbf16> to vector<64x32xbf16>
    %c0_23 = arith.constant 0 : index
    %c32 = arith.constant 32 : index
    %39 = vector.load %arg22[%c0_23, %c32] : memref<128x128xbf16, #tpu.memory_space<vmem>>, vector<128x32xbf16>
    %c0_24 = arith.constant 0 : index
    %c32_25 = arith.constant 32 : index
    %40 = vector.load %arg23[%c0_24, %c32_25] : memref<128x128xbf16, #tpu.memory_space<vmem>>, vector<128x32xbf16>
    "tpu.trace_start"() <{level = 10 : i32, message = "qd,kd->qk"}> : () -> ()
    %cst_26 = arith.constant dense<0.000000e+00> : vector<64x128xf32>
    %41 = tpu.matmul %38, %39, %cst_26 {dimension_numbers = #tpu.dot_dimension_numbers<[1], [1], [0], [0], [0, 0, 1, 0], [], []>} : vector<64x32xbf16>, vector<128x32xbf16>, vector<64x128xf32> -> vector<64x128xf32>
    "tpu.trace_stop"() : () -> ()
    %42 = vector.broadcast %15 : vector<1x128xf32> to vector<64x128xf32>
    %43 = arith.addf %41, %42 : vector<64x128xf32>
    %cst_27 = arith.constant dense<0xFF800000> : vector<64xf32>
    %44 = vector.multi_reduction <maximumf>, %43, %cst_27 [1] : vector<64x128xf32> to vector<64xf32>
    %45 = vector.shape_cast %44 : vector<64xf32> to vector<64x1xf32>
    %46 = vector.broadcast %45 : vector<64x1xf32> to vector<64x128xf32>
    %47 = arith.subf %43, %46 : vector<64x128xf32>
    %48 = math.exp %47 : vector<64x128xf32>
    %cst_28 = arith.constant dense<0.000000e+00> : vector<64xf32>
    %49 = vector.multi_reduction <add>, %48, %cst_28 [1] : vector<64x128xf32> to vector<64xf32>
    %50 = vector.shape_cast %49 : vector<64xf32> to vector<64x1xf32>
    %51 = tpu.reciprocal %50 {approx = true} : vector<64x1xf32> -> vector<64x1xf32>
    %52 = vector.broadcast %51 : vector<64x1xf32> to vector<64x128xf32>
    %53 = arith.mulf %48, %52 : vector<64x128xf32>
    %54 = arith.truncf %53 : vector<64x128xf32> to vector<64x128xbf16>
    %cst_29 = arith.constant dense<0.000000e+00> : vector<64x32xf32>
    %55 = tpu.matmul %54, %40, %cst_29 {dimension_numbers = #tpu.dot_dimension_numbers<[1], [0], [0], [1], [0, 0, 1, 1], [], []>} : vector<64x128xbf16>, vector<128x32xbf16>, vector<64x32xf32> -> vector<64x32xf32>
    %56 = arith.truncf %55 : vector<64x32xf32> to vector<64x32xbf16>
    %c1 = arith.constant 1 : index
    %c0_30 = arith.constant 0 : index
    %c0_31 = arith.constant 0 : index
    %57 = vector.load %arg11[%c1, %c0_30, %c0_31] : memref<4x32x128xbf16, #tpu.memory_space<vmem>>, vector<1x32x128xbf16>
    %58 = vector.shape_cast %57 : vector<1x32x128xbf16> to vector<32x128xbf16>
    %cst_32 = arith.constant dense<0.000000e+00> : vector<64x128xf32>
    %59 = tpu.matmul %56, %58, %cst_32 {dimension_numbers = #tpu.dot_dimension_numbers<[1], [0], [0], [1], [0, 0, 1, 1], [], []>} : vector<64x32xbf16>, vector<32x128xbf16>, vector<64x128xf32> -> vector<64x128xf32>
    %60 = arith.addf %37, %59 : vector<64x128xf32>
    %61 = vector.extract_strided_slice %13 {offsets = [0, 64], sizes = [64, 32], strides = [1, 1]} : vector<64x128xbf16> to vector<64x32xbf16>
    %c0_33 = arith.constant 0 : index
    %c64 = arith.constant 64 : index
    %62 = vector.load %arg22[%c0_33, %c64] : memref<128x128xbf16, #tpu.memory_space<vmem>>, vector<128x32xbf16>
    %c0_34 = arith.constant 0 : index
    %c64_35 = arith.constant 64 : index
    %63 = vector.load %arg23[%c0_34, %c64_35] : memref<128x128xbf16, #tpu.memory_space<vmem>>, vector<128x32xbf16>
    "tpu.trace_start"() <{level = 10 : i32, message = "qd,kd->qk"}> : () -> ()
    %cst_36 = arith.constant dense<0.000000e+00> : vector<64x128xf32>
    %64 = tpu.matmul %61, %62, %cst_36 {dimension_numbers = #tpu.dot_dimension_numbers<[1], [1], [0], [0], [0, 0, 1, 0], [], []>} : vector<64x32xbf16>, vector<128x32xbf16>, vector<64x128xf32> -> vector<64x128xf32>
    "tpu.trace_stop"() : () -> ()
    %65 = vector.broadcast %15 : vector<1x128xf32> to vector<64x128xf32>
    %66 = arith.addf %64, %65 : vector<64x128xf32>
    %cst_37 = arith.constant dense<0xFF800000> : vector<64xf32>
    %67 = vector.multi_reduction <maximumf>, %66, %cst_37 [1] : vector<64x128xf32> to vector<64xf32>
    %68 = vector.shape_cast %67 : vector<64xf32> to vector<64x1xf32>
    %69 = vector.broadcast %68 : vector<64x1xf32> to vector<64x128xf32>
    %70 = arith.subf %66, %69 : vector<64x128xf32>
    %71 = math.exp %70 : vector<64x128xf32>
    %cst_38 = arith.constant dense<0.000000e+00> : vector<64xf32>
    %72 = vector.multi_reduction <add>, %71, %cst_38 [1] : vector<64x128xf32> to vector<64xf32>
    %73 = vector.shape_cast %72 : vector<64xf32> to vector<64x1xf32>
    %74 = tpu.reciprocal %73 {approx = true} : vector<64x1xf32> -> vector<64x1xf32>
    %75 = vector.broadcast %74 : vector<64x1xf32> to vector<64x128xf32>
    %76 = arith.mulf %71, %75 : vector<64x128xf32>
    %77 = arith.truncf %76 : vector<64x128xf32> to vector<64x128xbf16>
    %cst_39 = arith.constant dense<0.000000e+00> : vector<64x32xf32>
    %78 = tpu.matmul %77, %63, %cst_39 {dimension_numbers = #tpu.dot_dimension_numbers<[1], [0], [0], [1], [0, 0, 1, 1], [], []>} : vector<64x128xbf16>, vector<128x32xbf16>, vector<64x32xf32> -> vector<64x32xf32>
    %79 = arith.truncf %78 : vector<64x32xf32> to vector<64x32xbf16>
    %c2 = arith.constant 2 : index
    %c0_40 = arith.constant 0 : index
    %c0_41 = arith.constant 0 : index
    %80 = vector.load %arg11[%c2, %c0_40, %c0_41] : memref<4x32x128xbf16, #tpu.memory_space<vmem>>, vector<1x32x128xbf16>
    %81 = vector.shape_cast %80 : vector<1x32x128xbf16> to vector<32x128xbf16>
    %cst_42 = arith.constant dense<0.000000e+00> : vector<64x128xf32>
    %82 = tpu.matmul %79, %81, %cst_42 {dimension_numbers = #tpu.dot_dimension_numbers<[1], [0], [0], [1], [0, 0, 1, 1], [], []>} : vector<64x32xbf16>, vector<32x128xbf16>, vector<64x128xf32> -> vector<64x128xf32>
    %83 = arith.addf %60, %82 : vector<64x128xf32>
    %84 = vector.extract_strided_slice %13 {offsets = [0, 96], sizes = [64, 32], strides = [1, 1]} : vector<64x128xbf16> to vector<64x32xbf16>
    %c0_43 = arith.constant 0 : index
    %c96 = arith.constant 96 : index
    %85 = vector.load %arg22[%c0_43, %c96] : memref<128x128xbf16, #tpu.memory_space<vmem>>, vector<128x32xbf16>
    %c0_44 = arith.constant 0 : index
    %c96_45 = arith.constant 96 : index
    %86 = vector.load %arg23[%c0_44, %c96_45] : memref<128x128xbf16, #tpu.memory_space<vmem>>, vector<128x32xbf16>
    "tpu.trace_start"() <{level = 10 : i32, message = "qd,kd->qk"}> : () -> ()
    %cst_46 = arith.constant dense<0.000000e+00> : vector<64x128xf32>
    %87 = tpu.matmul %84, %85, %cst_46 {dimension_numbers = #tpu.dot_dimension_numbers<[1], [1], [0], [0], [0, 0, 1, 0], [], []>} : vector<64x32xbf16>, vector<128x32xbf16>, vector<64x128xf32> -> vector<64x128xf32>
    "tpu.trace_stop"() : () -> ()
    %88 = vector.broadcast %15 : vector<1x128xf32> to vector<64x128xf32>
    %89 = arith.addf %87, %88 : vector<64x128xf32>
    %cst_47 = arith.constant dense<0xFF800000> : vector<64xf32>
    %90 = vector.multi_reduction <maximumf>, %89, %cst_47 [1] : vector<64x128xf32> to vector<64xf32>
    %91 = vector.shape_cast %90 : vector<64xf32> to vector<64x1xf32>
    %92 = vector.broadcast %91 : vector<64x1xf32> to vector<64x128xf32>
    %93 = arith.subf %89, %92 : vector<64x128xf32>
    %94 = math.exp %93 : vector<64x128xf32>
    %cst_48 = arith.constant dense<0.000000e+00> : vector<64xf32>
    %95 = vector.multi_reduction <add>, %94, %cst_48 [1] : vector<64x128xf32> to vector<64xf32>
    %96 = vector.shape_cast %95 : vector<64xf32> to vector<64x1xf32>
    %97 = tpu.reciprocal %96 {approx = true} : vector<64x1xf32> -> vector<64x1xf32>
    %98 = vector.broadcast %97 : vector<64x1xf32> to vector<64x128xf32>
    %99 = arith.mulf %94, %98 : vector<64x128xf32>
    %100 = arith.truncf %99 : vector<64x128xf32> to vector<64x128xbf16>
    %cst_49 = arith.constant dense<0.000000e+00> : vector<64x32xf32>
    %101 = tpu.matmul %100, %86, %cst_49 {dimension_numbers = #tpu.dot_dimension_numbers<[1], [0], [0], [1], [0, 0, 1, 1], [], []>} : vector<64x128xbf16>, vector<128x32xbf16>, vector<64x32xf32> -> vector<64x32xf32>
    %102 = arith.truncf %101 : vector<64x32xf32> to vector<64x32xbf16>
    %c3 = arith.constant 3 : index
    %c0_50 = arith.constant 0 : index
    %c0_51 = arith.constant 0 : index
    %103 = vector.load %arg11[%c3, %c0_50, %c0_51] : memref<4x32x128xbf16, #tpu.memory_space<vmem>>, vector<1x32x128xbf16>
    %104 = vector.shape_cast %103 : vector<1x32x128xbf16> to vector<32x128xbf16>
    %cst_52 = arith.constant dense<0.000000e+00> : vector<64x128xf32>
    %105 = tpu.matmul %102, %104, %cst_52 {dimension_numbers = #tpu.dot_dimension_numbers<[1], [0], [0], [1], [0, 0, 1, 1], [], []>} : vector<64x32xbf16>, vector<32x128xbf16>, vector<64x128xf32> -> vector<64x128xf32>
    %106 = arith.addf %83, %105 : vector<64x128xf32>
    %c0_53 = arith.constant 0 : index
    %c0_54 = arith.constant 0 : index
    %107 = vector.load %arg12[%c0_53, %c0_54] : memref<1x128xf32, #tpu.memory_space<vmem>>, vector<1x128xf32>
    %108 = vector.broadcast %107 : vector<1x128xf32> to vector<64x128xf32>
    %109 = arith.addf %106, %108 : vector<64x128xf32>
    %110 = arith.addf %4, %109 : vector<64x128xf32>
    %c0_55 = arith.constant 0 : index
    %c0_56 = arith.constant 0 : index
    %111 = vector.load %arg17[%c0_55, %c0_56] : memref<1x128xf32, #tpu.memory_space<vmem>>, vector<1x128xf32>
    %c0_57 = arith.constant 0 : index
    %c0_58 = arith.constant 0 : index
    %112 = vector.load %arg18[%c0_57, %c0_58] : memref<1x128xf32, #tpu.memory_space<vmem>>, vector<1x128xf32>
    %cst_59 = arith.constant dense<0.000000e+00> : vector<64xf32>
    %113 = vector.multi_reduction <add>, %110, %cst_59 [1] : vector<64x128xf32> to vector<64xf32>
    %114 = vector.shape_cast %113 : vector<64xf32> to vector<64x1xf32>
    %cst_60 = arith.constant 1.280000e+02 : f32
    %115 = vector.broadcast %cst_60 : f32 to vector<64x1xf32>
    %116 = arith.divf %114, %115 : vector<64x1xf32>
    %117 = vector.broadcast %116 : vector<64x1xf32> to vector<64x128xf32>
    %118 = arith.subf %110, %117 : vector<64x128xf32>
    %119 = arith.mulf %118, %118 : vector<64x128xf32>
    %cst_61 = arith.constant dense<0.000000e+00> : vector<64xf32>
    %120 = vector.multi_reduction <add>, %119, %cst_61 [1] : vector<64x128xf32> to vector<64xf32>
    %121 = vector.shape_cast %120 : vector<64xf32> to vector<64x1xf32>
    %cst_62 = arith.constant 1.280000e+02 : f32
    %122 = vector.broadcast %cst_62 : f32 to vector<64x1xf32>
    %123 = arith.divf %121, %122 : vector<64x1xf32>
    %124 = vector.broadcast %116 : vector<64x1xf32> to vector<64x128xf32>
    %125 = arith.subf %110, %124 : vector<64x128xf32>
    %cst_63 = arith.constant 9.99999974E-6 : f32
    %126 = vector.broadcast %cst_63 : f32 to vector<64x1xf32>
    %127 = arith.addf %123, %126 : vector<64x1xf32>
    %128 = math.rsqrt %127 : vector<64x1xf32>
    %129 = vector.broadcast %128 : vector<64x1xf32> to vector<64x128xf32>
    %130 = arith.mulf %125, %129 : vector<64x128xf32>
    %131 = vector.broadcast %111 : vector<1x128xf32> to vector<64x128xf32>
    %132 = arith.mulf %130, %131 : vector<64x128xf32>
    %133 = vector.broadcast %112 : vector<1x128xf32> to vector<64x128xf32>
    %134 = arith.addf %132, %133 : vector<64x128xf32>
    %135 = arith.truncf %134 : vector<64x128xf32> to vector<64x128xbf16>
    %c0_64 = arith.constant 0 : index
    %c0_65 = arith.constant 0 : index
    %136 = vector.load %arg13[%c0_64, %c0_65] : memref<128x256xbf16, #tpu.memory_space<vmem>>, vector<128x256xbf16>
    %cst_66 = arith.constant dense<0.000000e+00> : vector<64x256xf32>
    %137 = tpu.matmul %135, %136, %cst_66 {dimension_numbers = #tpu.dot_dimension_numbers<[1], [0], [0], [1], [0, 0, 1, 1], [], []>} : vector<64x128xbf16>, vector<128x256xbf16>, vector<64x256xf32> -> vector<64x256xf32>
    %c0_67 = arith.constant 0 : index
    %c0_68 = arith.constant 0 : index
    %138 = vector.load %arg14[%c0_67, %c0_68] : memref<1x256xf32, #tpu.memory_space<vmem>>, vector<1x256xf32>
    %139 = vector.broadcast %138 : vector<1x256xf32> to vector<64x256xf32>
    %140 = arith.addf %137, %139 : vector<64x256xf32>
    %cst_69 = arith.constant 0.000000e+00 : f32
    %141 = vector.broadcast %cst_69 : f32 to vector<64x256xf32>
    %142 = arith.maximumf %140, %141 : vector<64x256xf32>
    %143 = arith.truncf %142 : vector<64x256xf32> to vector<64x256xbf16>
    %c0_70 = arith.constant 0 : index
    %c0_71 = arith.constant 0 : index
    %144 = vector.load %arg15[%c0_70, %c0_71] : memref<256x128xbf16, #tpu.memory_space<vmem>>, vector<256x128xbf16>
    %cst_72 = arith.constant dense<0.000000e+00> : vector<64x128xf32>
    %145 = tpu.matmul %143, %144, %cst_72 {dimension_numbers = #tpu.dot_dimension_numbers<[1], [0], [0], [1], [0, 0, 1, 1], [], []>} : vector<64x256xbf16>, vector<256x128xbf16>, vector<64x128xf32> -> vector<64x128xf32>
    %c0_73 = arith.constant 0 : index
    %c0_74 = arith.constant 0 : index
    %146 = vector.load %arg16[%c0_73, %c0_74] : memref<1x128xf32, #tpu.memory_space<vmem>>, vector<1x128xf32>
    %147 = vector.broadcast %146 : vector<1x128xf32> to vector<64x128xf32>
    %148 = arith.addf %145, %147 : vector<64x128xf32>
    %149 = arith.addf %134, %148 : vector<64x128xf32>
    %c0_75 = arith.constant 0 : index
    %c0_76 = arith.constant 0 : index
    %150 = vector.load %arg19[%c0_75, %c0_76] : memref<1x128xf32, #tpu.memory_space<vmem>>, vector<1x128xf32>
    %c0_77 = arith.constant 0 : index
    %c0_78 = arith.constant 0 : index
    %151 = vector.load %arg20[%c0_77, %c0_78] : memref<1x128xf32, #tpu.memory_space<vmem>>, vector<1x128xf32>
    %cst_79 = arith.constant dense<0.000000e+00> : vector<64xf32>
    %152 = vector.multi_reduction <add>, %149, %cst_79 [1] : vector<64x128xf32> to vector<64xf32>
    %153 = vector.shape_cast %152 : vector<64xf32> to vector<64x1xf32>
    %cst_80 = arith.constant 1.280000e+02 : f32
    %154 = vector.broadcast %cst_80 : f32 to vector<64x1xf32>
    %155 = arith.divf %153, %154 : vector<64x1xf32>
    %156 = vector.broadcast %155 : vector<64x1xf32> to vector<64x128xf32>
    %157 = arith.subf %149, %156 : vector<64x128xf32>
    %158 = arith.mulf %157, %157 : vector<64x128xf32>
    %cst_81 = arith.constant dense<0.000000e+00> : vector<64xf32>
    %159 = vector.multi_reduction <add>, %158, %cst_81 [1] : vector<64x128xf32> to vector<64xf32>
    %160 = vector.shape_cast %159 : vector<64xf32> to vector<64x1xf32>
    %cst_82 = arith.constant 1.280000e+02 : f32
    %161 = vector.broadcast %cst_82 : f32 to vector<64x1xf32>
    %162 = arith.divf %160, %161 : vector<64x1xf32>
    %163 = vector.broadcast %155 : vector<64x1xf32> to vector<64x128xf32>
    %164 = arith.subf %149, %163 : vector<64x128xf32>
    %cst_83 = arith.constant 9.99999974E-6 : f32
    %165 = vector.broadcast %cst_83 : f32 to vector<64x1xf32>
    %166 = arith.addf %162, %165 : vector<64x1xf32>
    %167 = math.rsqrt %166 : vector<64x1xf32>
    %168 = vector.broadcast %167 : vector<64x1xf32> to vector<64x128xf32>
    %169 = arith.mulf %164, %168 : vector<64x128xf32>
    %170 = vector.broadcast %150 : vector<1x128xf32> to vector<64x128xf32>
    %171 = arith.mulf %169, %170 : vector<64x128xf32>
    %172 = vector.broadcast %151 : vector<1x128xf32> to vector<64x128xf32>
    %173 = arith.addf %171, %172 : vector<64x128xf32>
    %c0_84 = arith.constant 0 : index
    %c0_85 = arith.constant 0 : index
    %c0_86 = arith.constant 0 : index
    %174 = vector.load %arg21[%c0_84, %c0_85, %c0_86] : memref<1x64x128xf32, #tpu.memory_space<vmem>>, vector<1x64x128xf32>
    %175 = vector.shape_cast %174 : vector<1x64x128xf32> to vector<64x128xf32>
    %176 = vector.shape_cast %173 : vector<64x128xf32> to vector<1x64x128xf32>
    tpu.vector_store %arg21[%c0_84, %c0_85, %c0_86], %176 {strides = array<i32>} : memref<1x64x128xf32, #tpu.memory_space<vmem>>, vector<1x64x128xf32>,
    return
  }
  func.func @transform_0(%arg0: i32, %arg1: i32) -> (i32, i32, i32) {
    %c0_i32 = arith.constant 0 : i32
    %c0_i32_0 = arith.constant 0 : i32
    return %arg0, %arg1, %c0_i32 : i32, i32, i32
  }
  func.func @transform_1(%arg0: i32, %arg1: i32) -> (i32, i32, i32) {
    %c0_i32 = arith.constant 0 : i32
    %c0_i32_0 = arith.constant 0 : i32
    %c0_i32_1 = arith.constant 0 : i32
    return %arg0, %c0_i32, %c0_i32_0 : i32, i32, i32
  }
  func.func @transform_2(%arg0: i32, %arg1: i32) -> (i32, i32, i32) {
    %c0_i32 = arith.constant 0 : i32
    %c0_i32_0 = arith.constant 0 : i32
    %c0_i32_1 = arith.constant 0 : i32
    return %arg0, %c0_i32, %c0_i32_0 : i32, i32, i32
  }
  func.func @transform_3(%arg0: i32, %arg1: i32) -> (i32, i32) {
    %c0_i32 = arith.constant 0 : i32
    %c0_i32_0 = arith.constant 0 : i32
    %c0_i32_1 = arith.constant 0 : i32
    return %c0_i32, %c0_i32_0 : i32, i32
  }
  func.func @transform_4(%arg0: i32, %arg1: i32) -> (i32, i32) {
    %c0_i32 = arith.constant 0 : i32
    %c0_i32_0 = arith.constant 0 : i32
    %c0_i32_1 = arith.constant 0 : i32
    return %c0_i32, %c0_i32_0 : i32, i32
  }
  func.func @transform_5(%arg0: i32, %arg1: i32) -> (i32, i32) {
    %c0_i32 = arith.constant 0 : i32
    %c0_i32_0 = arith.constant 0 : i32
    %c0_i32_1 = arith.constant 0 : i32
    return %c0_i32, %c0_i32_0 : i32, i32
  }
  func.func @transform_6(%arg0: i32, %arg1: i32) -> (i32, i32) {
    %c0_i32 = arith.constant 0 : i32
    %c0_i32_0 = arith.constant 0 : i32
    %c0_i32_1 = arith.constant 0 : i32
    return %c0_i32, %c0_i32_0 : i32, i32
  }
  func.func @transform_7(%arg0: i32, %arg1: i32) -> (i32, i32) {
    %c0_i32 = arith.constant 0 : i32
    %c0_i32_0 = arith.constant 0 : i32
    %c0_i32_1 = arith.constant 0 : i32
    return %c0_i32, %c0_i32_0 : i32, i32
  }
  func.func @transform_8(%arg0: i32, %arg1: i32) -> (i32, i32) {
    %c0_i32 = arith.constant 0 : i32
    %c0_i32_0 = arith.constant 0 : i32
    %c0_i32_1 = arith.constant 0 : i32
    return %c0_i32, %c0_i32_0 : i32, i32
  }
  func.func @transform_9(%arg0: i32, %arg1: i32) -> (i32, i32, i32) {
    %c0_i32 = arith.constant 0 : i32
    %c0_i32_0 = arith.constant 0 : i32
    %c0_i32_1 = arith.constant 0 : i32
    %c0_i32_2 = arith.constant 0 : i32
    return %c0_i32, %c0_i32_0, %c0_i32_1 : i32, i32, i32
  }
  func.func @transform_10(%arg0: i32, %arg1: i32) -> (i32, i32) {
    %c0_i32 = arith.constant 0 : i32
    %c0_i32_0 = arith.constant 0 : i32
    %c0_i32_1 = arith.constant 0 : i32
    return %c0_i32, %c0_i32_0 : i32, i32
  }
  func.func @transform_11(%arg0: i32, %arg1: i32) -> (i32, i32) {
    %c0_i32 = arith.constant 0 : i32
    %c0_i32_0 = arith.constant 0 : i32
    %c0_i32_1 = arith.constant 0 : i32
    return %c0_i32, %c0_i32_0 : i32, i32
  }
  func.func @transform_12(%arg0: i32, %arg1: i32) -> (i32, i32) {
    %c0_i32 = arith.constant 0 : i32
    %c0_i32_0 = arith.constant 0 : i32
    %c0_i32_1 = arith.constant 0 : i32
    return %c0_i32, %c0_i32_0 : i32, i32
  }
  func.func @transform_13(%arg0: i32, %arg1: i32) -> (i32, i32) {
    %c0_i32 = arith.constant 0 : i32
    %c0_i32_0 = arith.constant 0 : i32
    %c0_i32_1 = arith.constant 0 : i32
    return %c0_i32, %c0_i32_0 : i32, i32
  }
  func.func @transform_14(%arg0: i32, %arg1: i32) -> (i32, i32) {
    %c0_i32 = arith.constant 0 : i32
    %c0_i32_0 = arith.constant 0 : i32
    %c0_i32_1 = arith.constant 0 : i32
    return %c0_i32, %c0_i32_0 : i32, i32
  }
  func.func @transform_15(%arg0: i32, %arg1: i32) -> (i32, i32) {
    %c0_i32 = arith.constant 0 : i32
    %c0_i32_0 = arith.constant 0 : i32
    %c0_i32_1 = arith.constant 0 : i32
    return %c0_i32, %c0_i32_0 : i32, i32
  }
  func.func @transform_16(%arg0: i32, %arg1: i32) -> (i32, i32) {
    %c0_i32 = arith.constant 0 : i32
    %c0_i32_0 = arith.constant 0 : i32
    %c0_i32_1 = arith.constant 0 : i32
    return %c0_i32, %c0_i32_0 : i32, i32
  }
  func.func @transform_17(%arg0: i32, %arg1: i32) -> (i32, i32) {
    %c0_i32 = arith.constant 0 : i32
    %c0_i32_0 = arith.constant 0 : i32
    %c0_i32_1 = arith.constant 0 : i32
    return %c0_i32, %c0_i32_0 : i32, i32
  }
  func.func @transform_18(%arg0: i32, %arg1: i32) -> (i32, i32) {
    %c0_i32 = arith.constant 0 : i32
    %c0_i32_0 = arith.constant 0 : i32
    %c0_i32_1 = arith.constant 0 : i32
    return %c0_i32, %c0_i32_0 : i32, i32
  }
  func.func @transform_19(%arg0: i32, %arg1: i32) -> (i32, i32, i32) {
    %c0_i32 = arith.constant 0 : i32
    %c0_i32_0 = arith.constant 0 : i32
    return %arg0, %arg1, %c0_i32 : i32, i32, i32
  }
}

</mosaic_0001>

<bundles_post_ra>
// kernel: tpu_custom_call.1
= control target key start
LH: loop header
LB: loop body
LE: loop exit
PB: predicated region body
PF: predicated region fallthrough
CT: control target
= control target key end

     0   :  { %s6779_s0 = inlined_call_operand.hbm [shape: f32[2,128,128], index: 0, kind: input, shape index: {}]   ;;  %s6780_s1 = inlined_call_operand.hbm [shape: bf16[2,128,128], index: 1, kind: input, shape index: {}]   ;;  %s6781_s2 = inlined_call_operand.vmem [shape: f32[2,1,128], index: 2, kind: input, shape index: {}]   ;;  %s6782_s3 = inlined_call_operand.hbm [shape: bf16[128,128], index: 3, kind: input, shape index: {}]   ;;  %s6783_s4 = inlined_call_operand.vmem [shape: f32[1,128], index: 4, kind: input, shape index: {}]   ;;  %s6784_s5 = inlined_call_operand.hbm [shape: bf16[128,128], index: 5, kind: input, shape index: {}]   ;;  %s6785_s6 = inlined_call_operand.vmem [shape: f32[1,128], index: 6, kind: input, shape index: {}]   ;;  %s6786_s7 = inlined_call_operand.hbm [shape: bf16[128,128], index: 7, kind: input, shape index: {}]   ;;  %s6787_s8 = inlined_call_operand.vmem [shape: f32[1,128], index: 8, kind: input, shape index: {}]   ;;  %s6788_s9 = inlined_call_operand.hbm [shape: bf16[4,32,128], index: 9, kind: input, shape index: {}]   ;;  %s6789_s10 = inlined_call_operand.vmem [shape: f32[1,128], index: 10, kind: input, shape index: {}]   ;;  %s6790_s11 = inlined_call_operand.hbm [shape: bf16[128,256], index: 11, kind: input, shape index: {}]   ;;  %s6791_s12 = inlined_call_operand.vmem [shape: f32[1,256], index: 12, kind: input, shape index: {}]   ;;  %s6792_s13 = inlined_call_operand.hbm [shape: bf16[256,128], index: 13, kind: input, shape index: {}]   ;;  %s6793_s14 = inlined_call_operand.vmem [shape: f32[1,128], index: 14, kind: input, shape index: {}]   ;;  %s6794_s15 = inlined_call_operand.vmem [shape: f32[1,128], index: 15, kind: input, shape index: {}]   ;;  %s6795_s16 = inlined_call_operand.vmem [shape: f32[1,128], index: 16, kind: input, shape index: {}]   ;;  %s6796_s17 = inlined_call_operand.vmem [shape: f32[1,128], index: 17, kind: input, shape index: {}]   ;;  %s6797_s18 = inlined_call_operand.vmem [shape: f32[1,128], index: 18, kind: input, shape index: {}]   ;;  %s6798_s19 = inlined_call_operand.hbm [shape: f32[2,128,128], index: 19, kind: output, shape index: {}]  }
   0x1   :  { %6819 = sst [smem:[#allocation31_spill]] %s6779_s0 }
   0x2   :  { %6820 = sst [smem:[#allocation32_spill]] %s6780_s1 }
   0x3   :  { %6821 = sst [smem:[#allocation33_spill]] %s6781_s2 }
   0x4   :  { %6822 = sst [smem:[#allocation34_spill]] %s6782_s3 }
   0x5   :  { %6823 = sst [smem:[#allocation35_spill]] %s6783_s4 }
   0x6   :  { %6824 = sst [smem:[#allocation36_spill]] %s6784_s5 }
   0x7   :  { %6825 = sst [smem:[#allocation37_spill]] %s6785_s6 }
   0x8   :  { %6826 = sst [smem:[#allocation38_spill]] %s6786_s7 }
   0x9   :  { %6827 = sst [smem:[#allocation39_spill]] %s6787_s8 }
   0xa   :  { %6828 = sst [smem:[#allocation40_spill]] %s6788_s9 }
   0xb   :  { %6829 = sst [smem:[#allocation41_spill]] %s6789_s10 }
   0xc   :  { %6830 = sst [smem:[#allocation42_spill]] %s6790_s11 }
   0xd   :  { %6831 = sst [smem:[#allocation43_spill]] %s6791_s12 }
   0xe   :  { %6832 = sst [smem:[#allocation44_spill]] %s6792_s13 }
   0xf   :  { %6833 = sst [smem:[#allocation45_spill]] %s6793_s14 }
  0x10   :  { %6834 = sst [smem:[#allocation46_spill]] %s6794_s15 }
  0x11   :  { %6835 = sst [smem:[#allocation47_spill]] %s6795_s16 }
  0x12   :  { %6836 = sst [smem:[#allocation48_spill]] %s6796_s17 }
  0x13   :  { %6837 = sst [smem:[#allocation49_spill]] %s6797_s18 }
  0x14   :  { %6838 = sst [smem:[#allocation50_spill]] %s6798_s19 }
  0x15   :  { %24 = vsyncpa [#allocation5], 0 }
  0x16   :  { %26 = vsyncpa [#allocation5 + $0x1], 0 }
  0x17   :  { %27 = vsyncpa [#allocation8], 0 }
  0x18   :  { %29 = vsyncpa [#allocation8 + $0x1], 0 }
  0x19   :  { %30 = vsyncpa [#allocation11], 0 }
  0x1a   :  { %31 = vsyncpa [#allocation14], 0 }
  0x1b   :  { %32 = vsyncpa [#allocation17], 0 }
  0x1c   :  { %33 = vsyncpa [#allocation6], 0 }
  0x1d   :  { %35 = vsyncpa [#allocation6 + $0x1], 0  ;;  %s5558_s0 = smov 0   ;;  %s5560_s30 = smov 0  }
  0x1e   :  { %s5562_s20 = smov 0   ;;  %s5564_s21 = smov 0  }
  0x1f   :  { %s5566_s1 = smov 0   ;;  %s5568_s22 = smov 0  }
  0x20   :  { %s5570_s2 = smov 0   ;;  %s5572_s23 = smov 0  }
  0x21   :  { %s5574_s24 = smov 0   ;;  %s5576_s25 = smov 0  }
  0x22   :  { %s5578_s3 = smov 0  }
  0x23 LB: > { %6839 = sst [smem:[#allocation26_spill]] %s5397_s0  ;;  %s5614_s26 = sadd.s32 4294967295, %s5437_s3   ;;  %s5437_s3 = sphi %s5578_s3, %s41_s3   ;;  %s5433_s25 = sphi %s5576_s25, %s6913_s25   ;;  %s5429_s24 = sphi %s5574_s24, %s6912_s24   ;;  %s5425_s23 = sphi %s5572_s23, %s6911_s23   ;;  %s5421_s2 = sphi %s5570_s2, %s6910_s2   ;;  %s5417_s22 = sphi %s5568_s22, %s6909_s22   ;;  %s5413_s1 = sphi %s5566_s1, %s6908_s1   ;;  %s5409_s21 = sphi %s5564_s21, %s6907_s21   ;;  %s5405_s20 = sphi %s5562_s20, %s6906_s20   ;;  %s5401_s30 = sphi %s5560_s30, %s6905_s30   ;;  %s5397_s0 = sphi %s5558_s0, %s6904_s0  }
  0x24   : > { %6840 = sst [smem:[#allocation27_spill]] %s5421_s2  ;;  %p3904_p0 = scmp.ge.s32.totalorder %s5437_s3, 1 }
  0x25   : > { %6841 = sst [smem:[#allocation28_spill]] %s5425_s23  ;;  %p6805_p1 = scmp.eq.s32.totalorder %s5614_s26, 0 }
  0x26   : > { %p502_p2 = scmp.lt.s32.totalorder %s5437_s3, 5  ;;  %s5439_s28 = smov [#allocation9]  }
  0x27   : > { %s514_s29 = sshll.u32 %s5439_s28, 4  ;;  %s5440_s18 = smov [#allocation10]   ;;  %s5623_s29 = int_to_ptr.vmem [resolvable:$true] %s514_s29 }
  0x28   : > { %p5619_p3 = pnand %p3904_p0, %p502_p2  ;;  %s530_s17 = sshll.u32 %s5440_s18, 4  ;;  %s5633_s17 = int_to_ptr.vmem [resolvable:$true] %s530_s17 }
  0x29   : > { %s5441_s14 = smov [#allocation13]   ;;  %s6845_s28 = sld [smem:[#allocation34_spill]] }
  0x2a   : > { %s6842_s27 = scalar_select %p5619_p3, 1, 0 }
  0x2b   : > { %p4669_p4 = pneg %p5619_p3  ;;  %s5635_s12 = sshll.u32 %s5441_s14, 4  ;;  %s563_s12 = int_to_ptr.vmem [resolvable:$true] %s5635_s12 }
  0x2c   : > { %6843 = sst [smem:[#allocation29_spill]] %s6842_s27 }
  0x2d   : > { %p5629_p5 = pnand %p4669_p4, %p6805_p1 }
  0x2f   : > { %s5067_s10 = scalar_lea.hbm %s6845_s28, 1024  ;;  %p5645_p7 = pneg %p5629_p5 }
  0x30   : > { %p5068_p6 = scmp.ne.s32.totalorder %s6845_s28, %s5067_s10  ;;  %p5074_p10 = scmp.lt.u32.totalorder %s5067_s10, %s6845_s28 }
  0x32   : > { %p5070_p8 = pnand %p5645_p7, %p5068_p6 }
  0x34   : > { %p5071_p9 = pneg %p5070_p8 }
  0x36   : > { %p5076_p11 = pnand %p5074_p10, %p5071_p9 }
  0x38   : > { %5079 = shalt.err (!%p5076_p11)
}
  0x39   : > { %s5080_s4 = scalar_lea.vmem %s5623_s29, 1024  ;;  %p5088_p2 = scmp.lt.s32.totalorder %s5623_s29, %s5623_s29 }
  0x3a   : > { %p5081_p12 = scmp.ne.s32.totalorder %s5623_s29, %s5080_s4  ;;  %p5089_p4 = scmp.lt.s32.totalorder %s5080_s4, %s5080_s4 }
  0x3c   : > { %p5083_p13 = pnand %p5081_p12, %p5645_p7  ;;  %p5090_p6 = por %p5089_p4, %p5088_p2 }
  0x3e   : > { %p5084_p0 = pneg %p5083_p13 }
  0x40   : > { %p5091_p8 = pnand %p5090_p6, %p5084_p0 }
  0x42   : > { %5094 = shalt.err (!%p5091_p8)
}
  0x43   : > { %s6807_s8 = smov 64   ;;  %s6809_s10 = smov 4  }
  0x44   : > { %4672 = dma.hbm_to_vmem [thread:$0]  (!%p5629_p5), %s6845_s28, 1024, %s5623_s29, [#allocation8], %s6807_s8, %s6807_s8, %s6809_s10  }
  0x45   : > { %s6847_s5 = sld [smem:[#allocation36_spill]] }
  0x4b   : > { %s5095_s4 = scalar_lea.hbm %s6847_s5, 1024 }
  0x4c   : > { %p5096_p9 = scmp.ne.s32.totalorder %s6847_s5, %s5095_s4  ;;  %p5102_p12 = scmp.lt.u32.totalorder %s5095_s4, %s6847_s5 }
  0x4e   : > { %p5098_p10 = pnand %p5096_p9, %p5645_p7 }
  0x50   : > { %p5099_p11 = pneg %p5098_p10 }
  0x52   : > { %p5104_p13 = pnand %p5102_p12, %p5099_p11 }
  0x54   : > { %5107 = shalt.err (!%p5104_p13)
}
  0x55   : > { %s5108_s29 = scalar_lea.vmem %s5633_s17, 1024  ;;  %p5116_p6 = scmp.lt.s32.totalorder %s5633_s17, %s5633_s17 }
  0x56   : > { %p5109_p0 = scmp.ne.s32.totalorder %s5633_s17, %s5108_s29  ;;  %p5117_p8 = scmp.lt.s32.totalorder %s5108_s29, %s5108_s29 }
  0x58   : > { %p5111_p2 = pnand %p5109_p0, %p5645_p7  ;;  %p5118_p9 = por %p5117_p8, %p5116_p6 }
  0x5a   : > { %p5112_p4 = pneg %p5111_p2 }
  0x5c   : > { %p5119_p10 = pnand %p5118_p9, %p5112_p4 }
  0x5e   : > { %5122 = shalt.err (!%p5119_p10)
}
  0x5f   : > { %4675 = dma.hbm_to_vmem [thread:$0]  (!%p5629_p5), %s6847_s5, 1024, %s5633_s17, [#allocation11], %s6807_s8, %s6807_s8, %s6809_s10  }
  0x60   : > { %s6848_s9 = sld [smem:[#allocation40_spill]] }
  0x66   : > { %s5123_s15 = scalar_lea.hbm %s6848_s9, 1024 }
  0x67   : > { %p5124_p11 = scmp.ne.s32.totalorder %s6848_s9, %s5123_s15  ;;  %p5130_p0 = scmp.lt.u32.totalorder %s5123_s15, %s6848_s9 }
  0x69   : > { %p5126_p12 = pnand %p5124_p11, %p5645_p7 }
  0x6b   : > { %p5127_p13 = pneg %p5126_p12 }
  0x6d   : > { %p5132_p2 = pnand %p5130_p0, %p5127_p13 }
  0x6f   : > { %5135 = shalt.err (!%p5132_p2)
}
  0x70   : > { %s5136_s29 = scalar_lea.vmem %s563_s12, 1024  ;;  %p5144_p9 = scmp.lt.s32.totalorder %s563_s12, %s563_s12 }
  0x71   : > { %p5137_p4 = scmp.ne.s32.totalorder %s563_s12, %s5136_s29  ;;  %p5145_p10 = scmp.lt.s32.totalorder %s5136_s29, %s5136_s29 }
  0x73   : > { %p5139_p6 = pnand %p5137_p4, %p5645_p7  ;;  %p5146_p1 = por %p5145_p10, %p5144_p9 }
  0x75   : > { %p5140_p8 = pneg %p5139_p6 }
  0x77   : > { %p5147_p3 = pnand %p5146_p1, %p5140_p8 }
  0x79   : > { %5150 = shalt.err (!%p5147_p3)
}
  0x7a   : > { %4681 = dma.hbm_to_vmem [thread:$0]  (!%p5629_p5), %s6848_s9, 1024, %s563_s12, [#allocation14], %s6807_s8, %s6807_s8, %s6809_s10  }
  0x7b   : > { %s5444_s2 = smov [#allocation12]   ;;  %s5445_s27 = smov [#allocation15]  }
  0x7c   : > { %s546_s23 = sshll.u32 %s5444_s2, 4  ;;  %s578_s15 = sshll.u32 %s5445_s27, 4  ;;  %s547_s23 = int_to_ptr.vmem [resolvable:$true] %s546_s23  ;;  %s579_s15 = int_to_ptr.vmem [resolvable:$true] %s578_s15 }
  0x7d   : > { %s6849_s7 = sld [smem:[#allocation38_spill]] }
  0x83   : > { %s5151_s14 = scalar_lea.hbm %s6849_s7, 1024 }
  0x84   : > { %p5152_p1 = scmp.ne.s32.totalorder %s6849_s7, %s5151_s14  ;;  %p5158_p12 = scmp.lt.u32.totalorder %s5151_s14, %s6849_s7 }
  0x86   : > { %p5154_p3 = pnand %p5152_p1, %p5645_p7 }
  0x88   : > { %p5155_p11 = pneg %p5154_p3 }
  0x8a   : > { %p5160_p13 = pnand %p5158_p12, %p5155_p11 }
  0x8c   : > { %5163 = shalt.err (!%p5160_p13)
}
  0x8d   : > { %s5164_s12 = scalar_lea.vmem %s547_s23, 1024  ;;  %p5172_p6 = scmp.lt.s32.totalorder %s547_s23, %s547_s23 }
  0x8e   : > { %p5165_p0 = scmp.ne.s32.totalorder %s547_s23, %s5164_s12  ;;  %p5173_p8 = scmp.lt.s32.totalorder %s5164_s12, %s5164_s12 }
  0x90   : > { %p5167_p2 = pnand %p5165_p0, %p5645_p7  ;;  %p5174_p9 = por %p5173_p8, %p5172_p6 }
  0x92   : > { %p5168_p4 = pneg %p5167_p2 }
  0x94   : > { %p5175_p10 = pnand %p5174_p9, %p5168_p4 }
  0x96   : > { %5178 = shalt.err (!%p5175_p10)
}
  0x97   : > { %4678 = dma.hbm_to_vmem [thread:$0]  (!%p5629_p5), %s6849_s7, 1024, %s547_s23, [#allocation11], %s6807_s8, %s6807_s8, %s6809_s10  }
  0x98   : > { %s6850_s11 = sld [smem:[#allocation42_spill]] }
  0x9e   : > { %s5179_s16 = scalar_lea.hbm %s6850_s11, 2048 }
  0x9f   : > { %p5180_p1 = scmp.ne.s32.totalorder %s6850_s11, %s5179_s16  ;;  %p5186_p12 = scmp.lt.u32.totalorder %s5179_s16, %s6850_s11 }
  0xa1   : > { %p5182_p3 = pnand %p5180_p1, %p5645_p7 }
  0xa3   : > { %p5183_p11 = pneg %p5182_p3 }
  0xa5   : > { %p5188_p13 = pnand %p5186_p12, %p5183_p11 }
  0xa7   : > { %5191 = shalt.err (!%p5188_p13)
}
  0xa8   : > { %s5192_s17 = scalar_lea.vmem %s579_s15, 2048  ;;  %p5200_p6 = scmp.lt.s32.totalorder %s579_s15, %s579_s15 }
  0xa9   : > { %p5193_p0 = scmp.ne.s32.totalorder %s579_s15, %s5192_s17  ;;  %p5201_p8 = scmp.lt.s32.totalorder %s5192_s17, %s5192_s17 }
  0xab   : > { %p5195_p2 = pnand %p5193_p0, %p5645_p7  ;;  %p5202_p9 = por %p5201_p8, %p5200_p6 }
  0xad   : > { %p5196_p4 = pneg %p5195_p2 }
  0xaf   : > { %p5203_p10 = pnand %p5202_p9, %p5196_p4 }
  0xb1   : > { %5206 = shalt.err (!%p5203_p10)
}
  0xb2   : > { %s6810_s23 = smov 128   ;;  %s6811_s12 = smov 8  }
  0xb3   : > { %4684 = dma.hbm_to_vmem [thread:$0]  (!%p5629_p5), %s6850_s11, 2048, %s579_s15, [#allocation14], %s6810_s23, %s6810_s23, %s6811_s12  }
  0xb4   : > { %s5448_s2 = smov [#allocation16]   ;;  %s6851_s13 = sld [smem:[#allocation44_spill]] }
  0xb5   : > { %s594_s27 = sshll.u32 %s5448_s2, 4  ;;  %s595_s27 = int_to_ptr.vmem [resolvable:$true] %s594_s27 }
  0xba   : > { %s5207_s14 = scalar_lea.hbm %s6851_s13, 2048 }
  0xbb   : > { %p5208_p1 = scmp.ne.s32.totalorder %s6851_s13, %s5207_s14  ;;  %p5214_p12 = scmp.lt.u32.totalorder %s5207_s14, %s6851_s13 }
  0xbd   : > { %p5210_p3 = pnand %p5208_p1, %p5645_p7 }
  0xbf   : > { %p5211_p11 = pneg %p5210_p3 }
  0xc1   : > { %p5216_p13 = pnand %p5214_p12, %p5211_p11 }
  0xc3   : > { %5219 = shalt.err (!%p5216_p13)
}
  0xc4   : > { %s5220_s15 = scalar_lea.vmem %s595_s27, 2048  ;;  %p5228_p6 = scmp.lt.s32.totalorder %s595_s27, %s595_s27 }
  0xc5   : > { %p5221_p0 = scmp.ne.s32.totalorder %s595_s27, %s5220_s15  ;;  %p5229_p8 = scmp.lt.s32.totalorder %s5220_s15, %s5220_s15 }
  0xc7   : > { %p5223_p2 = pnand %p5221_p0, %p5645_p7  ;;  %p5230_p9 = por %p5229_p8, %p5228_p6 }
  0xc9   : > { %p5224_p4 = pneg %p5223_p2 }
  0xcb   : > { %p5231_p10 = pnand %p5230_p9, %p5224_p4 }
  0xcd   : > { %5234 = shalt.err (!%p5231_p10)
}
  0xce   : > { %s6852_s5 = smov 64   ;;  %s3903_s6 = sadd.s32 4294967294, %s5437_s3  }
  0xcf   : > { %4687 = dma.hbm_to_vmem [thread:$0]  (!%p5629_p5), %s6851_s13, 2048, %s595_s27, [#allocation17], %s6852_s5, %s6852_s5, %s6809_s10  }
  0xd0   : > { %s50_s19 = sadd.s32 1, %s5429_s24  ;;  %s53_s2 = sadd.s32 1, %s5433_s25 }
  0xd1   : > { %p51_p7 = scmp.ge.s32.totalorder %s50_s19, 2  ;;  %s62_s16 = sadd.s32 1, %s5417_s22 }
  0xd2   : > { %p69_p1 = scmp.ne.s32.totalorder %s5417_s22, %s5413_s1  ;;  %p6814_p3 = scmp.eq.s32.totalorder %s5437_s3, 0 }
  0xd3   : > { %s6915_s19 = smov (%p51_p7, %s50_s19), 0  ;;  %s6917_s2 = smov (!%p51_p7, %s53_s2), %s5433_s25 }
  0xd4   : > { %s58_s18 = ssub.s32 %s5429_s24, %s6915_s19  ;;  %p55_p11 = scmp.ge.s32.totalorder %s6917_s2, 2 }
  0xd5   : > { %p75_p12 = scmp.ne.s32.totalorder %s5413_s1, %s5409_s21  ;;  %p5796_p5 = por %p6814_p3, %p69_p1 }
  0xd6   : > { %p489_p13 = scmp.eq.s32.totalorder %s5614_s26, 3  ;;  %s6919_s2 = smov (%p55_p11, %s6917_s2), 0 }
  0xd7   : > { %6854 = sst [smem:[#allocation30_spill]] %s6919_s2  ;;  %p6855_p0 = scmp.eq.s32.totalorder %s5614_s26, 0 }
  0xd8   : > { %p5809_p4 = por %p489_p13, %p69_p1  ;;  %s5815_s29 = ssub.s32 %s5433_s25, %s6919_s2 }
  0xd9   : > { %p5805_p2 = por %p6855_p0, %p75_p12  ;;  %p495_p6 = scmp.eq.s32.totalorder %s3903_s6, 3 }
  0xda   : > { %s6857_s4 = scalar_select %p5809_p4, 1, 0 }
  0xdb   : > { %s59_s17 = sor.u32 %s58_s18, %s5815_s29  ;;  %p5819_p10 = por %p495_p6, %p75_p12 }
  0xdc   : > { %p60_p9 = scmp.eq.s32.totalorder %s59_s17, 0  ;;  %p6813_p7 = scmp.lt.s32.totalorder %s5437_s3, 4 }
  0xdd   : > { %s6858_s15 = scalar_select %p5819_p10, 1, 0 }
  0xde   : > { %s623_s8 = sand.u32 1, %s5417_s22   ;;  %s3913_s23 = sshll.u32 %s5429_s24, 3 }
  0xdf   : > { %s5826_s0 = scalar_select %p60_p9, %s5417_s22, %s62_s16  }
  0xe0   : > { %s3912_s10 = sshll.u32 %s623_s8, 6  ;;  %s3914_s12 = sshll.u32 %s5433_s25, 4 }
  0xe1   : > { %s627_s7 = scalar_lea.vmem [#allocation4], %s3912_s10  ;;  %s633_s11 = sadd.s32 %s3914_s12, %s3913_s23 }
  0xe2   : > { %s636_s9 = sshll.u32 %s627_s7, 4  ;;  %s3915_s6 = sshll.u32 %s633_s11, 7  ;;  %s5830_s9 = int_to_ptr.vmem [resolvable:$true] %s636_s9 }
  0xe3   : > { %p5836_p1 = pnand %p6813_p7, %p5796_p5  ;;  %s6860_s28 = sld [smem:[#allocation31_spill]] }
  0xe4   : > { %s5845_s7 = scalar_lea.sflag [#allocation5], %s623_s8 }
  0xe5   : > { %p5237_p12 = pneg %p5836_p1 }
  0xe9   : > { %s5843_s16 = scalar_lea.hbm %s6860_s28, %s3915_s6  ;;  %s5240_s23 = scalar_lea.hbm %s6860_s28, 4096 }
  0xea   : > { %s5235_s11 = scalar_lea.hbm %s5843_s16, 1024  ;;  %p5241_p0 = scmp.lt.u32.totalorder %s5843_s16, %s6860_s28 }
  0xeb   : > { %p5236_p11 = scmp.ne.s32.totalorder %s5843_s16, %s5235_s11  ;;  %p5242_p6 = scmp.lt.u32.totalorder %s5240_s23, %s5235_s11 }
  0xec   : > { %p5244_p7 = scmp.lt.u32.totalorder %s5235_s11, %s5843_s16 }
  0xed   : > { %p5238_p5 = pnand %p5237_p12, %p5236_p11  ;;  %p5243_p9 = por %p5242_p6, %p5241_p0 }
  0xef   : > { %p5239_p13 = pneg %p5238_p5  ;;  %p5245_p3 = por %p5244_p7, %p5243_p9 }
  0xf1   : > { %p5246_p8 = pnand %p5245_p3, %p5239_p13 }
  0xf3   : > { %5249 = shalt.err (!%p5246_p8)
}
  0xf4   : > { %s5250_s8 = scalar_lea.vmem %s5830_s9, 1024  ;;  %s5449_s6 = smov [#allocation4]  }
  0xf5   : > { %p5251_p11 = scmp.ne.s32.totalorder %s5830_s9, %s5250_s8  ;;  %s5255_s17 = sshll.u32 %s5449_s6, 4  ;;  %s5256_s17 = int_to_ptr.vmem [resolvable:$false] %s5255_s17 }
  0xf6   : > { %s5257_s10 = scalar_lea.vmem %s5256_s17, 2048  ;;  %p5258_p4 = scmp.lt.s32.totalorder %s5830_s9, %s5256_s17 }
  0xf7   : > { %p5253_p5 = pnand %p5251_p11, %p5237_p12  ;;  %p5259_p0 = scmp.lt.s32.totalorder %s5257_s10, %s5250_s8 }
  0xf9   : > { %p5254_p10 = pneg %p5253_p5  ;;  %p5260_p6 = por %p5259_p0, %p5258_p4 }
  0xfb   : > { %p5261_p7 = pnand %p5260_p6, %p5254_p10 }
  0xfd   : > { %5264 = shalt.err (!%p5261_p7)
}
  0xfe   : > { %s6861_s11 = smov 8   ;;  %s6862_s13 = smov 128  }
  0xff   : > { %s6863_s23 = sld [smem:[#allocation26_spill]]  ;;  %s88_s18 = sadd.s32 1, %s5405_s20 }
 0x100   : > { %4691 = dma.hbm_to_vmem [thread:$0]  (!%p5836_p1), %s5843_s16, 1024, %s5830_s9, %s5845_s7, %s6862_s13, %s6862_s13, %s6861_s11  }
 0x101   : > { %p95_p3 = scmp.ne.s32.totalorder %s5405_s20, %s5401_s30  ;;  %p6864_p4 = scmp.eq.s32.totalorder %s5815_s29, 0 }
 0x102   : > { %p6865_p8 = scmp.eq.s32.totalorder %s5437_s3, 0  ;;  %s646_s27 = sand.u32 1, %s5437_s3  }
 0x103   : > { %s5882_s12 = scalar_select %p6864_p4, %s5405_s20, %s88_s18  }
 0x104   : > { %p97_p10 = por %p95_p3, %p6865_p8  ;;  %s648_s8 = sand.u32 1, %s5405_s20  }
 0x105   : > { %p101_p12 = scmp.ne.s32.totalorder %s5401_s30, %s6863_s23  ;;  %p6866_p13 = scmp.eq.s32.totalorder %s5614_s26, 0 }
 0x106   : > { %s3916_s17 = sshll.u32 %s648_s8, 6  ;;  %s4050_s10 = sshll.u32 %s5433_s25, 10 }
 0x107   : > { %p5892_p9 = por %p101_p12, %p6866_p13  ;;  %s6868_s9 = sld [smem:[#allocation32_spill]] }
 0x108   : > { %s650_s29 = scalar_lea.vmem [#allocation7], %s3916_s17  ;;  %p6869_p1 = scmp.lt.s32.totalorder %s5437_s3, 4 }
 0x109   : > { %s6867_s6 = scalar_select %p5892_p9, 1, 0 }
 0x10a   : > { %s657_s7 = sshll.u32 %s650_s29, 4  ;;  %p5904_p11 = pnand %p6869_p1, %p97_p10  ;;  %s5908_s7 = int_to_ptr.vmem [resolvable:$true] %s657_s7 }
 0x10b   : > { %s5910_s13 = scalar_lea.sflag [#allocation8], %s646_s27 }
 0x10c   : > { %p5267_p0 = pneg %p5904_p11 }
 0x10d   : > { %s5900_s16 = scalar_lea.hbm %s6868_s9, %s4050_s10  ;;  %s5270_s18 = scalar_lea.hbm %s6868_s9, 2048 }
 0x10e   : > { %s5265_s28 = scalar_lea.hbm %s5900_s16, 1024  ;;  %p5271_p3 = scmp.lt.u32.totalorder %s5900_s16, %s6868_s9 }
 0x10f   : > { %p5266_p5 = scmp.ne.s32.totalorder %s5900_s16, %s5265_s28  ;;  %p5272_p4 = scmp.lt.u32.totalorder %s5270_s18, %s5265_s28 }
 0x110   : > { %p5274_p10 = scmp.lt.u32.totalorder %s5265_s28, %s5900_s16 }
 0x111   : > { %p5268_p6 = pnand %p5267_p0, %p5266_p5  ;;  %p5273_p8 = por %p5272_p4, %p5271_p3 }
 0x113   : > { %p5269_p7 = pneg %p5268_p6  ;;  %p5275_p12 = por %p5274_p10, %p5273_p8 }
 0x115   : > { %p5276_p13 = pnand %p5275_p12, %p5269_p7 }
 0x117   : > { %5279 = shalt.err (!%p5276_p13)
}
 0x118   : > { %s5280_s27 = scalar_lea.vmem %s5908_s7, 1024  ;;  %s5450_s10 = smov [#allocation7]  }
 0x119   : > { %p5281_p1 = scmp.ne.s32.totalorder %s5908_s7, %s5280_s27  ;;  %s5285_s29 = sshll.u32 %s5450_s10, 4  ;;  %s5286_s29 = int_to_ptr.vmem [resolvable:$false] %s5285_s29 }
 0x11a   : > { %s5287_s2 = scalar_lea.vmem %s5286_s29, 2048  ;;  %p5288_p9 = scmp.lt.s32.totalorder %s5908_s7, %s5286_s29 }
 0x11b   : > { %p5283_p5 = pnand %p5281_p1, %p5267_p0  ;;  %p5289_p3 = scmp.lt.s32.totalorder %s5287_s2, %s5280_s27 }
 0x11d   : > { %p5284_p6 = pneg %p5283_p5  ;;  %p5290_p4 = por %p5289_p3, %p5288_p9 }
 0x11f   : > { %p5291_p8 = pnand %p5290_p4, %p5284_p6 }
 0x121   : > { %5294 = shalt.err (!%p5291_p8)
}
 0x122   : > { %s6871_s28 = smov 4   ;;  %s6872_s23 = sld [smem:[#allocation29_spill]] }
 0x123   : > { %4694 = dma.hbm_to_vmem [thread:$0]  (!%p5904_p11), %s5900_s16, 1024, %s5908_s7, %s5910_s13, %s6852_s5, %s6852_s5, %s6871_s28  }
 0x128   : > { %p6873_p0 = scmp.ne.s32.totalorder %s6872_s23, 0 }
 0x129   : > { %s5944_s18 = sand.u32 (!%p6873_p0), 1, %s5413_s1  }
 0x12a   : > { %675 = sbr.rel (%p6873_p0) target bundleno = 4717 (0x126d), region = 96  ;;  %s3920_s8 = sshll.u32 (!%p6873_p0), %s5944_s18, 6 }
 0x12b   : > { %s678_s17 = scalar_lea.sflag (!%p6873_p0), [#allocation5], %s5944_s18  ;;  %s5948_s27 = scalar_lea.vmem (!%p6873_p0), [#allocation4], %s3920_s8 }
 0x131   : > { %5368 = dma.done.wait (%p5805_p2), %s678_s17, 1024  }
 0x132   : > { %5370 = vsyncadd (%p5805_p2), %s678_s17, 4294966272  ;;  %s686_s5 = sand.u32 1, %s5614_s26   ;;  %s688_s16 = sand.u32 1, %s5401_s30  }
 0x133   : > { %s3921_s7 = sshll.u32 %s688_s16, 6  ;;  %s687_s11 = scalar_lea.sflag [#allocation8], %s686_s5 }
 0x134   : > { %s5956_s13 = scalar_lea.vmem [#allocation7], %s3921_s7  ;;  %p6874_p9 = scmp.ne.s32.totalorder %s6867_s6, 0 }
 0x136   : > { %5372 = dma.done.wait (%p6874_p9), %s687_s11, 1024  }
 0x137   : > { %5374 = vsyncadd (%p6874_p9), %s687_s11, 4294966272  ;;  %p6875_p11 = scmp.eq.s32.totalorder %s5614_s26, 0 }
 0x139   : > { %5376 = dma.done.wait (%p6875_p11), [#allocation8], 1024   ;;  %p6876_p7 = pmov %p6875_p11 }
 0x13b   : > { %5378 = vsyncadd (%p6876_p7), [#allocation8], 4294966272  ;;  %p6877_p2 = pmov %p6876_p7 }
 0x13d   : > { %5380 = dma.done.wait (%p6877_p2), [#allocation11], 2048   ;;  %p6878_p10 = pmov %p6877_p2 }
 0x13e   : > { %p6879_p12 = pmov %p6877_p2 }
 0x13f   : > { %5382 = vsyncadd (%p6878_p10), [#allocation11], 4294965248 }
 0x140   : > { %5384 = dma.done.wait (%p6879_p12), [#allocation14], 3072   ;;  %p6880_p13 = pmov %p6877_p2 }
 0x141   : > { %p6881_p1 = pmov %p6877_p2 }
 0x142   : > { %5386 = vsyncadd (%p6880_p13), [#allocation14], 4294964224 }
 0x143   : > { %5388 = dma.done.wait (%p6881_p1), [#allocation17], 2048   ;;  %p6882_p5 = pmov %p6881_p1 }
 0x144   : > { %s6883_s14 = sld [smem:[#allocation28_spill]]  ;;  %s6884_s29 = sld [smem:[#allocation33_spill]] }
 0x145   : > { %5390 = vsyncadd (%p6882_p5), [#allocation17], 4294965248  ;;  %s5985_s28 = scalar_lea.vmem [#allocation18], %s3920_s8  ;;  %s6885_s23 = sld [smem:[#allocation27_spill]] }
 0x14a   : > { %p778_p6 = scmp.lt.s32.totalorder %s6883_s14, 1 }
 0x14b   : > { %p3929_p3 = scmp.ne.s32.totalorder %s6885_s23, 0 }
 0x14c   : > { %s6921_s14 = smov (!%p778_p6, %s6883_s14), 1  ;;  %v4817_v0 = vld [vmem:[#allocation10] sm:$0xff] (!%p3929_p3)   ;;  %v4819_v2 = vld [vmem:[#allocation10 + $0x8] sm:$0xff] (!%p3929_p3)   ;;  %v4821_v4 = vld [vmem:[#allocation10 + $0x10] sm:$0xff] (!%p3929_p3)   ;;  %s6886_s17 = sld [smem:[#allocation37_spill]] (!%p3929_p3) }
 0x14d   : > { %s5983_s2 = scalar_lea.vmem %s6884_s29, %s6921_s14  ;;  %786 = sbr.rel (%p3929_p3) target bundleno = 610 (0x262), region = 132  ;;  %v4818_v1 = vld [vmem:[#allocation12] sm:$0xff] (!%p3929_p3)   ;;  %4255 = vmatprep.subr.bf16.mxu0 (!%p3929_p3), %v4817_v0  ;;  %v4820_v3 = vld [vmem:[#allocation12 + $0x8] sm:$0xff] (!%p3929_p3)   ;;  %v4822_v5 = vld [vmem:[#allocation12 + $0x10] sm:$0xff] (!%p3929_p3)  }
 0x14e   : > { %4287 = vmatprep.subr.bf16.mxu1 (!%p3929_p3), %v4818_v1  ;;  %4256 = vmatpush3.bf16.msra.mxu0 (!%p3929_p3), %v4817_v0  ;;  %v4823_v6 = vld [vmem:[#allocation10 + $0x18] sm:$0xff] (!%p3929_p3)   ;;  %v4825_v8 = vld [vmem:[#allocation10 + $0x20] sm:$0xff] (!%p3929_p3)   ;;  %v4827_v10 = vld [vmem:[#allocation10 + $0x28] sm:$0xff] (!%p3929_p3)   ;;  %s6887_s7 = sld [smem:[#allocation39_spill]] (!%p3929_p3) }
 0x14f   : > { %4288 = vmatpush3.bf16.msra.mxu1 (!%p3929_p3), %v4818_v1  ;;  %4257 = vmatprep.subr.bf16.mxu0 (!%p3929_p3), %v4819_v2  ;;  %v4824_v7 = vld [vmem:[#allocation12 + $0x18] sm:$0xff] (!%p3929_p3)   ;;  %v4826_v9 = vld [vmem:[#allocation12 + $0x20] sm:$0xff] (!%p3929_p3)   ;;  %v4828_v12 = vld [vmem:[#allocation12 + $0x28] sm:$0xff] (!%p3929_p3)  }
 0x150   : > { %4289 = vmatprep.subr.bf16.mxu1 (!%p3929_p3), %v4820_v3  ;;  %v4833_v11 = vld [vmem:[%s5956_s13] sm:$0xff] (!%p3929_p3)   ;;  %v4829_v13 = vld [vmem:[#allocation10 + $0x30] sm:$0xff] (!%p3929_p3)   ;;  %v4831_v15 = vld [vmem:[#allocation10 + $0x38] sm:$0xff] (!%p3929_p3)  }
 0x151   : > { %4271 = vmatprep.mubr.bf16.mxu0 (!%p3929_p3), %v4833_v11  ;;  %4303 = vmatprep.mubr.bf16.mxu1 (!%p3929_p3), %v4833_v11  ;;  %v4830_v14 = vld [vmem:[#allocation12 + $0x30] sm:$0xff] (!%p3929_p3)   ;;  %v4832_v16 = vld [vmem:[#allocation12 + $0x38] sm:$0xff] (!%p3929_p3)   ;;  %v4834_v17 = vld [vmem:[%s5956_s13 + $0x8] sm:$0xff] (!%p3929_p3)  }
 0x152   : > { %4258 = vmatpush3.bf16.msra.mxu0 (!%p3929_p3), %v4819_v2  ;;  %v4835_v18 = vld [vmem:[%s5956_s13 + $0x10] sm:$0xff] (!%p3929_p3)   ;;  %v4836_v19 = vld [vmem:[%s5956_s13 + $0x18] sm:$0xff] (!%p3929_p3)   ;;  %v4837_v20 = vld [vmem:[%s5956_s13 + $0x20] sm:$0xff] (!%p3929_p3)  }
 0x153   : > { %4290 = vmatpush3.bf16.msra.mxu1 (!%p3929_p3), %v4820_v3  ;;  %4259 = vmatprep.subr.bf16.mxu0 (!%p3929_p3), %v4821_v4  ;;  %v4838_v21 = vld [vmem:[%s5956_s13 + $0x28] sm:$0xff] (!%p3929_p3)   ;;  %v4839_v22 = vld [vmem:[%s5956_s13 + $0x30] sm:$0xff] (!%p3929_p3)   ;;  %v4840_v23 = vld [vmem:[%s5956_s13 + $0x38] sm:$0xff] (!%p3929_p3)  }
 0x154   : > { %4291 = vmatprep.subr.bf16.mxu1 %v4822_v5  ;;  %v5999_v25 = vld [vmem:[%s6886_s17] ss:$0 sm:$0xff] }
 0x155   : > { %v6004_v27 = vld [vmem:[%s6887_s7] ss:$0 sm:$0xff] }
 0x156   : > { %4260 = vmatpush3.bf16.msra.mxu0 %v4821_v4 }
 0x157   : > { %4292 = vmatpush3.bf16.msra.mxu1 %v4822_v5  ;;  %4261 = vmatprep.subr.bf16.mxu0 %v4823_v6 }
 0x158   : > { %4293 = vmatprep.subr.bf16.mxu1 %v4824_v7 }
 0x15a   : > { %4262 = vmatpush3.bf16.msra.mxu0 %v4823_v6 }
 0x15b   : > { %4294 = vmatpush3.bf16.msra.mxu1 %v4824_v7  ;;  %4263 = vmatprep.subr.bf16.mxu0 %v4825_v8 }
 0x15c   : > { %4295 = vmatprep.subr.bf16.mxu1 %v4826_v9 }
 0x15e   : > { %4264 = vmatpush3.bf16.msra.mxu0 %v4825_v8 }
 0x15f   : > { %4296 = vmatpush3.bf16.msra.mxu1 %v4826_v9  ;;  %4265 = vmatprep.subr.bf16.mxu0 %v4827_v10 }
 0x160   : > { %4297 = vmatprep.subr.bf16.mxu1 %v4828_v12 }
 0x162   : > { %4266 = vmatpush3.bf16.msra.mxu0 %v4827_v10 }
 0x163   : > { %4298 = vmatpush3.bf16.msra.mxu1 %v4828_v12  ;;  %4267 = vmatprep.subr.bf16.mxu0 %v4829_v13 }
 0x164   : > { %4299 = vmatprep.subr.bf16.mxu1 %v4830_v14 }
 0x166   : > { %4268 = vmatpush3.bf16.msra.mxu0 %v4829_v13 }
 0x167   : > { %4300 = vmatpush3.bf16.msra.mxu1 %v4830_v14  ;;  %4269 = vmatprep.subr.bf16.mxu0 %v4831_v15 }
 0x168   : > { %4301 = vmatprep.subr.bf16.mxu1 %v4832_v16 }
 0x16a   : > { %4270 = vmatpush3.bf16.msra.mxu0 %v4831_v15 }
 0x16b   : > { %4302 = vmatpush3.bf16.msra.mxu1 %v4832_v16 }
 0x16d   : > { %4272 = vmatmul.mubr.bf16.vlgmr.msra.gmra.mrb[0].mxu0 %v4834_v17 }
 0x16e   : > { %4304 = vmatmul.mubr.bf16.vlgmr.msra.gmra.mrb[0].mxu1 %v4834_v17  ;;  %4275 = vmatprep.mubr.bf16.mxu0 %v4835_v18 }
 0x16f   : > { %4307 = vmatprep.mubr.bf16.mxu1 %v4835_v18 }
 0x175   : > { %4276 = vmatmul.mubr.bf16.gmra.mrb[4].mxu0 %v4836_v19 }
 0x176   : > { %4308 = vmatmul.mubr.bf16.gmra.mrb[4].mxu1 %v4836_v19  ;;  %4279 = vmatprep.mubr.bf16.mxu0 %v4837_v20 }
 0x177   : > { %4311 = vmatprep.mubr.bf16.mxu1 %v4837_v20 }
 0x17d   : > { %4280 = vmatmul.mubr.bf16.gmra.mrb[8].mxu0 %v4838_v21 }
 0x17e   : > { %4312 = vmatmul.mubr.bf16.gmra.mrb[8].mxu1 %v4838_v21  ;;  %4283 = vmatprep.mubr.bf16.mxu0 %v4839_v22 }
 0x17f   : > { %4315 = vmatprep.mubr.bf16.mxu1 %v4839_v22 }
 0x185   : > { %4284 = vmatmul.mubr.bf16.gmra.mrb[12].mxu0 %v4840_v23 }
 0x186   : > { %4316 = vmatmul.mubr.bf16.gmra.mrb[12].mxu1 %v4840_v23 }
 0x240   : > { %v4273_v24 = vpop.f32.mrb[0].mxu0 }
 0x241   : > { %v4305_v26 = vpop.f32.mrb[0].mxu1  ;;  %v956_v28 = vpop.f32.mrb[1].mxu0  ;;  %v965_v31 = vadd.f32 %v4273_v24, %v5999_v25 }
 0x242   : > { %v1124_v29 = vpop.f32.mrb[1].mxu1  ;;  %v4274_v30 = vpop.f32.mrb[2].mxu0  ;;  %v1133_v35 = vadd.f32 %v4305_v26, %v6004_v27  ;;  %v957_v36 = vadd.f32 %v5999_v25, %v956_v28 }
 0x243   : > { %v968_v32 = vadd.f32 %v4274_v30, %v5999_v25  ;;  %v4306_v33 = vpop.f32.mrb[2].mxu1  ;;  %v959_v34 = vpop.f32.mrb[3].mxu0  ;;  %v1125_v40 = vadd.f32 %v6004_v27, %v1124_v29 }
 0x244   : > { %v1136_v37 = vadd.f32 %v4306_v33, %v6004_v27  ;;  %v960_v38 = vadd.f32 %v5999_v25, %v959_v34  ;;  %v1127_v39 = vpop.f32.mrb[3].mxu1 }
 0x245   : > { %v1188_v41 = vpack.c.bf16 %v968_v32, %v965_v31  ;;  %v1128_v42 = vadd.f32 %v6004_v27, %v1127_v39 }
 0x246   : > { %v1204_v43 = vpack.c.bf16 %v1136_v37, %v1133_v35  ;;  %v1187_v44 = vpack.c.bf16 %v960_v38, %v957_v36 }
 0x247   : > { %1196 = vst [vmem:[#allocation2 + $0x8] sm:$0xff] %v1188_v41  ;;  %v1203_v45 = vpack.c.bf16 %v1128_v42, %v1125_v40 }
 0x248   : > { %1212 = vst [vmem:[#allocation3 + $0x8] sm:$0xff] %v1204_v43  ;;  %1195 = vst [vmem:[#allocation2] sm:$0xff] %v1187_v44  ;;  %v4277_v46 = vpop.f32.mrb[4].mxu0 }
 0x249   : > { %1211 = vst [vmem:[#allocation3] sm:$0xff] %v1203_v45  ;;  %v4309_v47 = vpop.f32.mrb[4].mxu1  ;;  %v972_v48 = vpop.f32.mrb[5].mxu0  ;;  %v981_v51 = vadd.f32 %v4277_v46, %v5999_v25 }
 0x24a   : > { %v1140_v49 = vpop.f32.mrb[5].mxu1  ;;  %v4278_v50 = vpop.f32.mrb[6].mxu0  ;;  %v1149_v55 = vadd.f32 %v4309_v47, %v6004_v27  ;;  %v973_v56 = vadd.f32 %v5999_v25, %v972_v48 }
 0x24b   : > { %v984_v52 = vadd.f32 %v4278_v50, %v5999_v25  ;;  %v4310_v53 = vpop.f32.mrb[6].mxu1  ;;  %v975_v54 = vpop.f32.mrb[7].mxu0  ;;  %v1141_v60 = vadd.f32 %v6004_v27, %v1140_v49 }
 0x24c   : > { %v1152_v57 = vadd.f32 %v4310_v53, %v6004_v27  ;;  %v976_v58 = vadd.f32 %v5999_v25, %v975_v54  ;;  %v1143_v59 = vpop.f32.mrb[7].mxu1 }
 0x24d   : > { %v1190_v61 = vpack.c.bf16 %v984_v52, %v981_v51  ;;  %v1144_v62 = vadd.f32 %v6004_v27, %v1143_v59 }
 0x24e   : > { %v1206_v63 = vpack.c.bf16 %v1152_v57, %v1149_v55  ;;  %v1189_v0 = vpack.c.bf16 %v976_v58, %v973_v56 }
 0x24f   : > { %1198 = vst [vmem:[#allocation2 + $0x18] sm:$0xff] %v1190_v61  ;;  %v1205_v1 = vpack.c.bf16 %v1144_v62, %v1141_v60 }
 0x250   : > { %1214 = vst [vmem:[#allocation3 + $0x18] sm:$0xff] %v1206_v63  ;;  %1197 = vst [vmem:[#allocation2 + $0x10] sm:$0xff] %v1189_v0  ;;  %v4281_v2 = vpop.f32.mrb[8].mxu0 }
 0x251   : > { %1213 = vst [vmem:[#allocation3 + $0x10] sm:$0xff] %v1205_v1  ;;  %v4313_v3 = vpop.f32.mrb[8].mxu1  ;;  %v988_v4 = vpop.f32.mrb[9].mxu0  ;;  %v997_v7 = vadd.f32 %v4281_v2, %v5999_v25 }
 0x252   : > { %v1156_v5 = vpop.f32.mrb[9].mxu1  ;;  %v4282_v6 = vpop.f32.mrb[10].mxu0  ;;  %v1165_v11 = vadd.f32 %v4313_v3, %v6004_v27  ;;  %v989_v12 = vadd.f32 %v5999_v25, %v988_v4 }
 0x253   : > { %v1000_v8 = vadd.f32 %v4282_v6, %v5999_v25  ;;  %v4314_v9 = vpop.f32.mrb[10].mxu1  ;;  %v991_v10 = vpop.f32.mrb[11].mxu0  ;;  %v1157_v16 = vadd.f32 %v6004_v27, %v1156_v5 }
 0x254   : > { %v1168_v13 = vadd.f32 %v4314_v9, %v6004_v27  ;;  %v992_v14 = vadd.f32 %v5999_v25, %v991_v10  ;;  %v1159_v15 = vpop.f32.mrb[11].mxu1 }
 0x255   : > { %v1192_v17 = vpack.c.bf16 %v1000_v8, %v997_v7  ;;  %v1160_v18 = vadd.f32 %v6004_v27, %v1159_v15 }
 0x256   : > { %v1208_v19 = vpack.c.bf16 %v1168_v13, %v1165_v11  ;;  %v1191_v20 = vpack.c.bf16 %v992_v14, %v989_v12 }
 0x257   : > { %1200 = vst [vmem:[#allocation2 + $0x28] sm:$0xff] %v1192_v17  ;;  %v1207_v21 = vpack.c.bf16 %v1160_v18, %v1157_v16 }
 0x258   : > { %1216 = vst [vmem:[#allocation3 + $0x28] sm:$0xff] %v1208_v19  ;;  %1199 = vst [vmem:[#allocation2 + $0x20] sm:$0xff] %v1191_v20  ;;  %v4285_v22 = vpop.f32.mrb[12].mxu0 }
 0x259   : > { %1215 = vst [vmem:[#allocation3 + $0x20] sm:$0xff] %v1207_v21  ;;  %v4317_v23 = vpop.f32.mrb[12].mxu1  ;;  %v1004_v24 = vpop.f32.mrb[13].mxu0  ;;  %v1013_v29 = vadd.f32 %v4285_v22, %v5999_v25 }
 0x25a   : > { %v1172_v26 = vpop.f32.mrb[13].mxu1  ;;  %v4286_v28 = vpop.f32.mrb[14].mxu0  ;;  %v1181_v33 = vadd.f32 %v4317_v23, %v6004_v27  ;;  %v1005_v34 = vadd.f32 %v5999_v25, %v1004_v24 }
 0x25b   : > { %v1016_v30 = vadd.f32 %v4286_v28, %v5999_v25  ;;  %v4318_v31 = vpop.f32.mrb[14].mxu1  ;;  %v1007_v32 = vpop.f32.mrb[15].mxu0  ;;  %v1173_v38 = vadd.f32 %v6004_v27, %v1172_v26 }
 0x25c   : > { %v1184_v35 = vadd.f32 %v4318_v31, %v6004_v27  ;;  %v1008_v36 = vadd.f32 %v5999_v25, %v1007_v32  ;;  %v1175_v37 = vpop.f32.mrb[15].mxu1 }
 0x25d   : > { %v1194_v39 = vpack.c.bf16 %v1016_v30, %v1013_v29  ;;  %v1176_v40 = vadd.f32 %v6004_v27, %v1175_v37 }
 0x25e   : > { %v1210_v41 = vpack.c.bf16 %v1184_v35, %v1181_v33  ;;  %v1193_v42 = vpack.c.bf16 %v1008_v36, %v1005_v34 }
 0x25f   : > { %1202 = vst [vmem:[#allocation2 + $0x38] sm:$0xff] %v1194_v39  ;;  %v1209_v43 = vpack.c.bf16 %v1176_v40, %v1173_v38 }
 0x260   : > { %1218 = vst [vmem:[#allocation3 + $0x38] sm:$0xff] %v1210_v41  ;;  %1201 = vst [vmem:[#allocation2 + $0x30] sm:$0xff] %v1193_v42 }
 0x261   : > { %1217 = vst [vmem:[#allocation3 + $0x30] sm:$0xff] %v1209_v43 }
 0x262 PF: > { %v4841_v44 = vld [vmem:[#allocation9] sm:$0xff]   ;;  %v4842_v45 = vld [vmem:[#allocation9 + $0x8] sm:$0xff]   ;;  %v4843_v25 = vld [vmem:[#allocation9 + $0x10] sm:$0xff]   ;;  %vm1402_vm0 = vcmask 261120   ;;  %s6888_s14 = sld [smem:[#allocation35_spill]]  ;;  %s5451_s6 = smov 96  }
 0x263   : > { %4319 = vmatprep.subr.bf16.mxu1 %v4841_v44  ;;  %v4844_v46 = vld [vmem:[#allocation9 + $0x18] sm:$0xff]   ;;  %v1219_v27 = vld [vmem:[%s5948_s27] sm:$0xff]  ;;  %v1220_v47 = vld [vmem:[%s5948_s27 + $0x8] sm:$0xff]  ;;  %s5452_s10 = smov 64   ;;  %s5453_s29 = smov 32  }
 0x264   : > { %4320 = vmatpush3.bf16.msra.mxu1 %v4841_v44  ;;  %v1227_v48 = vpack.c.bf16 %v1220_v47, %v1219_v27  ;;  %v4845_v49 = vld [vmem:[#allocation9 + $0x20] sm:$0xff]   ;;  %v4846_v50 = vld [vmem:[#allocation9 + $0x28] sm:$0xff]   ;;  %v4847_v51 = vld [vmem:[#allocation9 + $0x30] sm:$0xff]   ;;  %s6889_s26 = sld [smem:[#allocation41_spill]]  ;;  %s6890_s17 = sld [smem:[#allocation46_spill]] }
 0x265   : > { %4321 = vmatprep.subr.bf16.mxu1 %v4842_v45  ;;  %v4848_v52 = vld [vmem:[#allocation9 + $0x38] sm:$0xff]   ;;  %v1221_v53 = vld [vmem:[%s5948_s27 + $0x10] sm:$0xff]  ;;  %v1223_v55 = vld [vmem:[%s5948_s27 + $0x20] sm:$0xff]  ;;  %s6891_s7 = sld [smem:[#allocation47_spill]]  ;;  %s6896_s5 = sld [smem:[#allocation27_spill]] }
 0x266   : > { %4335 = vmatprep.mubr.bf16.mxu1 %v1227_v48  ;;  %v1222_v54 = vld [vmem:[%s5948_s27 + $0x18] sm:$0xff]  ;;  %v1224_v56 = vld [vmem:[%s5948_s27 + $0x28] sm:$0xff]  ;;  %v6044_v57 = vld [vmem:[#allocation2] sm:$0xff]  ;;  %s6897_s16 = sld [smem:[#allocation28_spill]]  ;;  %p6900_p8 = scmp.ne.s32.totalorder %s6857_s4, 0 }
 0x267   : > { %v1228_v58 = vpack.c.bf16 %v1222_v54, %v1221_v53  ;;  %v1229_v59 = vpack.c.bf16 %v1224_v56, %v1223_v55  ;;  %v1225_v60 = vld [vmem:[%s5948_s27 + $0x30] sm:$0xff]  ;;  %v1226_v61 = vld [vmem:[%s5948_s27 + $0x38] sm:$0xff]  ;;  %v1416_v62 = vsel %vm1402_vm0, %v6044_v57, 0  ;;  %v6052_v0 = vld [vmem:[#allocation2 + $0x8] sm:$0xff] }
 0x268   : > { %4322 = vmatpush3.bf16.msra.mxu1 %v4842_v45  ;;  %v1230_v63 = vpack.c.bf16 %v1226_v61, %v1225_v60  ;;  %v1419_v1 = vsel %vm1402_vm0, %v6052_v0, 0  ;;  %v6058_v2 = vld [vmem:[#allocation2 + $0x10] sm:$0xff]  ;;  %v6064_v4 = vld [vmem:[#allocation2 + $0x18] sm:$0xff]  ;;  %v6070_v6 = vld [vmem:[#allocation2 + $0x20] sm:$0xff] }
 0x269   : > { %4323 = vmatprep.subr.bf16.mxu1 %v4843_v25  ;;  %v1422_v3 = vsel %vm1402_vm0, %v6058_v2, 0  ;;  %v1425_v5 = vsel %vm1402_vm0, %v6064_v4, 0  ;;  %v1428_v7 = vsel %vm1402_vm0, %v6070_v6, 0  ;;  %v6076_v8 = vld [vmem:[#allocation2 + $0x28] sm:$0xff]  ;;  %v6082_v10 = vld [vmem:[#allocation2 + $0x30] sm:$0xff]  ;;  %v6088_v12 = vld [vmem:[#allocation2 + $0x38] sm:$0xff] }
 0x26a   : > { %v1431_v9 = vsel %vm1402_vm0, %v6076_v8, 0  ;;  %v1434_v11 = vsel %vm1402_vm0, %v6082_v10, 0  ;;  %v1437_v13 = vsel %vm1402_vm0, %v6088_v12, 0  ;;  %v3956_v14 = vld [vmem:[%s6888_s14] ss:$0 sm:$0xff]  ;;  %s6892_s14 = sld [smem:[#allocation43_spill]] }
 0x26b   : > { %v6114_v45 = vld [vmem:[%s5983_s2] ss:$0 sm:$0xff] }
 0x26c   : > { %4324 = vmatpush3.bf16.msra.mxu1 %v4843_v25  ;;  %s4046_s11 = sshll.u32 %s6897_s16, 4 }
 0x26d   : > { %4325 = vmatprep.subr.bf16.mxu1 %v4844_v46 }
 0x270   : > { %4326 = vmatpush3.bf16.msra.mxu1 %v4844_v46 }
 0x271   : > { %4327 = vmatprep.subr.bf16.mxu1 %v4845_v49 }
 0x274   : > { %4328 = vmatpush3.bf16.msra.mxu1 %v4845_v49 }
 0x275   : > { %4329 = vmatprep.subr.bf16.mxu1 %v4846_v50 }
 0x278   : > { %4330 = vmatpush3.bf16.msra.mxu1 %v4846_v50 }
 0x279   : > { %4331 = vmatprep.subr.bf16.mxu1 %v4847_v51 }
 0x27c   : > { %4332 = vmatpush3.bf16.msra.mxu1 %v4847_v51 }
 0x27d   : > { %4333 = vmatprep.subr.bf16.mxu1 %v4848_v52 }
 0x280   : > { %4334 = vmatpush3.bf16.msra.mxu1 %v4848_v52 }
 0x281   : > { %4607 = vmatprep.subr.msk.bf16.mxu1 %vm1402_vm0, %v6044_v57 }
 0x283   : > { %4336 = vmatmul.mubr.bf16.vlgmr.msra.gmra.mrb[0].mxu1 %v1228_v58 }
 0x284   : > { %4339 = vmatprep.mubr.bf16.mxu1 %v1229_v59 }
 0x289   : > { %4344 = vmatpush3.bf16.xpose.msra.mxu1 %v1416_v62 }
 0x28a   : > { %4608 = vmatprep.subr.msk.bf16.mxu1 %vm1402_vm0, %v6052_v0 }
 0x28b   : > { %4340 = vmatmul.mubr.bf16.gmra.mrb[4].mxu1 %v1230_v63 }
 0x291   : > { %4346 = vmatpush3.bf16.xpose.msra.mxu1 %v1419_v1 }
 0x292   : > { %4609 = vmatprep.subr.msk.bf16.mxu1 %vm1402_vm0, %v6058_v2 }
 0x299   : > { %4348 = vmatpush3.bf16.xpose.msra.mxu1 %v1422_v3 }
 0x29a   : > { %4610 = vmatprep.subr.msk.bf16.mxu1 %vm1402_vm0, %v6064_v4 }
 0x2a1   : > { %4350 = vmatpush3.bf16.xpose.msra.mxu1 %v1425_v5 }
 0x2a2   : > { %4611 = vmatprep.subr.msk.bf16.mxu1 %vm1402_vm0, %v6070_v6 }
 0x2a9   : > { %4352 = vmatpush3.bf16.xpose.msra.mxu1 %v1428_v7 }
 0x2aa   : > { %4612 = vmatprep.subr.msk.bf16.mxu1 %vm1402_vm0, %v6076_v8 }
 0x2b1   : > { %4354 = vmatpush3.bf16.xpose.msra.mxu1 %v1431_v9 }
 0x2b2   : > { %4613 = vmatprep.subr.msk.bf16.mxu1 %vm1402_vm0, %v6082_v10 }
 0x2b9   : > { %4356 = vmatpush3.bf16.xpose.msra.mxu1 %v1434_v11 }
 0x2ba   : > { %4614 = vmatprep.subr.msk.bf16.mxu1 %vm1402_vm0, %v6088_v12 }
 0x2c1   : > { %4358 = vmatpush3.bf16.xpose.msra.mxu1 %v1437_v13 }
 0x356   : > { %v4337_v15 = vpop.f32.mrb[0].mxu1 }
 0x357   : > { %v1345_v16 = vadd.f32 %v4337_v15, %v3956_v14  ;;  %v1336_v17 = vpop.f32.mrb[1].mxu1  ;;  %v6142_v15 = vld [vmem:[#allocation3] sm:$0xff] }
 0x358   : > { %v1337_v18 = vadd.f32 %v3956_v14, %v1336_v17  ;;  %v4338_v19 = vpop.f32.mrb[2].mxu1  ;;  %4367 = vmatprep.subr.bf16.mxu0 %v6142_v15 }
 0x359   : > { %v1348_v20 = vadd.f32 %v4338_v19, %v3956_v14  ;;  %v1339_v21 = vpop.f32.mrb[3].mxu1  ;;  %v1369_v23 = vmul.f32 0.17677669, %v1345_v16  ;;  %v6144_v16 = vld [vmem:[#allocation3 + $0x8] sm:$0xff]  ;;  %4368 = vmatpush3.bf16.msra.mxu0 %v6142_v15 }
 0x35a   : > { %v1340_v22 = vadd.f32 %v3956_v14, %v1339_v21  ;;  %v1367_v26 = vmul.f32 0.17677669, %v1337_v18  ;;  %4369 = vmatprep.subr.bf16.mxu0 %v6144_v16  ;;  %v6149_v18 = vld [vmem:[#allocation3 + $0x10] sm:$0xff] }
 0x35b   : > { %v1370_v24 = vmul.f32 0.17677669, %v1348_v20  ;;  %v6155_v20 = vld [vmem:[#allocation3 + $0x18] sm:$0xff] }
 0x35c   : > { %v1368_v28 = vmul.f32 0.17677669, %v1340_v22 }
 0x35d   : > { %v6097_v29 = vpack.c.bf16 %v1370_v24, %v1369_v23  ;;  %4370 = vmatpush3.bf16.msra.mxu0 %v6144_v16  ;;  %v6164_v23 = vld [vmem:[#allocation3 + $0x20] sm:$0xff] }
 0x35e   : > { %v6099_v30 = vpack.c.bf16 %v1368_v28, %v1367_v26  ;;  %v4341_v31 = vpop.f32.mrb[4].mxu1  ;;  %4371 = vmatprep.subr.bf16.mxu0 %v6149_v18  ;;  %v6172_v26 = vld [vmem:[#allocation3 + $0x28] sm:$0xff]  ;;  %v6178_v28 = vld [vmem:[#allocation3 + $0x30] sm:$0xff] }
 0x35f   : > { %v1361_v32 = vadd.f32 %v4341_v31, %v3956_v14  ;;  %v1352_v33 = vpop.f32.mrb[5].mxu1  ;;  %v6182_v31 = vld [vmem:[#allocation3 + $0x38] sm:$0xff] }
 0x360   : > { %v1353_v34 = vadd.f32 %v3956_v14, %v1352_v33  ;;  %v4342_v35 = vpop.f32.mrb[6].mxu1  ;;  %4359 = vmatprep.mubr.msk.bf16.mxu1 %vm1402_vm0, %v6099_v30 }
 0x361   : > { %v1373_v36 = vmul.f32 0.17677669, %v1361_v32  ;;  %v1364_v37 = vadd.f32 %v4342_v35, %v3956_v14  ;;  %v1355_v38 = vpop.f32.mrb[7].mxu1  ;;  %4360 = vmatmul.mubr.msk.bf16.vlgmr.msra.gmra.mrb[8].mxu1 %vm1402_vm0, %v6097_v29  ;;  %4372 = vmatpush3.bf16.msra.mxu0 %v6149_v18 }
 0x362   : > { %v1371_v39 = vmul.f32 0.17677669, %v1353_v34  ;;  %v1356_v40 = vadd.f32 %v3956_v14, %v1355_v38  ;;  %4373 = vmatprep.subr.bf16.mxu0 %v6155_v20 }
 0x363   : > { %v1374_v41 = vmul.f32 0.17677669, %v1364_v37 }
 0x364   : > { %v1372_v42 = vmul.f32 0.17677669, %v1356_v40 }
 0x365   : > { %v6105_v43 = vpack.c.bf16 %v1374_v41, %v1373_v36  ;;  %4374 = vmatpush3.bf16.msra.mxu0 %v6155_v20 }
 0x366   : > { %v6107_v44 = vpack.c.bf16 %v1372_v42, %v1371_v39  ;;  %4375 = vmatprep.subr.bf16.mxu0 %v6164_v23 }
 0x368   : > { %4363 = vmatprep.mubr.msk.bf16.mxu1 %vm1402_vm0, %v6107_v44 }
 0x369   : > { %4364 = vmatmul.mubr.msk.bf16.gmra.mrb[12].mxu1 %vm1402_vm0, %v6105_v43  ;;  %4376 = vmatpush3.bf16.msra.mxu0 %v6164_v23 }
 0x36a   : > { %4377 = vmatprep.subr.bf16.mxu0 %v6172_v26 }
 0x36d   : > { %4378 = vmatpush3.bf16.msra.mxu0 %v6172_v26 }
 0x36e   : > { %4379 = vmatprep.subr.bf16.mxu0 %v6178_v28 }
 0x371   : > { %4380 = vmatpush3.bf16.msra.mxu0 %v6178_v28 }
 0x372   : > { %4381 = vmatprep.subr.bf16.mxu0 %v6182_v31 }
 0x375   : > { %4382 = vmatpush3.bf16.msra.mxu0 %v6182_v31 }
 0x434   : > { %v4361_v25 = vpop.f32.mrb[8].mxu1 }
 0x435   : > { %v1482_v46 = vadd.f32 %v4361_v25, %v6114_v45  ;;  %v1473_v27 = vpop.f32.mrb[9].mxu1 }
 0x436   : > { %v1474_v47 = vadd.f32 %v6114_v45, %v1473_v27  ;;  %v4362_v48 = vpop.f32.mrb[10].mxu1 }
 0x437   : > { %1508 = vmax.xlane.f32.xlu1 %v1482_v46  ;;  %v1476_v49 = vpop.f32.mrb[11].mxu1  ;;  %v1485_v50 = vadd.f32 %v4362_v48, %v6114_v45 }
 0x438   : > { %1504 = vmax.xlane.f32.xlu0 %v1474_v47  ;;  %v1477_v51 = vadd.f32 %v6114_v45, %v1476_v49 }
 0x43b   : > { %1510 = vmax.xlane.f32.xlu1 %v1485_v50 }
 0x43c   : > { %v4365_v52 = vpop.f32.mrb[12].mxu1  ;;  %1506 = vmax.xlane.f32.xlu0 %v1477_v51 }
 0x43d   : > { %v6121_v53 = vadd.f32 %v4365_v52, %v6114_v45  ;;  %v1489_v54 = vpop.f32.mrb[13].mxu1 }
 0x43e   : > { %v4366_v55 = vpop.f32.mrb[14].mxu1  ;;  %v6127_v59 = vadd.f32 %v6114_v45, %v1489_v54 }
 0x43f   : > { %v6124_v56 = vadd.f32 %v4366_v55, %v6114_v45  ;;  %v1492_v58 = vpop.f32.mrb[15].mxu1 }
 0x440   : > { %1516 = vmax.xlane.f32.xlu0 %v6121_v53  ;;  %v6132_v60 = vadd.f32 %v6114_v45, %v1492_v58 }
 0x441   : > { %1518 = vmax.xlane.f32.xlu1 %v6124_v56 }
 0x444   : > { %1512 = vmax.xlane.f32.xlu0 %v6127_v59 }
 0x445   : > { %1514 = vmax.xlane.f32.xlu1 %v6132_v60 }
 0x456   : > { %1691 = vrot.lane.b32.xlu1 %v6052_v0, %s5451_s6 }
 0x45a   : > { %1693 = vrot.lane.b32.xlu1 %v6058_v2, %s5451_s6 }
 0x45e   : > { %1695 = vrot.lane.b32.xlu1 %v6064_v4, %s5451_s6 }
 0x4c4   : > { %v1509_v61 = vpop.xlane.xlu1 %1508 }
 0x4c5   : > { %v1522_v62 = vsub.f32 %v1482_v46, %v1509_v61  ;;  %v1505_v63 = vpop.xlane.xlu0 %1504 }
 0x4c6   : > { %v1520_v1 = vsub.f32 %v1474_v47, %v1505_v63 }
 0x4c7   : > { %v1532_v3 = vmul.f32 1.442695, %v1522_v62 }
 0x4c8   : > { %v1528_v5 = vmul.f32 1.442695, %v1520_v1  ;;  %v1511_v7 = vpop.xlane.xlu1 %1510 }
 0x4c9   : > { %4897 = vpow2.f32 %v1532_v3  ;;  %v1523_v9 = vsub.f32 %v1485_v50, %v1511_v7  ;;  %v1507_v11 = vpop.xlane.xlu0 %1506 }
 0x4ca   : > { %v1521_v13 = vsub.f32 %v1477_v51, %v1507_v11  ;;  %4899 = vpow2.f32 %v1528_v5 }
 0x4cb   : > { %v1534_v14 = vmul.f32 1.442695, %v1523_v9 }
 0x4cc   : > { %v1530_v17 = vmul.f32 1.442695, %v1521_v13 }
 0x4cd   : > { %4901 = vpow2.f32 %v1534_v14  ;;  %v1517_v32 = vpop.xlane.xlu0 %1516 }
 0x4ce   : > { %4903 = vpow2.f32 %v1530_v17  ;;  %v1519_v33 = vpop.xlane.xlu1 %1518  ;;  %v1526_v34 = vsub.f32 %v6121_v53, %v1517_v32 }
 0x4cf   : > { %v1527_v39 = vsub.f32 %v6124_v56, %v1519_v33 }
 0x4d0   : > { %v1540_v36 = vmul.f32 1.442695, %v1526_v34 }
 0x4d1   : > { %v1513_v35 = vpop.xlane.xlu0 %1512  ;;  %v1542_v42 = vmul.f32 1.442695, %v1527_v39 }
 0x4d2   : > { %v1524_v37 = vsub.f32 %v6127_v59, %v1513_v35  ;;  %v1515_v38 = vpop.xlane.xlu1 %1514  ;;  %4905 = vpow2.f32 %v1540_v36 }
 0x4d3   : > { %v6153_v19 = vpop.eup %4897  ;;  %v1525_v41 = vsub.f32 %v6132_v60, %v1515_v38 }
 0x4d4   : > { %1548 = vadd.xlane.f32.xlu0 %v6153_v19  ;;  %v6159_v21 = vpop.eup %4899  ;;  %v1536_v40 = vmul.f32 1.442695, %v1524_v37 }
 0x4d5   : > { %v1538_v25 = vmul.f32 1.442695, %v1525_v41 }
 0x4d6   : > { %4907 = vpow2.f32 %v1536_v40 }
 0x4d7   : > { %v6162_v22 = vpop.eup %4901  ;;  %4909 = vpow2.f32 %v1542_v42 }
 0x4d8   : > { %1550 = vadd.xlane.f32.xlu1 %v6162_v22  ;;  %1544 = vadd.xlane.f32.xlu0 %v6159_v21  ;;  %v6170_v24 = vpop.eup %4903  ;;  %4911 = vpow2.f32 %v1538_v25 }
 0x4dc   : > { %1546 = vadd.xlane.f32.xlu1 %v6170_v24  ;;  %v6196_v46 = vpop.eup %4905 }
 0x4e0   : > { %v6199_v27 = vpop.eup %4907 }
 0x4e1   : > { %v6202_v47 = vpop.eup %4909 }
 0x4e2   : > { %v6204_v48 = vpop.eup %4911 }
 0x4ed   : > { %1699 = vrot.lane.b32.xlu1 %v6076_v8, %s5451_s6 }
 0x4ee   : > { %1689 = vrot.lane.b32.xlu0 %v6044_v57, %s5451_s6 }
 0x4f1   : > { %1701 = vrot.lane.b32.xlu1 %v6082_v10, %s5451_s6 }
 0x50d   : > { %1556 = vadd.xlane.f32.xlu0 %v6196_v46 }
 0x511   : > { %1552 = vadd.xlane.f32.xlu0 %v6199_v27 }
 0x515   : > { %1554 = vadd.xlane.f32.xlu1 %v6204_v48  ;;  %1558 = vadd.xlane.f32.xlu0 %v6202_v47 }
 0x526   : > { %1703 = vrot.lane.b32.xlu1 %v6088_v12, %s5451_s6 }
 0x52a   : > { %1675 = vrot.lane.b32.xlu1 %v6097_v29, %s5451_s6 }
 0x52b   : > { %1697 = vrot.lane.b32.xlu0 %v6070_v6, %s5451_s6 }
 0x52e   : > { %1679 = vrot.lane.b32.xlu1 %v6105_v43, %s5451_s6 }
 0x52f   : > { %1673 = vrot.lane.b32.xlu0 %v6099_v30, %s5451_s6 }
 0x532   : > { %2200 = vrot.lane.b32.xlu1 %v6052_v0, %s5452_s10 }
 0x533   : > { %1677 = vrot.lane.b32.xlu0 %v6107_v44, %s5451_s6 }
 0x536   : > { %2204 = vrot.lane.b32.xlu1 %v6064_v4, %s5452_s10 }
 0x537   : > { %2198 = vrot.lane.b32.xlu0 %v6044_v57, %s5452_s10  ;;  %v1692_v57 = vpop.permute.xlu1 %1691 }
 0x538   : > { %v1721_v61 = vsel %vm1402_vm0, %v1692_v57, 0 }
 0x53a   : > { %2208 = vrot.lane.b32.xlu1 %v6076_v8, %s5452_s10 }
 0x53b   : > { %2202 = vrot.lane.b32.xlu0 %v6058_v2, %s5452_s10  ;;  %v1694_v0 = vpop.permute.xlu1 %1693 }
 0x53c   : > { %v1724_v62 = vsel %vm1402_vm0, %v1694_v0, 0 }
 0x53e   : > { %2212 = vrot.lane.b32.xlu1 %v6088_v12, %s5452_s10 }
 0x53f   : > { %2206 = vrot.lane.b32.xlu0 %v6070_v6, %s5452_s10  ;;  %v1696_v2 = vpop.permute.xlu1 %1695 }
 0x540   : > { %v1727_v63 = vsel %vm1402_vm0, %v1696_v2, 0 }
 0x542   : > { %2184 = vrot.lane.b32.xlu1 %v6097_v29, %s5452_s10 }
 0x543   : > { %2210 = vrot.lane.b32.xlu0 %v6082_v10, %s5452_s10 }
 0x546   : > { %2188 = vrot.lane.b32.xlu1 %v6105_v43, %s5452_s10 }
 0x547   : > { %2182 = vrot.lane.b32.xlu0 %v6099_v30, %s5452_s10 }
 0x54a   : > { %1890 = vrot.lane.b32.xlu1 %v6142_v15, %s5451_s6 }
 0x54b   : > { %2186 = vrot.lane.b32.xlu0 %v6107_v44, %s5452_s10 }
 0x54e   : > { %1892 = vrot.lane.b32.xlu1 %v6144_v16, %s5451_s6 }
 0x561   : > { %v1549_v4 = vpop.xlane.xlu0 %1548 }
 0x565   : > { %v1551_v6 = vpop.xlane.xlu1 %1550  ;;  %v1545_v8 = vpop.xlane.xlu0 %1544 }
 0x566   : > { %4913 = vrcp.f32 %v1551_v6 }
 0x567   : > { %4915 = vrcp.f32 %v1545_v8 }
 0x568   : > { %4917 = vrcp.f32 %v1549_v4 }
 0x569   : > { %v1547_v10 = vpop.xlane.xlu1 %1546  ;;  %v1690_v12 = vpop.permute.xlu0 %1689 }
 0x56a   : > { %4919 = vrcp.f32 %v1547_v10  ;;  %4615 = vmatprep.subr.msk.bf16.mxu0 %vm1402_vm0, %v1690_v12  ;;  %v1718_v60 = vsel %vm1402_vm0, %v1690_v12, 0 }
 0x56d   : > { %v1700_v1 = vpop.permute.xlu1 %1699 }
 0x56e   : > { %v1733_v34 = vsel %vm1402_vm0, %v1700_v1, 0 }
 0x570   : > { %v4914_v49 = vpop.eup %4913 }
 0x571   : > { %v4916_v50 = vpop.eup %4915  ;;  %v1571_v53 = vmul.f32 %v4914_v49, %v6162_v22  ;;  %v1702_v5 = vpop.permute.xlu1 %1701 }
 0x572   : > { %v4918_v51 = vpop.eup %4917  ;;  %v1568_v54 = vmul.f32 %v4916_v50, %v6159_v21  ;;  %v1736_v42 = vsel %vm1402_vm0, %v1702_v5, 0 }
 0x573   : > { %v1570_v56 = vmul.f32 %v4918_v51, %v6153_v19 }
 0x574   : > { %v4920_v52 = vpop.eup %4919 }
 0x575   : > { %v1569_v55 = vmul.f32 %v4920_v52, %v6170_v24  ;;  %v1577_v59 = vpack.c.bf16 %v1571_v53, %v1570_v56 }
 0x577   : > { %v1576_v58 = vpack.c.bf16 %v1569_v55, %v1568_v54 }
 0x579   : > { %4383 = vmatprep.mubr.bf16.mxu0 %v1576_v58 }
 0x57a   : > { %4384 = vmatmul.mubr.bf16.vlgmr.msra.gmra.mrb[0].mxu0 %v1577_v59 }
 0x57b   : > { %4392 = vmatpush3.bf16.xpose.msra.mxu0 %v1718_v60 }
 0x57c   : > { %4616 = vmatprep.subr.msk.bf16.mxu0 %vm1402_vm0, %v1692_v57 }
 0x583   : > { %4394 = vmatpush3.bf16.xpose.msra.mxu0 %v1721_v61 }
 0x584   : > { %4617 = vmatprep.subr.msk.bf16.mxu0 %vm1402_vm0, %v1694_v0 }
 0x58b   : > { %4396 = vmatpush3.bf16.xpose.msra.mxu0 %v1724_v62 }
 0x58c   : > { %4618 = vmatprep.subr.msk.bf16.mxu0 %vm1402_vm0, %v1696_v2 }
 0x593   : > { %4398 = vmatpush3.bf16.xpose.msra.mxu0 %v1727_v63 }
 0x59a   : > { %v1557_v3 = vpop.xlane.xlu0 %1556 }
 0x59e   : > { %v1553_v7 = vpop.xlane.xlu0 %1552 }
 0x59f   : > { %4921 = vrcp.f32 %v1553_v7 }
 0x5a0   : > { %4923 = vrcp.f32 %v1557_v3 }
 0x5a2   : > { %v1555_v9 = vpop.xlane.xlu1 %1554  ;;  %v1559_v11 = vpop.xlane.xlu0 %1558 }
 0x5a3   : > { %4925 = vrcp.f32 %v1555_v9 }
 0x5a4   : > { %4927 = vrcp.f32 %v1559_v11 }
 0x5a6   : > { %v1698_v13 = vpop.permute.xlu0 %1697  ;;  %v1704_v40 = vpop.permute.xlu1 %1703 }
 0x5a7   : > { %4619 = vmatprep.subr.msk.bf16.mxu0 %vm1402_vm0, %v1698_v13  ;;  %v1730_v14 = vsel %vm1402_vm0, %v1698_v13, 0 }
 0x5a8   : > { %4400 = vmatpush3.bf16.xpose.msra.mxu0 %v1730_v14 }
 0x5a9   : > { %4620 = vmatprep.subr.msk.bf16.mxu0 %vm1402_vm0, %v1700_v1  ;;  %v4922_v17 = vpop.eup %4921 }
 0x5aa   : > { %v1674_v19 = vpop.permute.xlu0 %1673  ;;  %v4924_v21 = vpop.eup %4923  ;;  %v1572_v32 = vmul.f32 %v4922_v17, %v6199_v27  ;;  %v1739_v27 = vsel %vm1402_vm0, %v1704_v40, 0 }
 0x5ab   : > { %v1574_v35 = vmul.f32 %v4924_v21, %v6196_v46  ;;  %v1676_v25 = vpop.permute.xlu1 %1675 }
 0x5ad   : > { %v4926_v22 = vpop.eup %4925 }
 0x5ae   : > { %v4928_v24 = vpop.eup %4927  ;;  %v1573_v33 = vmul.f32 %v4926_v22, %v6204_v48  ;;  %v1678_v38 = vpop.permute.xlu0 %1677 }
 0x5af   : > { %v1575_v36 = vmul.f32 %v4928_v24, %v6202_v47  ;;  %v1680_v47 = vpop.permute.xlu1 %1679 }
 0x5b0   : > { %4402 = vmatpush3.bf16.xpose.msra.mxu0 %v1733_v34  ;;  %v1578_v37 = vpack.c.bf16 %v1573_v33, %v1572_v32 }
 0x5b1   : > { %4621 = vmatprep.subr.msk.bf16.mxu0 %vm1402_vm0, %v1702_v5  ;;  %v1579_v39 = vpack.c.bf16 %v1575_v36, %v1574_v35 }
 0x5b2   : > { %4387 = vmatprep.mubr.bf16.mxu0 %v1578_v37  ;;  %v2199_v41 = vpop.permute.xlu0 %2198 }
 0x5b3   : > { %4388 = vmatmul.mubr.bf16.gmra.mrb[4].mxu0 %v1579_v39  ;;  %v2227_v57 = vsel %vm1402_vm0, %v2199_v41, 0  ;;  %v2201_v0 = vpop.permute.xlu1 %2200 }
 0x5b4   : > { %4407 = vmatprep.mubr.msk.bf16.mxu0 %vm1402_vm0, %v1674_v19  ;;  %v2230_v4 = vsel %vm1402_vm0, %v2201_v0, 0 }
 0x5b6   : > { %v2203_v46 = vpop.permute.xlu0 %2202 }
 0x5b7   : > { %v2233_v8 = vsel %vm1402_vm0, %v2203_v46, 0  ;;  %v2205_v10 = vpop.permute.xlu1 %2204 }
 0x5b8   : > { %4404 = vmatpush3.bf16.xpose.msra.mxu0 %v1736_v42  ;;  %v2236_v12 = vsel %vm1402_vm0, %v2205_v10, 0 }
 0x5b9   : > { %4622 = vmatprep.subr.msk.bf16.mxu0 %vm1402_vm0, %v1704_v40 }
 0x5ba   : > { %v2207_v48 = vpop.permute.xlu0 %2206 }
 0x5bb   : > { %v2239_v49 = vsel %vm1402_vm0, %v2207_v48, 0  ;;  %v2209_v50 = vpop.permute.xlu1 %2208 }
 0x5bc   : > { %v2242_v51 = vsel %vm1402_vm0, %v2209_v50, 0 }
 0x5be   : > { %v2211_v2 = vpop.permute.xlu0 %2210 }
 0x5bf   : > { %v2245_v52 = vsel %vm1402_vm0, %v2211_v2, 0  ;;  %v2213_v53 = vpop.permute.xlu1 %2212 }
 0x5c0   : > { %4406 = vmatpush3.bf16.xpose.msra.mxu0 %v1739_v27  ;;  %v2248_v54 = vsel %vm1402_vm0, %v2213_v53, 0 }
 0x5c1   : > { %4623 = vmatprep.subr.msk.bf16.mxu0 %vm1402_vm0, %v2199_v41 }
 0x5c2   : > { %v2183_v6 = vpop.permute.xlu0 %2182 }
 0x5c3   : > { %v2185_v55 = vpop.permute.xlu1 %2184 }
 0x5c6   : > { %v2187_v56 = vpop.permute.xlu0 %2186 }
 0x5c7   : > { %4408 = vmatmul.mubr.msk.bf16.vlgmr.msra.gmra.mrb[8].mxu0 %vm1402_vm0, %v1676_v25  ;;  %v2189_v58 = vpop.permute.xlu1 %2188 }
 0x5c8   : > { %4411 = vmatprep.mubr.msk.bf16.mxu0 %vm1402_vm0, %v1678_v38  ;;  %4464 = vmatpush3.bf16.xpose.msra.mxu0 %v2227_v57 }
 0x5c9   : > { %4624 = vmatprep.subr.msk.bf16.mxu0 %vm1402_vm0, %v2201_v0 }
 0x5cb   : > { %v1891_v3 = vpop.permute.xlu1 %1890 }
 0x5cc   : > { %4415 = vmatprep.subr.bf16.mxu1 %v1891_v3 }
 0x5cd   : > { %4416 = vmatpush3.bf16.msra.mxu1 %v1891_v3 }
 0x5cf   : > { %4412 = vmatmul.mubr.msk.bf16.gmra.mrb[12].mxu0 %vm1402_vm0, %v1680_v47  ;;  %v1893_v5 = vpop.permute.xlu1 %1892 }
 0x5d0   : > { %4466 = vmatpush3.bf16.xpose.msra.mxu0 %v2230_v4  ;;  %4479 = vmatprep.mubr.msk.bf16.mxu0 %vm1402_vm0, %v2183_v6 }
 0x5d1   : > { %4625 = vmatprep.subr.msk.bf16.mxu0 %vm1402_vm0, %v2203_v46  ;;  %4417 = vmatprep.subr.bf16.mxu1 %v1893_v5 }
 0x5d2   : > { %4418 = vmatpush3.bf16.msra.mxu1 %v1893_v5 }
 0x5d8   : > { %4468 = vmatpush3.bf16.xpose.msra.mxu0 %v2233_v8 }
 0x5d9   : > { %4626 = vmatprep.subr.msk.bf16.mxu0 %vm1402_vm0, %v2205_v10 }
 0x5e0   : > { %4470 = vmatpush3.bf16.xpose.msra.mxu0 %v2236_v12 }
 0x5e1   : > { %4627 = vmatprep.subr.msk.bf16.mxu0 %vm1402_vm0, %v2207_v48 }
 0x5e8   : > { %4472 = vmatpush3.bf16.xpose.msra.mxu0 %v2239_v49 }
 0x5e9   : > { %4628 = vmatprep.subr.msk.bf16.mxu0 %vm1402_vm0, %v2209_v50 }
 0x5f0   : > { %4474 = vmatpush3.bf16.xpose.msra.mxu0 %v2242_v51 }
 0x5f1   : > { %4629 = vmatprep.subr.msk.bf16.mxu0 %vm1402_vm0, %v2211_v2 }
 0x5f8   : > { %4476 = vmatpush3.bf16.xpose.msra.mxu0 %v2245_v52 }
 0x5f9   : > { %4630 = vmatprep.subr.msk.bf16.mxu0 %vm1402_vm0, %v2213_v53 }
 0x600   : > { %4478 = vmatpush3.bf16.xpose.msra.mxu0 %v2248_v54 }
 0x607   : > { %4480 = vmatmul.mubr.msk.bf16.vlgmr.msra.gmra.mrb[16].mxu0 %vm1402_vm0, %v2185_v55 }
 0x608   : > { %4483 = vmatprep.mubr.msk.bf16.mxu0 %vm1402_vm0, %v2187_v56 }
 0x60f   : > { %4484 = vmatmul.mubr.msk.bf16.gmra.mrb[20].mxu0 %vm1402_vm0, %v2189_v58 }
 0x64d   : > { %v6296_v59 = vpop.f32.mrb[0].mxu0 }
 0x64e   : > { %v6298_v60 = vpop.f32.mrb[1].mxu0 }
 0x64f   : > { %v6300_v61 = vpop.f32.mrb[2].mxu0 }
 0x650   : > { %v1646_v62 = vpack.c.bf16 %v6300_v61, %v6296_v59  ;;  %v6304_v63 = vpop.f32.mrb[3].mxu0 }
 0x651   : > { %v1645_v1 = vpack.c.bf16 %v6304_v63, %v6298_v60 }
 0x686   : > { %v6308_v7 = vpop.f32.mrb[4].mxu0 }
 0x687   : > { %v6310_v9 = vpop.f32.mrb[5].mxu0 }
 0x688   : > { %v6312_v11 = vpop.f32.mrb[6].mxu0 }
 0x689   : > { %v1648_v13 = vpack.c.bf16 %v6312_v11, %v6308_v7  ;;  %v6316_v14 = vpop.f32.mrb[7].mxu0 }
 0x68a   : > { %v1647_v17 = vpack.c.bf16 %v6316_v14, %v6310_v9  ;;  %v4853_v14 = vld [vmem:[#allocation13 + $0x20] sm:$0xff]  }
 0x69a   : > { %v4409_v19 = vpop.f32.mrb[8].mxu0 }
 0x69b   : > { %v1784_v21 = vadd.f32 %v4409_v19, %v6114_v45  ;;  %v1775_v22 = vpop.f32.mrb[9].mxu0 }
 0x69c   : > { %v4410_v24 = vpop.f32.mrb[10].mxu0  ;;  %v1776_v34 = vadd.f32 %v6114_v45, %v1775_v22 }
 0x69d   : > { %1810 = vmax.xlane.f32.xlu0 %v1784_v21  ;;  %v1778_v32 = vpop.f32.mrb[11].mxu0  ;;  %v1787_v36 = vadd.f32 %v4410_v24, %v6114_v45 }
 0x69e   : > { %v1779_v33 = vadd.f32 %v6114_v45, %v1778_v32 }
 0x6a0   : > { %1808 = vmax.xlane.f32.xlu1 %v1779_v33 }
 0x6a1   : > { %1806 = vmax.xlane.f32.xlu0 %v1776_v34 }
 0x6a2   : > { %v4413_v35 = vpop.f32.mrb[12].mxu0 }
 0x6a3   : > { %v1791_v37 = vpop.f32.mrb[13].mxu0  ;;  %v1800_v41 = vadd.f32 %v4413_v35, %v6114_v45 }
 0x6a4   : > { %v4414_v38 = vpop.f32.mrb[14].mxu0  ;;  %v1792_v25 = vadd.f32 %v6114_v45, %v1791_v37 }
 0x6a5   : > { %v1803_v39 = vadd.f32 %v4414_v38, %v6114_v45  ;;  %1812 = vmax.xlane.f32.xlu0 %v1787_v36  ;;  %v1794_v40 = vpop.f32.mrb[15].mxu0 }
 0x6a6   : > { %v1795_v42 = vadd.f32 %v6114_v45, %v1794_v40 }
 0x6a7   : > { %1820 = vmax.xlane.f32.xlu1 %v1803_v39 }
 0x6a9   : > { %1818 = vmax.xlane.f32.xlu0 %v1800_v41 }
 0x6ab   : > { %1816 = vmax.xlane.f32.xlu1 %v1795_v42 }
 0x6ad   : > { %1814 = vmax.xlane.f32.xlu0 %v1792_v25 }
 0x6bc   : > { %1896 = vrot.lane.b32.xlu1 %v6155_v20, %s5451_s6 }
 0x6c3   : > { %1894 = vrot.lane.b32.xlu0 %v6149_v18, %s5451_s6 }
 0x6da   : > { %v6332_v46 = vpop.f32.mrb[16].mxu0 }
 0x6db   : > { %v6334_v27 = vpop.f32.mrb[17].mxu0 }
 0x6dc   : > { %v6336_v47 = vpop.f32.mrb[18].mxu0 }
 0x6dd   : > { %v6338_v48 = vpop.f32.mrb[19].mxu0 }
 0x6e2   : > { %v6340_v57 = vpop.f32.mrb[20].mxu0 }
 0x6e3   : > { %v6342_v0 = vpop.f32.mrb[21].mxu0 }
 0x6e4   : > { %v6344_v2 = vpop.f32.mrb[22].mxu0 }
 0x6e5   : > { %v6346_v4 = vpop.f32.mrb[23].mxu0 }
 0x72a   : > { %v1811_v6 = vpop.xlane.xlu0 %1810 }
 0x72b   : > { %v1824_v8 = vsub.f32 %v1784_v21, %v1811_v6 }
 0x72d   : > { %v1834_v10 = vmul.f32 1.442695, %v1824_v8  ;;  %v1809_v49 = vpop.xlane.xlu1 %1808 }
 0x72e   : > { %v1807_v12 = vpop.xlane.xlu0 %1806  ;;  %v1823_v52 = vsub.f32 %v1779_v33, %v1809_v49  ;;  %v6384_v49 = vadd.f32 %v6332_v46, %v6114_v45  ;;  %v6404_v46 = vadd.f32 %v6114_v45, %v6342_v0 }
 0x72f   : > { %4929 = vpow2.f32 %v1834_v10  ;;  %v1822_v50 = vsub.f32 %v1776_v34, %v1807_v12  ;;  %v6379_v12 = vadd.f32 %v6114_v45, %v6334_v27  ;;  %v6398_v27 = vadd.f32 %v6114_v45, %v6346_v4 }
 0x730   : > { %v1832_v58 = vmul.f32 1.442695, %v1823_v52 }
 0x731   : > { %v1830_v51 = vmul.f32 1.442695, %v1822_v50  ;;  %v6388_v50 = vadd.f32 %v6114_v45, %v6338_v48  ;;  %v6408_v48 = vadd.f32 %v6344_v2, %v6114_v45 }
 0x732   : > { %v1813_v53 = vpop.xlane.xlu0 %1812 }
 0x733   : > { %4931 = vpow2.f32 %v1830_v51  ;;  %v1825_v54 = vsub.f32 %v1787_v36, %v1813_v53  ;;  %v6394_v51 = vadd.f32 %v6336_v47, %v6114_v45  ;;  %v6414_v47 = vadd.f32 %v6340_v57, %v6114_v45 }
 0x734   : > { %v1821_v55 = vpop.xlane.xlu1 %1820 }
 0x735   : > { %v1836_v56 = vmul.f32 1.442695, %v1825_v54  ;;  %v1829_v3 = vsub.f32 %v1803_v39, %v1821_v55 }
 0x736   : > { %v1819_v5 = vpop.xlane.xlu0 %1818 }
 0x737   : > { %4933 = vpow2.f32 %v1836_v56  ;;  %v1828_v19 = vsub.f32 %v1800_v41, %v1819_v5  ;;  %v1844_v32 = vmul.f32 1.442695, %v1829_v3 }
 0x738   : > { %v1817_v22 = vpop.xlane.xlu1 %1816  ;;  %4935 = vpow2.f32 %v1832_v58 }
 0x739   : > { %v6348_v24 = vpop.eup %4929  ;;  %v1842_v21 = vmul.f32 1.442695, %v1828_v19  ;;  %v1827_v33 = vsub.f32 %v1795_v42, %v1817_v22 }
 0x73a   : > { %1850 = vadd.xlane.f32.xlu0 %v6348_v24  ;;  %v1815_v34 = vpop.xlane.xlu0 %1814 }
 0x73b   : > { %4937 = vpow2.f32 %v1842_v21  ;;  %v1826_v35 = vsub.f32 %v1792_v25, %v1815_v34  ;;  %v1840_v40 = vmul.f32 1.442695, %v1827_v33 }
 0x73c   : > { %4939 = vpow2.f32 %v1844_v32  ;;  %v1897_v39 = vpop.permute.xlu1 %1896 }
 0x73d   : > { %v6351_v36 = vpop.eup %4931  ;;  %v1838_v37 = vmul.f32 1.442695, %v1826_v35 }
 0x73e   : > { %1846 = vadd.xlane.f32.xlu1 %v6351_v36  ;;  %v1895_v38 = vpop.permute.xlu0 %1894 }
 0x73f   : > { %4941 = vpow2.f32 %v1838_v37  ;;  %4419 = vmatprep.subr.bf16.mxu1 %v1895_v38 }
 0x740   : > { %4420 = vmatpush3.bf16.msra.mxu1 %v1895_v38  ;;  %4943 = vpow2.f32 %v1840_v40 }
 0x741   : > { %v6354_v41 = vpop.eup %4933  ;;  %4421 = vmatprep.subr.bf16.mxu1 %v1897_v39 }
 0x742   : > { %1852 = vadd.xlane.f32.xlu0 %v6354_v41  ;;  %v4936_v42 = vpop.eup %4935 }
 0x744   : > { %4422 = vmatpush3.bf16.msra.mxu1 %v1897_v39 }
 0x745   : > { %v6357_v25 = vpop.eup %4937 }
 0x746   : > { %1848 = vadd.xlane.f32.xlu0 %v4936_v42  ;;  %1858 = vadd.xlane.f32.xlu1 %v6357_v25  ;;  %v6360_v6 = vpop.eup %4939 }
 0x749   : > { %v6362_v8 = vpop.eup %4941 }
 0x74a   : > { %1860 = vadd.xlane.f32.xlu0 %v6360_v6  ;;  %1854 = vadd.xlane.f32.xlu1 %v6362_v8  ;;  %v6366_v10 = vpop.eup %4943 }
 0x74e   : > { %1856 = vadd.xlane.f32.xlu0 %v6366_v10 }
 0x75b   : > { %1900 = vrot.lane.b32.xlu1 %v6172_v26, %s5451_s6 }
 0x75f   : > { %1902 = vrot.lane.b32.xlu1 %v6178_v28, %s5451_s6 }
 0x763   : > { %1904 = vrot.lane.b32.xlu1 %v6182_v31, %s5451_s6 }
 0x764   : > { %1898 = vrot.lane.b32.xlu0 %v6164_v23, %s5451_s6  ;;  %s3723_s6 = sshll.u32 %s5985_s28, 4  ;;  %s6714_s6 = int_to_ptr.vmem [resolvable:$true] %s3723_s6 }
 0x765   : > { %s5295_s8 = scalar_lea.vmem %s6714_s6, 1024 }
 0x766   : > { %p5296_p4 = scmp.ne.s32.totalorder %s6714_s6, %s5295_s8 }
 0x768   : > { %p5297_p0 = pnand %p5296_p4, %p6900_p8 }
 0x76a   : > { %p5298_p9 = pneg %p5297_p0 }
 0x783   : > { %2315 = vmax.xlane.f32.xlu0 %v6379_v12 }
 0x787   : > { %2319 = vmax.xlane.f32.xlu0 %v6384_v49  ;;  %2317 = vmax.xlane.f32.xlu1 %v6388_v50 }
 0x78b   : > { %2321 = vmax.xlane.f32.xlu0 %v6394_v51  ;;  %2325 = vmax.xlane.f32.xlu1 %v6398_v27 }
 0x78f   : > { %2323 = vmax.xlane.f32.xlu0 %v6404_v46  ;;  %2329 = vmax.xlane.f32.xlu1 %v6408_v48 }
 0x793   : > { %2327 = vmax.xlane.f32.xlu0 %v6414_v47 }
 0x7a0   : > { %2401 = vrot.lane.b32.xlu1 %v6144_v16, %s5452_s10 }
 0x7a4   : > { %2409 = vrot.lane.b32.xlu1 %v6172_v26, %s5452_s10 }
 0x7a9   : > { %2399 = vrot.lane.b32.xlu0 %v6142_v15, %s5452_s10 }
 0x7ad   : > { %2403 = vrot.lane.b32.xlu0 %v6149_v18, %s5452_s10 }
 0x7b1   : > { %2405 = vrot.lane.b32.xlu0 %v6155_v20, %s5452_s10 }
 0x7b5   : > { %2407 = vrot.lane.b32.xlu0 %v6164_v23, %s5452_s10 }
 0x7b9   : > { %2411 = vrot.lane.b32.xlu0 %v6178_v28, %s5452_s10 }
 0x7c7   : > { %v1851_v45 = vpop.xlane.xlu0 %1850 }
 0x7cb   : > { %v1847_v16 = vpop.xlane.xlu1 %1846 }
 0x7cc   : > { %4945 = vrcp.f32 %v1847_v16 }
 0x7cf   : > { %v1853_v57 = vpop.xlane.xlu0 %1852 }
 0x7d3   : > { %v1859_v26 = vpop.xlane.xlu1 %1858  ;;  %v1849_v0 = vpop.xlane.xlu0 %1848 }
 0x7d4   : > { %4947 = vrcp.f32 %v1849_v0 }
 0x7d5   : > { %4949 = vrcp.f32 %v1853_v57 }
 0x7d6   : > { %v4946_v52 = vpop.eup %4945 }
 0x7d7   : > { %v1855_v15 = vpop.xlane.xlu1 %1854  ;;  %v1861_v2 = vpop.xlane.xlu0 %1860  ;;  %v1870_v28 = vmul.f32 %v4946_v52, %v6351_v36 }
 0x7db   : > { %v1857_v4 = vpop.xlane.xlu0 %1856  ;;  %v1901_v18 = vpop.permute.xlu1 %1900 }
 0x7dc   : > { %4951 = vrcp.f32 %v1857_v4 }
 0x7dd   : > { %4953 = vrcp.f32 %v1851_v45 }
 0x7de   : > { %v4948_v20 = vpop.eup %4947  ;;  %4955 = vrcp.f32 %v1855_v15 }
 0x7df   : > { %v1899_v23 = vpop.permute.xlu0 %1898  ;;  %v1871_v53 = vmul.f32 %v4948_v20, %v4936_v42  ;;  %v1903_v54 = vpop.permute.xlu1 %1902  ;;  %4957 = vrcp.f32 %v1861_v2 }
 0x7e0   : > { %4423 = vmatprep.subr.bf16.mxu1 %v1899_v23  ;;  %v4950_v56 = vpop.eup %4949  ;;  %4959 = vrcp.f32 %v1859_v26 }
 0x7e1   : > { %4424 = vmatpush3.bf16.msra.mxu1 %v1899_v23  ;;  %v1878_v55 = vpack.c.bf16 %v1871_v53, %v1870_v28  ;;  %v1873_v22 = vmul.f32 %v4950_v56, %v6354_v41  ;;  %v4850_v56 = vld [vmem:[#allocation13 + $0x18] sm:$0xff]  }
 0x7e2   : > { %4425 = vmatprep.subr.bf16.mxu1 %v1901_v18 }
 0x7e3   : > { %4431 = vmatprep.mubr.bf16.mxu1 %v1878_v55  ;;  %v1905_v58 = vpop.permute.xlu1 %1904  ;;  %v4849_v55 = vld [vmem:[#allocation13 + $0x10] sm:$0xff]  }
 0x7e5   : > { %4426 = vmatpush3.bf16.msra.mxu1 %v1901_v18 }
 0x7e6   : > { %4427 = vmatprep.subr.bf16.mxu1 %v1903_v54  ;;  %v4952_v3 = vpop.eup %4951 }
 0x7e7   : > { %v4954_v5 = vpop.eup %4953  ;;  %v1875_v21 = vmul.f32 %v4952_v3, %v6366_v10  ;;  %v4851_v3 = vld [vmem:[#allocation13] sm:$0xff]  }
 0x7e8   : > { %v4956_v19 = vpop.eup %4955  ;;  %v1872_v32 = vmul.f32 %v4954_v5, %v6348_v24  ;;  %v2598_v5 = vld [vmem:[#allocation2 + $0x20] sm:$0xff] }
 0x7e9   : > { %4428 = vmatpush3.bf16.msra.mxu1 %v1903_v54  ;;  %v1874_v34 = vmul.f32 %v4956_v19, %v6362_v8  ;;  %v4958_v35 = vpop.eup %4957  ;;  %v2600_v19 = vld [vmem:[#allocation2 + $0x30] sm:$0xff] }
 0x7ea   : > { %4429 = vmatprep.subr.bf16.mxu1 %v1905_v58  ;;  %v1879_v33 = vpack.c.bf16 %v1873_v22, %v1872_v32  ;;  %v4960_v37 = vpop.eup %4959  ;;  %v1877_v38 = vmul.f32 %v4958_v35, %v6360_v6  ;;  %v2595_v32 = vld [vmem:[#allocation2 + $0x8] sm:$0xff] }
 0x7eb   : > { %v1880_v36 = vpack.c.bf16 %v1875_v21, %v1874_v34  ;;  %v1876_v39 = vmul.f32 %v4960_v37, %v6357_v25  ;;  %v2596_v34 = vld [vmem:[#allocation2 + $0x10] sm:$0xff] }
 0x7ed   : > { %4430 = vmatpush3.bf16.msra.mxu1 %v1905_v58  ;;  %v1881_v40 = vpack.c.bf16 %v1877_v38, %v1876_v39  ;;  %v2594_v58 = vld [vmem:[#allocation2] sm:$0xff] }
 0x7ee   : > { %4439 = vmatprep.subr.bf16.mxu1 %v4849_v55 }
 0x7f0   : > { %4432 = vmatmul.mubr.bf16.vlgmr.msra.gmra.mrb[16].mxu1 %v1879_v33  ;;  %v2599_v33 = vld [vmem:[#allocation2 + $0x28] sm:$0xff] }
 0x7f1   : > { %4435 = vmatprep.mubr.bf16.mxu1 %v1880_v36  ;;  %4440 = vmatpush3.bf16.msra.mxu1 %v4849_v55 }
 0x7f2   : > { %4441 = vmatprep.subr.bf16.mxu1 %v4850_v56 }
 0x7f5   : > { %4442 = vmatpush3.bf16.msra.mxu1 %v4850_v56 }
 0x7f6   : > { %4451 = vmatprep.subr.bf16.mxu1 %v4851_v3 }
 0x7f8   : > { %4436 = vmatmul.mubr.bf16.gmra.mrb[20].mxu1 %v1881_v40 }
 0x810   : > { %v2316_v41 = vpop.xlane.xlu0 %2315 }
 0x811   : > { %v2331_v45 = vsub.f32 %v6379_v12, %v2316_v41 }
 0x813   : > { %v2339_v0 = vmul.f32 1.442695, %v2331_v45 }
 0x814   : > { %v2318_v42 = vpop.xlane.xlu1 %2317  ;;  %v2320_v10 = vpop.xlane.xlu0 %2319 }
 0x815   : > { %v2333_v24 = vsub.f32 %v6384_v49, %v2320_v10  ;;  %v2332_v2 = vsub.f32 %v6388_v50, %v2318_v42 }
 0x817   : > { %v2343_v8 = vmul.f32 1.442695, %v2333_v24  ;;  %v2341_v49 = vmul.f32 1.442695, %v2332_v2 }
 0x818   : > { %v2322_v16 = vpop.xlane.xlu0 %2321  ;;  %v2326_v57 = vpop.xlane.xlu1 %2325 }
 0x819   : > { %v2334_v26 = vsub.f32 %v6394_v51, %v2322_v16  ;;  %4961 = vpow2.f32 %v2343_v8  ;;  %v2336_v22 = vsub.f32 %v6398_v27, %v2326_v57  ;;  %v2597_v27 = vld [vmem:[#allocation2 + $0x18] sm:$0xff]  ;;  %v4852_v8 = vld [vmem:[#allocation13 + $0x8] sm:$0xff]  }
 0x81a   : > { %4963 = vpow2.f32 %v2339_v0 }
 0x81b   : > { %v2345_v6 = vmul.f32 1.442695, %v2334_v26  ;;  %v2349_v21 = vmul.f32 1.442695, %v2336_v22  ;;  %v2602_v22 = vld [vmem:[#allocation3] sm:$0xff] }
 0x81c   : > { %v2324_v15 = vpop.xlane.xlu0 %2323  ;;  %v2330_v4 = vpop.xlane.xlu1 %2329 }
 0x81d   : > { %v2335_v25 = vsub.f32 %v6404_v46, %v2324_v15  ;;  %4965 = vpow2.f32 %v2345_v6  ;;  %v2338_v20 = vsub.f32 %v6408_v48, %v2330_v4 }
 0x81f   : > { %v2347_v18 = vmul.f32 1.442695, %v2335_v25  ;;  %v2353_v46 = vmul.f32 1.442695, %v2338_v20  ;;  %v4854_v20 = vld [vmem:[#allocation13 + $0x28] sm:$0xff]  }
 0x820   : > { %v2328_v52 = vpop.xlane.xlu0 %2327 }
 0x821   : > { %v2337_v12 = vsub.f32 %v6414_v47, %v2328_v52  ;;  %4967 = vpow2.f32 %v2347_v18 }
 0x823   : > { %v2351_v51 = vmul.f32 1.442695, %v2337_v12  ;;  %v6445_v23 = vpop.eup %4961 }
 0x824   : > { %2359 = vadd.xlane.f32.xlu1 %v6445_v23  ;;  %v6448_v28 = vpop.eup %4963  ;;  %v2400_v39 = vpop.permute.xlu0 %2399 }
 0x825   : > { %4969 = vpow2.f32 %v2351_v51 }
 0x826   : > { %4971 = vpow2.f32 %v2341_v49 }
 0x827   : > { %4973 = vpow2.f32 %v2353_v46  ;;  %v6451_v50 = vpop.eup %4965 }
 0x828   : > { %2355 = vadd.xlane.f32.xlu1 %v6448_v28  ;;  %4975 = vpow2.f32 %v2349_v21  ;;  %v2404_v16 = vpop.permute.xlu0 %2403 }
 0x82b   : > { %v6453_v47 = vpop.eup %4967 }
 0x82c   : > { %2361 = vadd.xlane.f32.xlu1 %v6451_v50  ;;  %2363 = vadd.xlane.f32.xlu0 %v6453_v47  ;;  %v2406_v25 = vpop.permute.xlu0 %2405 }
 0x82f   : > { %v6457_v48 = vpop.eup %4969 }
 0x830   : > { %v6459_v53 = vpop.eup %4971  ;;  %2367 = vadd.xlane.f32.xlu0 %v6457_v48  ;;  %v2408_v2 = vpop.permute.xlu0 %2407 }
 0x831   : > { %2357 = vadd.xlane.f32.xlu1 %v6459_v53  ;;  %v6463_v54 = vpop.eup %4973 }
 0x834   : > { %2369 = vadd.xlane.f32.xlu0 %v6463_v54  ;;  %v2412_v52 = vpop.permute.xlu0 %2411 }
 0x842   : > { %2413 = vrot.lane.b32.xlu1 %v6182_v31, %s5452_s10  ;;  %v6476_v31 = vpop.eup %4975 }
 0x84a   : > { %2626 = vrot.lane.b32.xlu0 %v2594_v58, %s5453_s29 }
 0x84e   : > { %2634 = vrot.lane.b32.xlu0 %v2598_v5, %s5453_s29 }
 0x852   : > { %2638 = vrot.lane.b32.xlu0 %v2600_v19, %s5453_s29  ;;  %v2603_v19 = vld [vmem:[#allocation3 + $0x8] sm:$0xff] }
 0x856   : > { %2610 = vrot.lane.b32.xlu0 %v6099_v30, %s5453_s29  ;;  %v5057_v30 = vld [vmem:[#allocation2 + $0x38] sm:$0xff] }
 0x85a   : > { %2614 = vrot.lane.b32.xlu0 %v6107_v44, %s5453_s29  ;;  %v2402_v44 = vpop.permute.xlu1 %2401 }
 0x85e   : > { %v2410_v35 = vpop.permute.xlu1 %2409  ;;  %2827 = vrot.lane.b32.xlu0 %v2602_v22, %s5453_s29 }
 0x866   : > { %2365 = vadd.xlane.f32.xlu1 %v6476_v31 }
 0x877   : > { %2628 = vrot.lane.b32.xlu1 %v2595_v32, %s5453_s29 }
 0x87b   : > { %2630 = vrot.lane.b32.xlu1 %v2596_v34, %s5453_s29 }
 0x87f   : > { %2632 = vrot.lane.b32.xlu1 %v2597_v27, %s5453_s29 }
 0x883   : > { %2636 = vrot.lane.b32.xlu1 %v2599_v33, %s5453_s29 }
 0x887   : > { %2640 = vrot.lane.b32.xlu1 %v5057_v30, %s5453_s29 }
 0x88b   : > { %2612 = vrot.lane.b32.xlu1 %v6097_v29, %s5453_s29 }
 0x88f   : > { %2616 = vrot.lane.b32.xlu1 %v6105_v43, %s5453_s29 }
 0x893   : > { %2829 = vrot.lane.b32.xlu1 %v2603_v19, %s5453_s29 }
 0x8b1   : > { %v2360_v36 = vpop.xlane.xlu1 %2359 }
 0x8b5   : > { %v2356_v37 = vpop.xlane.xlu1 %2355 }
 0x8b9   : > { %v2362_v24 = vpop.xlane.xlu1 %2361  ;;  %v2364_v12 = vpop.xlane.xlu0 %2363 }
 0x8bd   : > { %v2368_v59 = vpop.xlane.xlu0 %2367 }
 0x8be   : > { %v2358_v57 = vpop.xlane.xlu1 %2357 }
 0x8bf   : > { %4977 = vrcp.f32 %v2358_v57 }
 0x8c0   : > { %4979 = vrcp.f32 %v2356_v37 }
 0x8c1   : > { %4981 = vrcp.f32 %v2362_v24  ;;  %v2370_v61 = vpop.xlane.xlu0 %2369 }
 0x8c2   : > { %4983 = vrcp.f32 %v2360_v36 }
 0x8c3   : > { %v4433_v38 = vpop.f32.mrb[16].mxu1  ;;  %4985 = vrcp.f32 %v2370_v61 }
 0x8c4   : > { %v1948_v40 = vpop.f32.mrb[17].mxu1  ;;  %4987 = vrcp.f32 %v2364_v12 }
 0x8c5   : > { %v4434_v41 = vpop.f32.mrb[18].mxu1  ;;  %4989 = vrcp.f32 %v2368_v59  ;;  %v2627_v56 = vpop.permute.xlu0 %2626 }
 0x8c6   : > { %v1980_v42 = vpack.c.bf16 %v4434_v41, %v4433_v38  ;;  %v1951_v10 = vpop.f32.mrb[19].mxu1 }
 0x8c7   : > { %v1979_v45 = vpack.c.bf16 %v1951_v10, %v1948_v40 }
 0x8c9   : > { %4443 = vmatprep.mubr.msk.bf16.mxu1 %vm1402_vm0, %v1979_v45  ;;  %v4978_v4 = vpop.eup %4977  ;;  %v2635_v27 = vpop.permute.xlu0 %2634 }
 0x8ca   : > { %4444 = vmatmul.mubr.msk.bf16.vlgmr.msra.gmra.mrb[24].mxu1 %vm1402_vm0, %v1980_v42  ;;  %v4980_v18 = vpop.eup %4979  ;;  %v2380_v60 = vmul.f32 %v4978_v4, %v6459_v53 }
 0x8cb   : > { %4452 = vmatpush3.bf16.msra.mxu1 %v4851_v3  ;;  %v4437_v29 = vpop.f32.mrb[20].mxu1  ;;  %v2379_v63 = vmul.f32 %v4980_v18, %v6448_v28  ;;  %v4982_v9 = vpop.eup %4981  ;;  %v5058_v18 = vld [vmem:[%s5983_s2] ss:$0 sm:$0xff]  ;;  %s6898_s2 = sld [smem:[#allocation50_spill]] }
 0x8cc   : > { %v1964_v43 = vpop.f32.mrb[21].mxu1  ;;  %4453 = vmatprep.subr.bf16.mxu1 %v4852_v8  ;;  %v4984_v7 = vpop.eup %4983 }
 0x8cd   : > { %v4438_v26 = vpop.f32.mrb[22].mxu1  ;;  %v4986_v51 = vpop.eup %4985 }
 0x8ce   : > { %v1982_v0 = vpack.c.bf16 %v4438_v26, %v4437_v29  ;;  %v1967_v15 = vpop.f32.mrb[23].mxu1  ;;  %v4988_v46 = vpop.eup %4987  ;;  %v2386_v55 = vmul.f32 %v4986_v51, %v6463_v54 }
 0x8cf   : > { %v1981_v6 = vpack.c.bf16 %v1967_v15, %v1964_v43  ;;  %4454 = vmatpush3.bf16.msra.mxu1 %v4852_v8  ;;  %v4990_v28 = vpop.eup %4989  ;;  %v2667_v8 = vsel %vm1402_vm0, %v2635_v27, 0 }
 0x8d0   : > { %4487 = vmatprep.subr.bf16.mxu1 %v2400_v39 }
 0x8d1   : > { %4447 = vmatprep.mubr.msk.bf16.mxu1 %vm1402_vm0, %v1981_v6 }
 0x8d2   : > { %4448 = vmatmul.mubr.msk.bf16.gmra.mrb[28].mxu1 %vm1402_vm0, %v1982_v0 }
 0x8d3   : > { %4455 = vmatprep.mubr.msk.bf16.mxu1 %vm1402_vm0, %v1645_v1  ;;  %v2387_v1 = vpack.c.bf16 %v2380_v60, %v2379_v63 }
 0x8da   : > { %4456 = vmatmul.mubr.msk.bf16.vlgmr.msra.gmra.mrb[24].mxu1 %vm1402_vm0, %v1646_v62  ;;  %v2414_v62 = vpop.permute.xlu1 %2413 }
 0x8db   : > { %4488 = vmatpush3.bf16.msra.mxu1 %v2400_v39  ;;  %4459 = vmatprep.mubr.msk.bf16.mxu1 %vm1402_vm0, %v1647_v17  ;;  %v2381_v17 = vmul.f32 %v4984_v7, %v6445_v23  ;;  %v2385_v23 = vmul.f32 %v4990_v28, %v6457_v48  ;;  %v2655_v48 = vsel %vm1402_vm0, %v2627_v56, 0  ;;  %v2606_v28 = vld [vmem:[#allocation3 + $0x20] sm:$0xff] }
 0x8dc   : > { %4489 = vmatprep.subr.bf16.mxu1 %v2402_v44 }
 0x8dd   : > { %v2390_v5 = vpack.c.bf16 %v2386_v55, %v2385_v23 }
 0x8df   : > { %4490 = vmatpush3.bf16.msra.mxu1 %v2402_v44  ;;  %v2639_v44 = vpop.permute.xlu0 %2638 }
 0x8e0   : > { %4491 = vmatprep.subr.bf16.mxu1 %v2404_v16  ;;  %v2673_v43 = vsel %vm1402_vm0, %v2639_v44, 0 }
 0x8e2   : > { %4460 = vmatmul.mubr.msk.bf16.gmra.mrb[28].mxu1 %vm1402_vm0, %v1648_v13  ;;  %v2382_v13 = vmul.f32 %v4982_v9, %v6451_v50  ;;  %v2383_v50 = vmul.f32 %v4988_v46, %v6453_v47  ;;  %v2605_v46 = vld [vmem:[#allocation3 + $0x18] sm:$0xff] }
 0x8e3   : > { %4492 = vmatpush3.bf16.msra.mxu1 %v2404_v16  ;;  %4503 = vmatprep.mubr.bf16.mxu1 %v2387_v1  ;;  %v2611_v42 = vpop.permute.xlu0 %2610 }
 0x8e4   : > { %4493 = vmatprep.subr.bf16.mxu1 %v2406_v25  ;;  %v2388_v49 = vpack.c.bf16 %v2382_v13, %v2381_v17  ;;  %v2604_v17 = vld [vmem:[#allocation3 + $0x10] sm:$0xff] }
 0x8e7   : > { %4494 = vmatpush3.bf16.msra.mxu1 %v2406_v25  ;;  %v2615_v15 = vpop.permute.xlu0 %2614 }
 0x8e8   : > { %4495 = vmatprep.subr.bf16.mxu1 %v2408_v2 }
 0x8eb   : > { %4496 = vmatpush3.bf16.msra.mxu1 %v2408_v2  ;;  %v2828_v25 = vpop.permute.xlu0 %2827 }
 0x8ec   : > { %4497 = vmatprep.subr.bf16.mxu1 %v2410_v35  ;;  %4547 = vmatprep.subr.bf16.mxu0 %v2828_v25 }
 0x8ed   : > { %4548 = vmatpush3.bf16.msra.mxu0 %v2828_v25 }
 0x8ef   : > { %4498 = vmatpush3.bf16.msra.mxu1 %v2410_v35 }
 0x8f0   : > { %4499 = vmatprep.subr.bf16.mxu1 %v2412_v52 }
 0x8f3   : > { %v2366_v11 = vpop.xlane.xlu1 %2365  ;;  %4500 = vmatpush3.bf16.msra.mxu1 %v2412_v52 }
 0x8f4   : > { %4991 = vrcp.f32 %v2366_v11  ;;  %4501 = vmatprep.subr.bf16.mxu1 %v2414_v62 }
 0x8f7   : > { %4502 = vmatpush3.bf16.msra.mxu1 %v2414_v62  ;;  %v2629_v33 = vpop.permute.xlu1 %2628 }
 0x8f8   : > { %4511 = vmatprep.subr.bf16.mxu1 %v4853_v14  ;;  %v2658_v37 = vsel %vm1402_vm0, %v2629_v33, 0 }
 0x8fa   : > { %4504 = vmatmul.mubr.bf16.vlgmr.msra.gmra.mrb[32].mxu1 %v2388_v49  ;;  %v2607_v49 = vld [vmem:[#allocation3 + $0x28] sm:$0xff] }
 0x8fb   : > { %4512 = vmatpush3.bf16.msra.mxu1 %v4853_v14  ;;  %v2631_v41 = vpop.permute.xlu1 %2630 }
 0x8fc   : > { %4513 = vmatprep.subr.bf16.mxu1 %v4854_v20  ;;  %v2661_v10 = vsel %vm1402_vm0, %v2631_v41, 0 }
 0x8fe   : > { %v4992_v53 = vpop.eup %4991 }
 0x8ff   : > { %v2384_v58 = vmul.f32 %v4992_v53, %v6476_v31  ;;  %4514 = vmatpush3.bf16.msra.mxu1 %v4854_v20  ;;  %v2633_v24 = vpop.permute.xlu1 %2632 }
 0x900   : > { %4631 = vmatprep.subr.msk.bf16.mxu1 %vm1402_vm0, %v2627_v56  ;;  %v2664_v45 = vsel %vm1402_vm0, %v2633_v24, 0 }
 0x901   : > { %v2389_v3 = vpack.c.bf16 %v2384_v58, %v2383_v50 }
 0x903   : > { %4507 = vmatprep.mubr.bf16.mxu1 %v2389_v3  ;;  %v2637_v16 = vpop.permute.xlu1 %2636 }
 0x904   : > { %4508 = vmatmul.mubr.bf16.gmra.mrb[36].mxu1 %v2390_v5  ;;  %v2670_v29 = vsel %vm1402_vm0, %v2637_v16, 0 }
 0x907   : > { %v2641_v57 = vpop.permute.xlu1 %2640 }
 0x908   : > { %v2676_v26 = vsel %vm1402_vm0, %v2641_v57, 0 }
 0x90b   : > { %v2613_v0 = vpop.permute.xlu1 %2612 }
 0x90f   : > { %v2617_v6 = vpop.permute.xlu1 %2616 }
 0x913   : > { %v2830_v2 = vpop.permute.xlu1 %2829 }
 0x914   : > { %4549 = vmatprep.subr.bf16.mxu0 %v2830_v2 }
 0x915   : > { %4550 = vmatpush3.bf16.msra.mxu0 %v2830_v2 }
 0x9cd   : > { %v4505_v54 = vpop.f32.mrb[32].mxu1 }
 0x9ce   : > { %v2457_v21 = vpop.f32.mrb[33].mxu1 }
 0x9cf   : > { %v4506_v47 = vpop.f32.mrb[34].mxu1 }
 0x9d0   : > { %v2489_v32 = vpack.c.bf16 %v4506_v47, %v4505_v54  ;;  %v2460_v31 = vpop.f32.mrb[35].mxu1 }
 0x9d1   : > { %v2488_v34 = vpack.c.bf16 %v2460_v31, %v2457_v21 }
 0x9d3   : > { %4515 = vmatprep.mubr.msk.bf16.mxu1 %vm1402_vm0, %v2488_v34 }
 0x9d4   : > { %4516 = vmatmul.mubr.msk.bf16.vlgmr.msra.gmra.mrb[24].mxu1 %vm1402_vm0, %v2489_v32 }
 0x9d5   : > { %4524 = vmatpush3.bf16.xpose.msra.mxu1 %v2655_v48 }
 0x9d6   : > { %4632 = vmatprep.subr.msk.bf16.mxu1 %vm1402_vm0, %v2629_v33 }
 0x9d7   : > { %v4509_v30 = vpop.f32.mrb[36].mxu1 }
 0x9d8   : > { %v2473_v35 = vpop.f32.mrb[37].mxu1 }
 0x9d9   : > { %v4510_v36 = vpop.f32.mrb[38].mxu1 }
 0x9da   : > { %v2491_v38 = vpack.c.bf16 %v4510_v36, %v4509_v30  ;;  %v2476_v39 = vpop.f32.mrb[39].mxu1 }
 0x9db   : > { %v2490_v40 = vpack.c.bf16 %v2476_v39, %v2473_v35 }
 0x9dd   : > { %4526 = vmatpush3.bf16.xpose.msra.mxu1 %v2658_v37  ;;  %4519 = vmatprep.mubr.msk.bf16.mxu1 %vm1402_vm0, %v2490_v40 }
 0x9de   : > { %4520 = vmatmul.mubr.msk.bf16.gmra.mrb[28].mxu1 %vm1402_vm0, %v2491_v38  ;;  %4633 = vmatprep.subr.msk.bf16.mxu1 %vm1402_vm0, %v2631_v41 }
 0x9df   : > { %4539 = vmatprep.mubr.msk.bf16.mxu1 %vm1402_vm0, %v2611_v42 }
 0x9e5   : > { %4528 = vmatpush3.bf16.xpose.msra.mxu1 %v2661_v10 }
 0x9e6   : > { %4634 = vmatprep.subr.msk.bf16.mxu1 %vm1402_vm0, %v2633_v24 }
 0x9ed   : > { %4530 = vmatpush3.bf16.xpose.msra.mxu1 %v2664_v45 }
 0x9ee   : > { %4635 = vmatprep.subr.msk.bf16.mxu1 %vm1402_vm0, %v2635_v27 }
 0x9f5   : > { %4532 = vmatpush3.bf16.xpose.msra.mxu1 %v2667_v8 }
 0x9f6   : > { %4636 = vmatprep.subr.msk.bf16.mxu1 %vm1402_vm0, %v2637_v16 }
 0x9fd   : > { %4534 = vmatpush3.bf16.xpose.msra.mxu1 %v2670_v29 }
 0x9fe   : > { %4637 = vmatprep.subr.msk.bf16.mxu1 %vm1402_vm0, %v2639_v44 }
 0xa05   : > { %4536 = vmatpush3.bf16.xpose.msra.mxu1 %v2673_v43 }
 0xa06   : > { %4638 = vmatprep.subr.msk.bf16.mxu1 %vm1402_vm0, %v2641_v57  ;;  %v2609_v57 = vld [vmem:[#allocation3 + $0x38] sm:$0xff] }
 0xa0d   : > { %4538 = vmatpush3.bf16.xpose.msra.mxu1 %v2676_v26  ;;  %v2608_v26 = vld [vmem:[#allocation3 + $0x30] sm:$0xff] }
 0xa14   : > { %4540 = vmatmul.mubr.msk.bf16.vlgmr.msra.gmra.mrb[40].mxu1 %vm1402_vm0, %v2613_v0  ;;  %v4855_v0 = vld [vmem:[#allocation13 + $0x30] sm:$0xff]  }
 0xa15   : > { %4543 = vmatprep.mubr.msk.bf16.mxu1 %vm1402_vm0, %v2615_v15  ;;  %v4856_v15 = vld [vmem:[#allocation13 + $0x38] sm:$0xff]   ;;  %4571 = vmatprep.subr.bf16.mxu1 %v4855_v0 }
 0xa16   : > { %4572 = vmatpush3.bf16.msra.mxu1 %v4855_v0 }
 0xa17   : > { %4573 = vmatprep.subr.bf16.mxu1 %v4856_v15 }
 0xa1a   : > { %4574 = vmatpush3.bf16.msra.mxu1 %v4856_v15 }
 0xa1c   : > { %4544 = vmatmul.mubr.msk.bf16.gmra.mrb[44].mxu1 %vm1402_vm0, %v2617_v6 }
 0xae7   : > { %v4541_v4 = vpop.f32.mrb[40].mxu1 }
 0xae8   : > { %v2721_v52 = vadd.f32 %v5058_v18, %v4541_v4  ;;  %v2712_v60 = vpop.f32.mrb[41].mxu1 }
 0xae9   : > { %v4542_v63 = vpop.f32.mrb[42].mxu1  ;;  %v2713_v59 = vadd.f32 %v5058_v18, %v2712_v60 }
 0xaea   : > { %2747 = vmax.xlane.f32.xlu0 %v2721_v52  ;;  %v2715_v1 = vpop.f32.mrb[43].mxu1  ;;  %v2724_v62 = vadd.f32 %v5058_v18, %v4542_v63 }
 0xaeb   : > { %v2716_v12 = vadd.f32 %v5058_v18, %v2715_v1 }
 0xaed   : > { %2745 = vmax.xlane.f32.xlu1 %v2716_v12 }
 0xaee   : > { %2743 = vmax.xlane.f32.xlu0 %v2713_v59 }
 0xaef   : > { %v4545_v61 = vpop.f32.mrb[44].mxu1 }
 0xaf0   : > { %v2728_v9 = vpop.f32.mrb[45].mxu1  ;;  %v2737_v20 = vadd.f32 %v5058_v18, %v4545_v61 }
 0xaf1   : > { %v4546_v7 = vpop.f32.mrb[46].mxu1  ;;  %v2729_v51 = vadd.f32 %v5058_v18, %v2728_v9 }
 0xaf2   : > { %v2740_v11 = vadd.f32 %v5058_v18, %v4546_v7  ;;  %2749 = vmax.xlane.f32.xlu0 %v2724_v62  ;;  %v2731_v13 = vpop.f32.mrb[47].mxu1 }
 0xaf3   : > { %v2732_v14 = vadd.f32 %v5058_v18, %v2731_v13 }
 0xaf4   : > { %2757 = vmax.xlane.f32.xlu1 %v2740_v11 }
 0xaf8   : > { %2753 = vmax.xlane.f32.xlu1 %v2732_v14 }
 0xb08   : > { %2831 = vrot.lane.b32.xlu0 %v2604_v17, %s5453_s29 }
 0xb09   : > { %2837 = vrot.lane.b32.xlu1 %v2607_v49, %s5453_s29 }
 0xb27   : > { %2755 = vmax.xlane.f32.xlu0 %v2737_v20 }
 0xb2b   : > { %2751 = vmax.xlane.f32.xlu0 %v2729_v51 }
 0xb41   : > { %2833 = vrot.lane.b32.xlu0 %v2605_v46, %s5453_s29 }
 0xb45   : > { %2835 = vrot.lane.b32.xlu0 %v2606_v28, %s5453_s29 }
 0xb77   : > { %v2748_v53 = vpop.xlane.xlu0 %2747 }
 0xb78   : > { %v2761_v55 = vsub.f32 %v2721_v52, %v2748_v53 }
 0xb7a   : > { %v2771_v56 = vmul.f32 1.442695, %v2761_v55  ;;  %v2746_v23 = vpop.xlane.xlu1 %2745 }
 0xb7b   : > { %v2744_v50 = vpop.xlane.xlu0 %2743  ;;  %v2760_v19 = vsub.f32 %v2716_v12, %v2746_v23 }
 0xb7c   : > { %4993 = vpow2.f32 %v2771_v56  ;;  %v2759_v58 = vsub.f32 %v2713_v59, %v2744_v50 }
 0xb7d   : > { %v2769_v47 = vmul.f32 1.442695, %v2760_v19 }
 0xb7e   : > { %v2767_v3 = vmul.f32 1.442695, %v2759_v58 }
 0xb7f   : > { %v2750_v5 = vpop.xlane.xlu0 %2749 }
 0xb80   : > { %4995 = vpow2.f32 %v2767_v3  ;;  %v2762_v22 = vsub.f32 %v2724_v62, %v2750_v5 }
 0xb81   : > { %v2758_v27 = vpop.xlane.xlu1 %2757 }
 0xb82   : > { %v2773_v54 = vmul.f32 1.442695, %v2762_v22  ;;  %v2766_v33 = vsub.f32 %v2740_v11, %v2758_v27 }
 0xb83   : > { %v2832_v21 = vpop.permute.xlu0 %2831 }
 0xb84   : > { %4997 = vpow2.f32 %v2773_v54  ;;  %4551 = vmatprep.subr.bf16.mxu0 %v2832_v21  ;;  %v2781_v37 = vmul.f32 1.442695, %v2766_v33  ;;  %v4006_v33 = vld [vmem:[%s6889_s26] ss:$0 sm:$0xff]  ;;  %s6894_s26 = sld [smem:[#allocation48_spill]] }
 0xb85   : > { %4552 = vmatpush3.bf16.msra.mxu0 %v2832_v21  ;;  %4999 = vpow2.f32 %v2769_v47  ;;  %v2754_v35 = vpop.xlane.xlu1 %2753 }
 0xb86   : > { %v6547_v32 = vpop.eup %4993  ;;  %v2764_v39 = vsub.f32 %v2732_v14, %v2754_v35 }
 0xb87   : > { %2787 = vadd.xlane.f32.xlu1 %v6547_v32 }
 0xb88   : > { %v2777_v10 = vmul.f32 1.442695, %v2764_v39 }
 0xb89   : > { %v2838_v45 = vpop.permute.xlu1 %2837 }
 0xb8a   : > { %v4996_v31 = vpop.eup %4995 }
 0xb8b   : > { %2783 = vadd.xlane.f32.xlu1 %v4996_v31 }
 0xb8e   : > { %v6550_v34 = vpop.eup %4997 }
 0xb8f   : > { %2789 = vadd.xlane.f32.xlu1 %v6550_v34  ;;  %v5000_v48 = vpop.eup %4999 }
 0xb93   : > { %2785 = vadd.xlane.f32.xlu1 %v5000_v48 }
 0xbb4   : > { %v2756_v30 = vpop.xlane.xlu0 %2755 }
 0xbb5   : > { %v2765_v44 = vsub.f32 %v2737_v20, %v2756_v30 }
 0xbb7   : > { %v2779_v36 = vmul.f32 1.442695, %v2765_v44 }
 0xbb8   : > { %v2752_v38 = vpop.xlane.xlu0 %2751 }
 0xbb9   : > { %5001 = vpow2.f32 %v2779_v36  ;;  %v2763_v40 = vsub.f32 %v2729_v51, %v2752_v38  ;;  %v5059_v38 = vld [vmem:[%s5948_s27] sm:$0xff] }
 0xbba   : > { %5003 = vpow2.f32 %v2781_v37 }
 0xbbb   : > { %v2775_v41 = vmul.f32 1.442695, %v2763_v40 }
 0xbbc   : > { %v2834_v42 = vpop.permute.xlu0 %2833 }
 0xbbd   : > { %5005 = vpow2.f32 %v2775_v41  ;;  %4553 = vmatprep.subr.bf16.mxu0 %v2834_v42 }
 0xbbe   : > { %4554 = vmatpush3.bf16.msra.mxu0 %v2834_v42  ;;  %5007 = vpow2.f32 %v2777_v10  ;;  %v5060_v10 = vld [vmem:[%s5948_s27 + $0x8] sm:$0xff] }
 0xbc0   : > { %v2836_v24 = vpop.permute.xlu0 %2835 }
 0xbc1   : > { %4555 = vmatprep.subr.bf16.mxu0 %v2836_v24 }
 0xbc2   : > { %4556 = vmatpush3.bf16.msra.mxu0 %v2836_v24 }
 0xbc3   : > { %v6553_v8 = vpop.eup %5001  ;;  %4557 = vmatprep.subr.bf16.mxu0 %v2838_v45 }
 0xbc4   : > { %2795 = vadd.xlane.f32.xlu0 %v6553_v8  ;;  %v5004_v16 = vpop.eup %5003 }
 0xbc6   : > { %4558 = vmatpush3.bf16.msra.mxu0 %v2838_v45  ;;  %v5061_v45 = vld [vmem:[%s5948_s27 + $0x18] sm:$0xff] }
 0xbc7   : > { %v5006_v29 = vpop.eup %5005 }
 0xbc8   : > { %2797 = vadd.xlane.f32.xlu0 %v5004_v16  ;;  %2791 = vadd.xlane.f32.xlu1 %v5006_v29  ;;  %v5008_v43 = vpop.eup %5007 }
 0xbcc   : > { %2793 = vadd.xlane.f32.xlu0 %v5008_v43 }
 0xbd9   : > { %2841 = vrot.lane.b32.xlu1 %v2609_v57, %s5453_s29 }
 0xbe2   : > { %2839 = vrot.lane.b32.xlu0 %v2608_v26, %s5453_s29  ;;  %s6893_s29 = sld [smem:[#allocation45_spill]] }
 0xc14   : > { %v2788_v6 = vpop.xlane.xlu1 %2787 }
 0xc18   : > { %v2784_v25 = vpop.xlane.xlu1 %2783 }
 0xc19   : > { %5009 = vrcp.f32 %v2784_v25 }
 0xc1c   : > { %v2790_v2 = vpop.xlane.xlu1 %2789 }
 0xc20   : > { %v2786_v4 = vpop.xlane.xlu1 %2785 }
 0xc21   : > { %5011 = vrcp.f32 %v2786_v4 }
 0xc22   : > { %5013 = vrcp.f32 %v2790_v2  ;;  %v5063_v2 = vld [vmem:[%s5948_s27 + $0x20] sm:$0xff] }
 0xc23   : > { %v5010_v18 = vpop.eup %5009  ;;  %5015 = vrcp.f32 %v2788_v6 }
 0xc24   : > { %v2807_v60 = vmul.f32 %v5010_v18, %v4996_v31 }
 0xc2b   : > { %v5012_v52 = vpop.eup %5011 }
 0xc2c   : > { %v2808_v63 = vmul.f32 %v5012_v52, %v5000_v48  ;;  %v5014_v9 = vpop.eup %5013  ;;  %v5064_v52 = vld [vmem:[%s5948_s27 + $0x28] sm:$0xff] }
 0xc2d   : > { %v5016_v13 = vpop.eup %5015  ;;  %v2810_v14 = vmul.f32 %v5014_v9, %v6550_v34  ;;  %v4862_v9 = vld [vmem:[#allocation15 + $0x14] ss:$8 sps:$4 sm:$0xff]  }
 0xc2e   : > { %v2815_v1 = vpack.c.bf16 %v2808_v63, %v2807_v60  ;;  %v2809_v49 = vmul.f32 %v5016_v13, %v6547_v32  ;;  %v5065_v63 = vld [vmem:[%s5948_s27 + $0x30] sm:$0xff] }
 0xc30   : > { %4563 = vmatprep.mubr.bf16.mxu0 %v2815_v1  ;;  %v2816_v51 = vpack.c.bf16 %v2810_v14, %v2809_v49 }
 0xc51   : > { %v2796_v12 = vpop.xlane.xlu0 %2795 }
 0xc55   : > { %v2792_v59 = vpop.xlane.xlu1 %2791  ;;  %v2798_v61 = vpop.xlane.xlu0 %2797 }
 0xc56   : > { %5017 = vrcp.f32 %v2792_v59 }
 0xc59   : > { %v2794_v62 = vpop.xlane.xlu0 %2793  ;;  %v2842_v11 = vpop.permute.xlu1 %2841 }
 0xc5a   : > { %5019 = vrcp.f32 %v2794_v62  ;;  %v4859_v62 = vld [vmem:[#allocation15 + $0x4] ss:$8 sps:$4 sm:$0xff]  }
 0xc5b   : > { %5021 = vrcp.f32 %v2798_v61  ;;  %v4857_v61 = vld [vmem:[#allocation15] ss:$8 sps:$4 sm:$0xff]  }
 0xc5c   : > { %5023 = vrcp.f32 %v2796_v12  ;;  %v5066_v12 = vld [vmem:[%s5948_s27 + $0x38] sm:$0xff] }
 0xc5d   : > { %v2840_v7 = vpop.permute.xlu0 %2839 }
 0xc5e   : > { %4559 = vmatprep.subr.bf16.mxu0 %v2840_v7 }
 0xc5f   : > { %4560 = vmatpush3.bf16.msra.mxu0 %v2840_v7  ;;  %v4860_v7 = vld [vmem:[#allocation15 + $0x10] ss:$8 sps:$4 sm:$0xff]  }
 0xc60   : > { %4561 = vmatprep.subr.bf16.mxu0 %v2842_v11  ;;  %v5018_v17 = vpop.eup %5017 }
 0xc61   : > { %v2811_v28 = vmul.f32 %v5018_v17, %v5006_v29 }
 0xc63   : > { %4562 = vmatpush3.bf16.msra.mxu0 %v2842_v11 }
 0xc64   : > { %v5020_v20 = vpop.eup %5019  ;;  %3276 = vmatprep.subr.bf16.mxu0 %v4859_v62 }
 0xc65   : > { %v5022_v46 = vpop.eup %5021  ;;  %v2812_v53 = vmul.f32 %v5020_v20, %v5008_v43  ;;  %v5062_v43 = vld [vmem:[%s5948_s27 + $0x10] sm:$0xff]  ;;  %s3708_s27 = scalar_lea.sflag [#allocation6], %s5944_s18 }
 0xc66   : > { %4564 = vmatmul.mubr.bf16.vlgmr.msra.gmra.mrb[24].mxu0 %v2816_v51  ;;  %v5024_v55 = vpop.eup %5023  ;;  %v2814_v50 = vmul.f32 %v5022_v46, %v5004_v16 }
 0xc67   : > { %v2817_v56 = vpack.c.bf16 %v2812_v53, %v2811_v28  ;;  %v2813_v58 = vmul.f32 %v5024_v55, %v6553_v8  ;;  %3277 = vmatpush1.bf16.msra.mxu0 %v4857_v61 }
 0xc68   : > { %3278 = vmatprep.subr.bf16.mxu0 %v4862_v9 }
 0xc69   : > { %4567 = vmatprep.mubr.bf16.mxu0 %v2817_v56  ;;  %v2818_v23 = vpack.c.bf16 %v2814_v50, %v2813_v58 }
 0xc6b   : > { %3279 = vmatpush1.bf16.msra.mxu0 %v4860_v7 }
 0xc6e   : > { %4568 = vmatmul.mubr.bf16.gmra.mrb[28].mxu0 %v2818_v23 }
 0xd39   : > { %v4565_v3 = vpop.f32.mrb[24].mxu0 }
 0xd3a   : > { %v2885_v5 = vpop.f32.mrb[25].mxu0 }
 0xd3b   : > { %v4566_v19 = vpop.f32.mrb[26].mxu0 }
 0xd3c   : > { %v2917_v22 = vpack.c.bf16 %v4566_v19, %v4565_v3  ;;  %v2888_v54 = vpop.f32.mrb[27].mxu0 }
 0xd3d   : > { %v2916_v21 = vpack.c.bf16 %v2888_v54, %v2885_v5 }
 0xd3f   : > { %4575 = vmatprep.mubr.msk.bf16.mxu1 %vm1402_vm0, %v2916_v21 }
 0xd40   : > { %4576 = vmatmul.mubr.msk.bf16.vlgmr.msra.gmra.mrb[24].mxu1 %vm1402_vm0, %v2917_v22 }
 0xd41   : > { %v4569_v47 = vpop.f32.mrb[28].mxu0 }
 0xd42   : > { %v2901_v32 = vpop.f32.mrb[29].mxu0 }
 0xd43   : > { %v4570_v31 = vpop.f32.mrb[30].mxu0 }
 0xd44   : > { %v2919_v34 = vpack.c.bf16 %v4570_v31, %v4569_v47  ;;  %v2904_v48 = vpop.f32.mrb[31].mxu0 }
 0xd45   : > { %v2918_v27 = vpack.c.bf16 %v2904_v48, %v2901_v32 }
 0xd47   : > { %4579 = vmatprep.mubr.msk.bf16.mxu1 %vm1402_vm0, %v2918_v27 }
 0xd48   : > { %4580 = vmatmul.mubr.msk.bf16.gmra.mrb[28].mxu1 %vm1402_vm0, %v2919_v34 }
 0xe13   : > { %v4577_v30 = vpop.f32.mrb[24].mxu1 }
 0xe14   : > { %v2983_v44 = vpop.f32.mrb[25].mxu1  ;;  %v3031_v42 = vadd.f32 %v4577_v30, %v4006_v33 }
 0xe15   : > { %v3029_v35 = vadd.f32 %v4006_v33, %v2983_v44  ;;  %v4578_v36 = vpop.f32.mrb[26].mxu1 }
 0xe16   : > { %v2986_v37 = vpop.f32.mrb[27].mxu1  ;;  %v3032_v40 = vadd.f32 %v4578_v36, %v4006_v33  ;;  %v3039_v57 = vadd.f32 %v5062_v43, %v3031_v42  ;;  %v4869_v42 = vld [vmem:[#allocation15 + $0x40] ss:$8 sps:$4 sm:$0xff]   ;;  %v5454_v43 = vmov 0  }
 0xe17   : > { %v3037_v39 = vadd.f32 %v5059_v38, %v3029_v35  ;;  %v3030_v41 = vadd.f32 %v4006_v33, %v2986_v37  ;;  %v4865_v37 = vld [vmem:[#allocation15 + $0x24] ss:$8 sps:$4 sm:$0xff]   ;;  %v4863_v38 = vld [vmem:[#allocation15 + $0x20] ss:$8 sps:$4 sm:$0xff]   ;;  %3308 = vmatprep.mubr.bf16.mxu0 %v5454_v43 }
 0xe18   : > { %v3040_v8 = vadd.f32 %v5061_v45, %v3032_v40  ;;  %3280 = vmatprep.subr.bf16.mxu0 %v4865_v37  ;;  %v4866_v40 = vld [vmem:[#allocation15 + $0x30] ss:$8 sps:$4 sm:$0xff]   ;;  %v4877_v45 = vld [vmem:[#allocation15 + $0x64] ss:$8 sps:$4 sm:$0xff]  }
 0xe19   : > { %v3038_v24 = vadd.f32 %v5060_v10, %v3030_v41  ;;  %3047 = vadd.xlane.f32.xlu1 %v3037_v39  ;;  %3281 = vmatpush1.bf16.msra.mxu0 %v4863_v38  ;;  %v4871_v41 = vld [vmem:[#allocation15 + $0x44] ss:$8 sps:$4 sm:$0xff]   ;;  %v4874_v10 = vld [vmem:[#allocation15 + $0x54] ss:$8 sps:$4 sm:$0xff]  }
 0xe1a   : > { %v4884_v38 = vld [vmem:[#allocation16 + $0x8] sm:$0xff]  }
 0xe1b   : > { %3049 = vadd.xlane.f32.xlu0 %v3038_v24  ;;  %v4581_v16 = vpop.f32.mrb[28].mxu1 }
 0xe1c   : > { %v2999_v29 = vpop.f32.mrb[29].mxu1  ;;  %v3035_v25 = vadd.f32 %v4581_v16, %v4006_v33  ;;  %v4878_v16 = vld [vmem:[#allocation15 + $0x70] ss:$8 sps:$4 sm:$0xff]  }
 0xe1d   : > { %v3033_v26 = vadd.f32 %v4006_v33, %v2999_v29  ;;  %3053 = vadd.xlane.f32.xlu1 %v3040_v8  ;;  %v4582_v0 = vpop.f32.mrb[30].mxu1  ;;  %v4880_v29 = vld [vmem:[#allocation15 + $0x74] ss:$8 sps:$4 sm:$0xff]  }
 0xe1e   : > { %v3002_v15 = vpop.f32.mrb[31].mxu1  ;;  %v3036_v18 = vadd.f32 %v4582_v0, %v4006_v33  ;;  %v3043_v1 = vadd.f32 %v5065_v63, %v3035_v25 }
 0xe1f   : > { %v3034_v6 = vadd.f32 %v4006_v33, %v3002_v15  ;;  %3051 = vadd.xlane.f32.xlu0 %v3039_v57  ;;  %v3041_v4 = vadd.f32 %v5063_v2, %v3033_v26 }
 0xe20   : > { %v3044_v59 = vadd.f32 %v5066_v12, %v3036_v18 }
 0xe21   : > { %v3042_v60 = vadd.f32 %v5064_v52, %v3034_v6 }
 0xe23   : > { %3055 = vadd.xlane.f32.xlu0 %v3041_v4  ;;  %3057 = vadd.xlane.f32.xlu1 %v3042_v60 }
 0xe27   : > { %3059 = vadd.xlane.f32.xlu0 %v3043_v1  ;;  %3061 = vadd.xlane.f32.xlu1 %v3044_v59 }
 0xea6   : > { %v3048_v11 = vpop.xlane.xlu1 %3047 }
 0xea7   : > { %v3064_v13 = vmul.f32 0.0078125, %v3048_v11 }
 0xea8   : > { %v3050_v14 = vpop.xlane.xlu0 %3049 }
 0xea9   : > { %v6576_v17 = vsub.f32 %v3037_v39, %v3064_v13  ;;  %v3065_v49 = vmul.f32 0.0078125, %v3050_v14  ;;  %v4868_v39 = vld [vmem:[#allocation15 + $0x34] ss:$8 sps:$4 sm:$0xff]  }
 0xeaa   : > { %v3054_v20 = vpop.xlane.xlu1 %3053  ;;  %3282 = vmatprep.subr.bf16.mxu0 %v4868_v39 }
 0xeab   : > { %v6578_v51 = vsub.f32 %v3038_v24, %v3065_v49  ;;  %v3067_v46 = vmul.f32 0.0078125, %v3054_v20  ;;  %v3080_v28 = vmul.f32 %v6576_v17, %v6576_v17  ;;  %3283 = vmatpush1.bf16.msra.mxu0 %v4866_v40  ;;  %v4872_v24 = vld [vmem:[#allocation15 + $0x50] ss:$8 sps:$4 sm:$0xff]   ;;  %v4007_v49 = vld [vmem:[%s6890_s17] ss:$0 sm:$0xff]  ;;  %s6895_s17 = sld [smem:[#allocation49_spill]] }
 0xeac   : > { %v3052_v53 = vpop.xlane.xlu0 %3051  ;;  %3284 = vmatprep.subr.bf16.mxu0 %v4871_v41  ;;  %v4885_v41 = vld [vmem:[#allocation16 + $0x50] sm:$0xff]  }
 0xead   : > { %v6582_v55 = vsub.f32 %v3040_v8, %v3067_v46  ;;  %v3066_v56 = vmul.f32 0.0078125, %v3052_v53  ;;  %3088 = vadd.xlane.f32.xlu0 %v3080_v28  ;;  %v3081_v50 = vmul.f32 %v6578_v51, %v6578_v51  ;;  %v4875_v8 = vld [vmem:[#allocation15 + $0x60] ss:$8 sps:$4 sm:$0xff]  }
 0xeaf   : > { %v6586_v58 = vsub.f32 %v3039_v57, %v3066_v56  ;;  %3090 = vadd.xlane.f32.xlu1 %v3081_v50  ;;  %v3083_v54 = vmul.f32 %v6582_v55, %v6582_v55  ;;  %3285 = vmatpush1.bf16.msra.mxu0 %v4869_v42  ;;  %v4881_v57 = vld [vmem:[#allocation16 + $0x40] sm:$0xff]   ;;  %v4886_v42 = vld [vmem:[#allocation16 + $0x10] sm:$0xff]  }
 0xeb0   : > { %v3056_v23 = vpop.xlane.xlu0 %3055  ;;  %v3058_v3 = vpop.xlane.xlu1 %3057  ;;  %3286 = vmatprep.subr.bf16.mxu0 %v4874_v10 }
 0xeb1   : > { %v3068_v5 = vmul.f32 0.0078125, %v3056_v23  ;;  %v3069_v19 = vmul.f32 0.0078125, %v3058_v3  ;;  %v3082_v22 = vmul.f32 %v6586_v58, %v6586_v58 }
 0xeb3   : > { %v6592_v21 = vsub.f32 %v3041_v4, %v3068_v5  ;;  %v6594_v47 = vsub.f32 %v3042_v60, %v3069_v19  ;;  %3092 = vadd.xlane.f32.xlu0 %v3082_v22  ;;  %3094 = vadd.xlane.f32.xlu1 %v3083_v54  ;;  %v4008_v5 = vld [vmem:[%s6891_s7] ss:$0 sm:$0xff]  ;;  %s4045_s7 = sshll.u32 %s6896_s5, 3 }
 0xeb4   : > { %v3060_v32 = vpop.xlane.xlu0 %3059  ;;  %v3062_v31 = vpop.xlane.xlu1 %3061  ;;  %3287 = vmatpush1.bf16.msra.mxu0 %v4872_v24  ;;  %s3720_s13 = sadd.s32 %s4046_s11, %s4045_s7 }
 0xeb5   : > { %v3070_v34 = vmul.f32 0.0078125, %v3060_v32  ;;  %v3071_v48 = vmul.f32 0.0078125, %v3062_v31  ;;  %v3084_v27 = vmul.f32 %v6592_v21, %v6592_v21  ;;  %v3085_v33 = vmul.f32 %v6594_v47, %v6594_v47  ;;  %3288 = vmatprep.subr.bf16.mxu0 %v4877_v45 }
 0xeb7   : > { %v6600_v30 = vsub.f32 %v3043_v1, %v3070_v34  ;;  %v6602_v44 = vsub.f32 %v3044_v59, %v3071_v48  ;;  %3096 = vadd.xlane.f32.xlu0 %v3084_v27  ;;  %3098 = vadd.xlane.f32.xlu1 %v3085_v33  ;;  %v4883_v33 = vld [vmem:[#allocation16 + $0x48] sm:$0xff]  }
 0xeb8   : > { %3289 = vmatpush1.bf16.msra.mxu0 %v4875_v8 }
 0xeb9   : > { %v3086_v35 = vmul.f32 %v6600_v30, %v6600_v30  ;;  %v3087_v36 = vmul.f32 %v6602_v44, %v6602_v44  ;;  %3290 = vmatprep.subr.bf16.mxu0 %v4880_v29 }
 0xebb   : > { %3100 = vadd.xlane.f32.xlu0 %v3086_v35  ;;  %3102 = vadd.xlane.f32.xlu1 %v3087_v36 }
 0xebc   : > { %3291 = vmatpush1.bf16.msra.mxu0 %v4878_v16  ;;  %v4887_v16 = vld [vmem:[#allocation16 + $0x58] sm:$0xff]  }
 0xebd   : > { %4215 = vmatprep.subr.bf16.mxu0 %v4881_v57 }
 0xf3a   : > { %v3089_v26 = vpop.xlane.xlu0 %3088 }
 0xf3b   : > { %v3104_v0 = vmul.f32 0.0078125, %v3089_v26 }
 0xf3c   : > { %v3091_v15 = vpop.xlane.xlu1 %3090 }
 0xf3d   : > { %v3112_v6 = vadd.f32 1e-05, %v3104_v0  ;;  %v3105_v25 = vmul.f32 0.0078125, %v3091_v15  ;;  %v4889_v15 = vld [vmem:[#allocation16 + $0x60] sm:$0xff]  }
 0xf3f   : > { %5025 = vrsqrt.f32 %v3112_v6  ;;  %v3113_v2 = vadd.f32 1e-05, %v3105_v25  ;;  %v4890_v6 = vld [vmem:[#allocation16 + $0x20] sm:$0xff]  }
 0xf40   : > { %v3093_v4 = vpop.xlane.xlu0 %3092  ;;  %v3095_v18 = vpop.xlane.xlu1 %3094 }
 0xf41   : > { %5027 = vrsqrt.f32 %v3113_v2  ;;  %v3106_v52 = vmul.f32 0.0078125, %v3093_v4  ;;  %v3107_v60 = vmul.f32 0.0078125, %v3095_v18  ;;  %v4891_v18 = vld [vmem:[#allocation16 + $0x68] sm:$0xff]  }
 0xf43   : > { %v3114_v63 = vadd.f32 1e-05, %v3106_v52  ;;  %v3115_v1 = vadd.f32 1e-05, %v3107_v60  ;;  %v4892_v52 = vld [vmem:[#allocation16 + $0x28] sm:$0xff]  }
 0xf44   : > { %v3097_v12 = vpop.xlane.xlu0 %3096  ;;  %v3099_v59 = vpop.xlane.xlu1 %3098 }
 0xf45   : > { %5029 = vrsqrt.f32 %v3114_v63  ;;  %v3108_v61 = vmul.f32 0.0078125, %v3097_v12  ;;  %v3109_v62 = vmul.f32 0.0078125, %v3099_v59  ;;  %v4893_v63 = vld [vmem:[#allocation16 + $0x70] sm:$0xff]   ;;  %v4895_v12 = vld [vmem:[#allocation16 + $0x78] sm:$0xff]  }
 0xf46   : > { %5031 = vrsqrt.f32 %v3115_v1  ;;  %v4894_v1 = vld [vmem:[#allocation16 + $0x30] sm:$0xff]   ;;  %v4896_v59 = vld [vmem:[#allocation16 + $0x38] sm:$0xff]  }
 0xf47   : > { %v3116_v9 = vadd.f32 1e-05, %v3108_v61  ;;  %v3117_v7 = vadd.f32 1e-05, %v3109_v62 }
 0xf48   : > { %v3101_v11 = vpop.xlane.xlu0 %3100  ;;  %v3103_v13 = vpop.xlane.xlu1 %3102 }
 0xf49   : > { %v5026_v14 = vpop.eup %5025  ;;  %5033 = vrsqrt.f32 %v3116_v9  ;;  %v3110_v20 = vmul.f32 0.0078125, %v3101_v11  ;;  %v3111_v46 = vmul.f32 0.0078125, %v3103_v13  ;;  %v3184_v9 = vld [vmem:[%s6892_s14] sm:$0x3]  ;;  %s4047_s14 = sshll.u32 %s3720_s13, 7 }
 0xf4a   : > { %v3128_v28 = vmul.f32 %v5026_v14, %v6576_v17  ;;  %5035 = vrsqrt.f32 %v3117_v7  ;;  %s6712_s23 = scalar_lea.hbm %s6898_s2, %s4047_s14 }
 0xf4b   : > { %v5028_v53 = vpop.eup %5027  ;;  %v3118_v23 = vadd.f32 1e-05, %v3110_v20  ;;  %v3119_v3 = vadd.f32 1e-05, %v3111_v46 }
 0xf4c   : > { %v3142_v56 = vmul.f32 %v4007_v49, %v3128_v28  ;;  %v3129_v50 = vmul.f32 %v5028_v53, %v6578_v51  ;;  %v4882_v51 = vld [vmem:[#allocation16] sm:$0xff]  }
 0xf4d   : > { %5037 = vrsqrt.f32 %v3118_v23 }
 0xf4e   : > { %v3143_v19 = vmul.f32 %v4007_v49, %v3129_v50  ;;  %v6617_v32 = vadd.f32 %v4008_v5, %v3142_v56  ;;  %5039 = vrsqrt.f32 %v3119_v3 }
 0xf4f   : > { %v5030_v22 = vpop.eup %5029 }
 0xf50   : > { %v5032_v54 = vpop.eup %5031  ;;  %v6619_v31 = vadd.f32 %v4008_v5, %v3143_v19  ;;  %v3130_v17 = vmul.f32 %v5030_v22, %v6586_v58 }
 0xf51   : > { %v3131_v34 = vmul.f32 %v5032_v54, %v6582_v55 }
 0xf52   : > { %v3164_v48 = vpack.c.bf16 %v6619_v31, %v6617_v32  ;;  %v3144_v27 = vmul.f32 %v4007_v49, %v3130_v17 }
 0xf53   : > { %v5034_v35 = vpop.eup %5033  ;;  %v3145_v36 = vmul.f32 %v4007_v49, %v3131_v34 }
 0xf54   : > { %v5036_v37 = vpop.eup %5035  ;;  %3309 = vmatmul.mubr.bf16.vlgmr.msra.gmra.mrb[32].mxu0 %v3164_v48  ;;  %v6626_v39 = vadd.f32 %v4008_v5, %v3144_v27  ;;  %v3132_v55 = vmul.f32 %v5034_v35, %v6592_v21  ;;  %v4888_v21 = vld [vmem:[#allocation16 + $0x18] sm:$0xff]  }
 0xf55   : > { %3318 = vmatprep.mubr.bf16.mxu0 %v5454_v43  ;;  %4216 = vmatpush3.bf16.msra.mxu0 %v4882_v51  ;;  %v6628_v58 = vadd.f32 %v4008_v5, %v3145_v36  ;;  %v3133_v40 = vmul.f32 %v5036_v37, %v6594_v47 }
 0xf56   : > { %4217 = vmatprep.subr.bf16.mxu0 %v4883_v33  ;;  %v3146_v45 = vmul.f32 %v4007_v49, %v3132_v55 }
 0xf57   : > { %v5038_v10 = vpop.eup %5037  ;;  %v3165_v24 = vpack.c.bf16 %v6628_v58, %v6626_v39  ;;  %v3147_v8 = vmul.f32 %v4007_v49, %v3133_v40 }
 0xf58   : > { %v5040_v29 = vpop.eup %5039  ;;  %v6635_v57 = vadd.f32 %v4008_v5, %v3146_v45  ;;  %v3134_v26 = vmul.f32 %v5038_v10, %v6600_v30 }
 0xf59   : > { %4218 = vmatpush3.bf16.msra.mxu0 %v4884_v38  ;;  %v6637_v47 = vadd.f32 %v4008_v5, %v3147_v8  ;;  %v3135_v0 = vmul.f32 %v5040_v29, %v6602_v44 }
 0xf5a   : > { %4219 = vmatprep.subr.bf16.mxu0 %v4885_v41  ;;  %v3148_v2 = vmul.f32 %v4007_v49, %v3134_v26 }
 0xf5b   : > { %v3166_v25 = vpack.c.bf16 %v6637_v47, %v6635_v57  ;;  %v3149_v4 = vmul.f32 %v4007_v49, %v3135_v0 }
 0xf5c   : > { %3319 = vmatmul.mubr.bf16.gmra.mrb[36].mxu0 %v3165_v24  ;;  %v6644_v60 = vadd.f32 %v4008_v5, %v3148_v2 }
 0xf5d   : > { %3328 = vmatprep.mubr.bf16.mxu0 %v5454_v43  ;;  %4220 = vmatpush3.bf16.msra.mxu0 %v4886_v42  ;;  %v6646_v30 = vadd.f32 %v4008_v5, %v3149_v4 }
 0xf5e   : > { %4221 = vmatprep.subr.bf16.mxu0 %v4887_v16 }
 0xf5f   : > { %v3167_v44 = vpack.c.bf16 %v6646_v30, %v6644_v60 }
 0xf61   : > { %4222 = vmatpush3.bf16.msra.mxu0 %v4888_v21 }
 0xf62   : > { %4223 = vmatprep.subr.bf16.mxu0 %v4889_v15 }
 0xf64   : > { %3329 = vmatmul.mubr.bf16.gmra.mrb[40].mxu0 %v3166_v25 }
 0xf65   : > { %3338 = vmatprep.mubr.bf16.mxu0 %v5454_v43  ;;  %4224 = vmatpush3.bf16.msra.mxu0 %v4890_v6  ;;  %v3186_v43 = vlaneseq }
 0xf66   : > { %4225 = vmatprep.subr.bf16.mxu0 %v4891_v18 }
 0xf67   : > { %v3187_v61 = vshrl.u32 %v3186_v43, 7 }
 0xf69   : > { %4226 = vmatpush3.bf16.msra.mxu0 %v4892_v52  ;;  %v3188_v62 = vsub.s32 0, %v3187_v61  ;;  %v3192_v7 = vsub.s32 1, %v3187_v61 }
 0xf6a   : > { %4227 = vmatprep.subr.bf16.mxu0 %v4893_v63 }
 0xf6b   : > { %v3189_v11 = vrot.slane %v3184_v9, %v3188_v62  ;;  %v3193_v13 = vrot.slane %v3184_v9, %v3192_v7 }
 0xf6c   : > { %3339 = vmatmul.mubr.bf16.gmra.mrb[44].mxu0 %v3167_v44 }
 0xf6d   : > { %4228 = vmatpush3.bf16.msra.mxu0 %v4894_v1 }
 0xf6e   : > { %4229 = vmatprep.subr.bf16.mxu0 %v4895_v12 }
 0xf71   : > { %4230 = vmatpush3.bf16.msra.mxu0 %v4896_v59 }
0x1027   : > { %v3310_v14 = vpop.f32.mrb[32].mxu0 }
0x1028   : > { %v3311_v49 = vadd.f32 %v3310_v14, %v3189_v11  ;;  %v3312_v20 = vpop.f32.mrb[33].mxu0 }
0x1029   : > { %v3313_v46 = vadd.f32 %v3312_v20, %v3193_v13  ;;  %v3314_v28 = vpop.f32.mrb[34].mxu0 }
0x102a   : > { %v3315_v53 = vadd.f32 %v3314_v28, %v3189_v11  ;;  %v3316_v56 = vpop.f32.mrb[35].mxu0  ;;  %v3349_v23 = vmax.f32 %v3311_v49, 0.0 }
0x102b   : > { %v3317_v50 = vadd.f32 %v3316_v56, %v3193_v13  ;;  %v3350_v5 = vmax.f32 %v3313_v46, 0.0  ;;  %v4025_v46 = vld [vmem:[%s6893_s29] ss:$0 sm:$0xff] }
0x102c   : > { %v3351_v3 = vmax.f32 %v3315_v53, 0.0 }
0x102d   : > { %v3352_v19 = vmax.f32 %v3317_v50, 0.0 }
0x102e   : > { %v3365_v22 = vpack.c.bf16 %v3351_v3, %v3349_v23 }
0x102f   : > { %v3366_v54 = vpack.c.bf16 %v3352_v19, %v3350_v5  ;;  %v3320_v17 = vpop.f32.mrb[36].mxu0 }
0x1030   : > { %v3321_v34 = vadd.f32 %v3320_v17, %v3189_v11  ;;  %v3322_v51 = vpop.f32.mrb[37].mxu0 }
0x1031   : > { %v3323_v48 = vadd.f32 %v3322_v51, %v3193_v13  ;;  %v3324_v27 = vpop.f32.mrb[38].mxu0  ;;  %3540 = vmatprep.mubr.bf16.mxu0 %v3366_v54 }
0x1032   : > { %v3325_v33 = vadd.f32 %v3324_v27, %v3189_v11  ;;  %v3326_v35 = vpop.f32.mrb[39].mxu0  ;;  %3541 = vmatmul.mubr.bf16.vlgmr.msra.gmra.mrb[48].mxu0 %v3365_v22  ;;  %v3353_v37 = vmax.f32 %v3321_v34, 0.0 }
0x1033   : > { %v3327_v36 = vadd.f32 %v3326_v35, %v3193_v13  ;;  %v3354_v55 = vmax.f32 %v3323_v48, 0.0 }
0x1034   : > { %v3355_v38 = vmax.f32 %v3325_v33, 0.0 }
0x1035   : > { %v3356_v40 = vmax.f32 %v3327_v36, 0.0 }
0x1036   : > { %v3367_v41 = vpack.c.bf16 %v3355_v38, %v3353_v37 }
0x1037   : > { %v3368_v42 = vpack.c.bf16 %v3356_v40, %v3354_v55  ;;  %v3330_v10 = vpop.f32.mrb[40].mxu0 }
0x1038   : > { %v3331_v24 = vadd.f32 %v3330_v10, %v3189_v11  ;;  %v3332_v45 = vpop.f32.mrb[41].mxu0 }
0x1039   : > { %v3333_v8 = vadd.f32 %v3332_v45, %v3193_v13  ;;  %v3334_v16 = vpop.f32.mrb[42].mxu0  ;;  %3548 = vmatprep.mubr.bf16.mxu0 %v3368_v42 }
0x103a   : > { %v3335_v29 = vadd.f32 %v3334_v16, %v3189_v11  ;;  %v3336_v21 = vpop.f32.mrb[43].mxu0  ;;  %3549 = vmatmul.mubr.bf16.gmra.mrb[52].mxu0 %v3367_v41  ;;  %v3357_v0 = vmax.f32 %v3331_v24, 0.0 }
0x103b   : > { %v3337_v26 = vadd.f32 %v3336_v21, %v3193_v13  ;;  %v3358_v6 = vmax.f32 %v3333_v8, 0.0 }
0x103c   : > { %v3359_v15 = vmax.f32 %v3335_v29, 0.0 }
0x103d   : > { %v3360_v25 = vmax.f32 %v3337_v26, 0.0 }
0x103e   : > { %v3369_v2 = vpack.c.bf16 %v3359_v15, %v3357_v0 }
0x103f   : > { %v3370_v4 = vpack.c.bf16 %v3360_v25, %v3358_v6  ;;  %v3340_v18 = vpop.f32.mrb[44].mxu0 }
0x1040   : > { %v3341_v52 = vadd.f32 %v3340_v18, %v3189_v11  ;;  %v3342_v44 = vpop.f32.mrb[45].mxu0 }
0x1041   : > { %v3343_v63 = vadd.f32 %v3342_v44, %v3193_v13  ;;  %v3344_v1 = vpop.f32.mrb[46].mxu0  ;;  %3556 = vmatprep.mubr.bf16.mxu0 %v3370_v4 }
0x1042   : > { %v3345_v12 = vadd.f32 %v3344_v1, %v3189_v11  ;;  %v3346_v59 = vpop.f32.mrb[47].mxu0  ;;  %3557 = vmatmul.mubr.bf16.gmra.mrb[56].mxu0 %v3369_v2  ;;  %v3361_v61 = vmax.f32 %v3341_v52, 0.0 }
0x1043   : > { %v3347_v43 = vadd.f32 %v3346_v59, %v3193_v13  ;;  %v3362_v9 = vmax.f32 %v3343_v63, 0.0 }
0x1044   : > { %v3363_v62 = vmax.f32 %v3345_v12, 0.0 }
0x1045   : > { %v3364_v7 = vmax.f32 %v3347_v43, 0.0 }
0x1046   : > { %v3371_v14 = vpack.c.bf16 %v3363_v62, %v3361_v61 }
0x1047   : > { %v3372_v49 = vpack.c.bf16 %v3364_v7, %v3362_v9 }
0x1049   : > { %3564 = vmatprep.mubr.bf16.mxu0 %v3372_v49 }
0x104a   : > { %3565 = vmatmul.mubr.bf16.gmra.mrb[60].mxu0 %v3371_v14 }
0x1105   : > { %v4231_v20 = vpop.f32.mrb[48].mxu0 }
0x1106   : > { %v4232_v28 = vpop.f32.mrb[49].mxu0 }
0x1107   : > { %v4233_v53 = vadd.f32 %v4232_v28, %v4231_v20  ;;  %v4234_v56 = vpop.f32.mrb[50].mxu0 }
0x1108   : > { %v4235_v11 = vpop.f32.mrb[51].mxu0 }
0x1109   : > { %v3543_v50 = vadd.f32 %v4233_v53, %v4025_v46  ;;  %v4236_v23 = vadd.f32 %v4235_v11, %v4234_v56 }
0x110b   : > { %v3546_v13 = vadd.f32 %v4236_v23, %v4025_v46  ;;  %v3573_v3 = vadd.f32 %v3543_v50, %v6617_v32 }
0x110d   : > { %v4237_v5 = vpop.f32.mrb[52].mxu0  ;;  %3583 = vadd.xlane.f32.xlu0 %v3573_v3  ;;  %v3574_v19 = vadd.f32 %v3546_v13, %v6619_v31 }
0x110e   : > { %v4238_v22 = vpop.f32.mrb[53].mxu0 }
0x110f   : > { %v4239_v54 = vadd.f32 %v4238_v22, %v4237_v5  ;;  %v4240_v17 = vpop.f32.mrb[54].mxu0  ;;  %3585 = vadd.xlane.f32.xlu1 %v3574_v19 }
0x1110   : > { %v4241_v34 = vpop.f32.mrb[55].mxu0 }
0x1111   : > { %v3551_v51 = vadd.f32 %v4239_v54, %v4025_v46  ;;  %v4242_v48 = vadd.f32 %v4241_v34, %v4240_v17 }
0x1113   : > { %v3554_v27 = vadd.f32 %v4242_v48, %v4025_v46  ;;  %v3575_v33 = vadd.f32 %v3551_v51, %v6626_v39 }
0x1115   : > { %v4243_v35 = vpop.f32.mrb[56].mxu0  ;;  %3587 = vadd.xlane.f32.xlu0 %v3575_v33  ;;  %v3576_v36 = vadd.f32 %v3554_v27, %v6628_v58 }
0x1116   : > { %v4244_v37 = vpop.f32.mrb[57].mxu0 }
0x1117   : > { %v4245_v32 = vadd.f32 %v4244_v37, %v4243_v35  ;;  %v4246_v38 = vpop.f32.mrb[58].mxu0  ;;  %3589 = vadd.xlane.f32.xlu1 %v3576_v36  ;;  %v4042_v37 = vld [vmem:[%s6894_s26] ss:$0 sm:$0xff]  ;;  %s6899_s26 = smov %s6898_s2 }
0x1118   : > { %v4247_v55 = vpop.f32.mrb[59].mxu0 }
0x1119   : > { %v3559_v31 = vadd.f32 %v4245_v32, %v4025_v46  ;;  %v4248_v40 = vadd.f32 %v4247_v55, %v4246_v38 }
0x111b   : > { %v3562_v41 = vadd.f32 %v4248_v40, %v4025_v46  ;;  %v3577_v42 = vadd.f32 %v3559_v31, %v6635_v57  ;;  %v4043_v31 = vld [vmem:[%s6895_s17] ss:$0 sm:$0xff]  ;;  %s5455_s17 = smov [#allocation18]  }
0x111c   : > { %s5299_s5 = sshll.u32 %s5455_s17, 4  ;;  %s5300_s5 = int_to_ptr.vmem [resolvable:$false] %s5299_s5 }
0x111d   : > { %3591 = vadd.xlane.f32.xlu0 %v3577_v42  ;;  %v4249_v10 = vpop.f32.mrb[60].mxu0  ;;  %v3578_v24 = vadd.f32 %v3562_v41, %v6637_v47  ;;  %s5301_s16 = scalar_lea.vmem %s5300_s5, 2048  ;;  %p5302_p11 = scmp.lt.s32.totalorder %s6714_s6, %s5300_s5 }
0x111e   : > { %v4250_v45 = vpop.f32.mrb[61].mxu0  ;;  %p5303_p7 = scmp.lt.s32.totalorder %s5301_s16, %s5295_s8 }
0x111f   : > { %v4251_v39 = vadd.f32 %v4250_v45, %v4249_v10  ;;  %3593 = vadd.xlane.f32.xlu1 %v3578_v24  ;;  %v4252_v8 = vpop.f32.mrb[62].mxu0 }
0x1120   : > { %v4253_v16 = vpop.f32.mrb[63].mxu0  ;;  %p5304_p2 = por %p5303_p7, %p5302_p11 }
0x1121   : > { %v3567_v58 = vadd.f32 %v4251_v39, %v4025_v46  ;;  %v4254_v29 = vadd.f32 %v4253_v16, %v4252_v8 }
0x1122   : > { %p5305_p10 = pnand %p5304_p2, %p5298_p9 }
0x1123   : > { %v3570_v21 = vadd.f32 %v4254_v29, %v4025_v46  ;;  %v3579_v26 = vadd.f32 %v3567_v58, %v6644_v60 }
0x1125   : > { %3595 = vadd.xlane.f32.xlu0 %v3579_v26  ;;  %v3580_v0 = vadd.f32 %v3570_v21, %v6646_v30 }
0x1127   : > { %3597 = vadd.xlane.f32.xlu1 %v3580_v0 }
0x119a   : > { %v3584_v15 = vpop.xlane.xlu0 %3583 }
0x119b   : > { %v3599_v57 = vmul.f32 0.0078125, %v3584_v15 }
0x119c   : > { %v3586_v6 = vpop.xlane.xlu1 %3585 }
0x119d   : > { %v3607_v25 = vsub.f32 %v3573_v3, %v3599_v57  ;;  %v3600_v2 = vmul.f32 0.0078125, %v3586_v6 }
0x119f   : > { %v3608_v47 = vsub.f32 %v3574_v19, %v3600_v2  ;;  %v3615_v4 = vmul.f32 %v3607_v25, %v3607_v25 }
0x11a1   : > { %3623 = vadd.xlane.f32.xlu0 %v3615_v4  ;;  %v3616_v18 = vmul.f32 %v3608_v47, %v3608_v47 }
0x11a2   : > { %v3588_v52 = vpop.xlane.xlu0 %3587 }
0x11a3   : > { %v3601_v44 = vmul.f32 0.0078125, %v3588_v52  ;;  %3625 = vadd.xlane.f32.xlu1 %v3616_v18 }
0x11a4   : > { %v3590_v63 = vpop.xlane.xlu1 %3589 }
0x11a5   : > { %v6664_v1 = vsub.f32 %v3575_v33, %v3601_v44  ;;  %v3602_v60 = vmul.f32 0.0078125, %v3590_v63 }
0x11a7   : > { %v6666_v12 = vsub.f32 %v3576_v36, %v3602_v60  ;;  %v3617_v30 = vmul.f32 %v6664_v1, %v6664_v1 }
0x11a9   : > { %3627 = vadd.xlane.f32.xlu0 %v3617_v30  ;;  %v3618_v59 = vmul.f32 %v6666_v12, %v6666_v12 }
0x11aa   : > { %v3592_v43 = vpop.xlane.xlu0 %3591 }
0x11ab   : > { %v3603_v61 = vmul.f32 0.0078125, %v3592_v43  ;;  %3629 = vadd.xlane.f32.xlu1 %v3618_v59 }
0x11ac   : > { %v3594_v62 = vpop.xlane.xlu1 %3593 }
0x11ad   : > { %v6672_v9 = vsub.f32 %v3577_v42, %v3603_v61  ;;  %v3604_v7 = vmul.f32 0.0078125, %v3594_v62 }
0x11af   : > { %v6674_v14 = vsub.f32 %v3578_v24, %v3604_v7  ;;  %v3619_v49 = vmul.f32 %v6672_v9, %v6672_v9 }
0x11b1   : > { %3631 = vadd.xlane.f32.xlu0 %v3619_v49  ;;  %v3620_v20 = vmul.f32 %v6674_v14, %v6674_v14 }
0x11b2   : > { %v3596_v46 = vpop.xlane.xlu0 %3595 }
0x11b3   : > { %v3605_v28 = vmul.f32 0.0078125, %v3596_v46  ;;  %3633 = vadd.xlane.f32.xlu1 %v3620_v20 }
0x11b4   : > { %v3598_v53 = vpop.xlane.xlu1 %3597 }
0x11b5   : > { %v6680_v56 = vsub.f32 %v3579_v26, %v3605_v28  ;;  %v3606_v11 = vmul.f32 0.0078125, %v3598_v53 }
0x11b7   : > { %v6682_v50 = vsub.f32 %v3580_v0, %v3606_v11  ;;  %v3621_v23 = vmul.f32 %v6680_v56, %v6680_v56 }
0x11b9   : > { %3635 = vadd.xlane.f32.xlu0 %v3621_v23  ;;  %v3622_v13 = vmul.f32 %v6682_v50, %v6682_v50 }
0x11bb   : > { %3637 = vadd.xlane.f32.xlu1 %v3622_v13 }
0x122e   : > { %v3624_v3 = vpop.xlane.xlu0 %3623 }
0x122f   : > { %v3639_v5 = vmul.f32 0.0078125, %v3624_v3 }
0x1230   : > { %v3626_v19 = vpop.xlane.xlu1 %3625 }
0x1231   : > { %v3647_v22 = vadd.f32 1e-05, %v3639_v5  ;;  %v3640_v54 = vmul.f32 0.0078125, %v3626_v19 }
0x1233   : > { %5041 = vrsqrt.f32 %v3647_v22  ;;  %v3648_v17 = vadd.f32 1e-05, %v3640_v54 }
0x1235   : > { %5043 = vrsqrt.f32 %v3648_v17 }
0x1236   : > { %v3628_v34 = vpop.xlane.xlu0 %3627 }
0x1237   : > { %v3641_v51 = vmul.f32 0.0078125, %v3628_v34 }
0x1238   : > { %v3630_v48 = vpop.xlane.xlu1 %3629 }
0x1239   : > { %v3649_v27 = vadd.f32 1e-05, %v3641_v51  ;;  %v3642_v33 = vmul.f32 0.0078125, %v3630_v48 }
0x123b   : > { %5045 = vrsqrt.f32 %v3649_v27  ;;  %v3650_v35 = vadd.f32 1e-05, %v3642_v33 }
0x123d   : > { %v5042_v36 = vpop.eup %5041  ;;  %5047 = vrsqrt.f32 %v3650_v35 }
0x123e   : > { %v3663_v32 = vmul.f32 %v5042_v36, %v3607_v25  ;;  %v3632_v38 = vpop.xlane.xlu0 %3631 }
0x123f   : > { %v5044_v55 = vpop.eup %5043  ;;  %v3643_v40 = vmul.f32 0.0078125, %v3632_v38 }
0x1240   : > { %v3677_v41 = vmul.f32 %v4042_v37, %v3663_v32  ;;  %v3664_v42 = vmul.f32 %v5044_v55, %v3608_v47  ;;  %v3634_v10 = vpop.xlane.xlu1 %3633 }
0x1241   : > { %v3651_v24 = vadd.f32 1e-05, %v3643_v40  ;;  %v3644_v45 = vmul.f32 0.0078125, %v3634_v10 }
0x1242   : > { %v3691_v39 = vadd.f32 %v4043_v31, %v3677_v41  ;;  %v3678_v8 = vmul.f32 %v4042_v37, %v3664_v42 }
0x1243   : > { %5049 = vrsqrt.f32 %v3651_v24  ;;  %v3652_v16 = vadd.f32 1e-05, %v3644_v45 }
0x1244   : > { %3699 = vst [vmem:[%s5985_s28] sm:$0xff] %v3691_v39  ;;  %v3692_v58 = vadd.f32 %v4043_v31, %v3678_v8 }
0x1245   : > { %v5046_v29 = vpop.eup %5045  ;;  %5051 = vrsqrt.f32 %v3652_v16 }
0x1246   : > { %3700 = vst [vmem:[%s5985_s28 + $0x8] sm:$0xff] %v3692_v58  ;;  %v3665_v21 = vmul.f32 %v5046_v29, %v6664_v1  ;;  %v3636_v26 = vpop.xlane.xlu0 %3635 }
0x1247   : > { %v5048_v0 = vpop.eup %5047  ;;  %v3645_v15 = vmul.f32 0.0078125, %v3636_v26 }
0x1248   : > { %v3679_v57 = vmul.f32 %v4042_v37, %v3665_v21  ;;  %v3666_v6 = vmul.f32 %v5048_v0, %v6666_v12  ;;  %v3638_v25 = vpop.xlane.xlu1 %3637 }
0x1249   : > { %v3653_v2 = vadd.f32 1e-05, %v3645_v15  ;;  %v3646_v47 = vmul.f32 0.0078125, %v3638_v25 }
0x124a   : > { %v3693_v4 = vadd.f32 %v4043_v31, %v3679_v57  ;;  %v3680_v18 = vmul.f32 %v4042_v37, %v3666_v6 }
0x124b   : > { %5053 = vrsqrt.f32 %v3653_v2  ;;  %v3654_v52 = vadd.f32 1e-05, %v3646_v47 }
0x124c   : > { %3701 = vst [vmem:[%s5985_s28 + $0x10] sm:$0xff] %v3693_v4  ;;  %v3694_v44 = vadd.f32 %v4043_v31, %v3680_v18 }
0x124d   : > { %v5050_v63 = vpop.eup %5049  ;;  %5055 = vrsqrt.f32 %v3654_v52 }
0x124e   : > { %3702 = vst [vmem:[%s5985_s28 + $0x18] sm:$0xff] %v3694_v44  ;;  %v3667_v1 = vmul.f32 %v5050_v63, %v6672_v9 }
0x124f   : > { %v5052_v60 = vpop.eup %5051 }
0x1250   : > { %v3681_v12 = vmul.f32 %v4042_v37, %v3667_v1  ;;  %v3668_v30 = vmul.f32 %v5052_v60, %v6674_v14 }
0x1252   : > { %v3695_v59 = vadd.f32 %v4043_v31, %v3681_v12  ;;  %v3682_v43 = vmul.f32 %v4042_v37, %v3668_v30 }
0x1254   : > { %3703 = vst [vmem:[%s5985_s28 + $0x20] sm:$0xff] %v3695_v59  ;;  %v3696_v61 = vadd.f32 %v4043_v31, %v3682_v43 }
0x1255   : > { %v5054_v62 = vpop.eup %5053 }
0x1256   : > { %3704 = vst [vmem:[%s5985_s28 + $0x28] sm:$0xff] %v3696_v61  ;;  %v3669_v7 = vmul.f32 %v5054_v62, %v6680_v56 }
0x1257   : > { %v5056_v9 = vpop.eup %5055 }
0x1258   : > { %v3683_v49 = vmul.f32 %v4042_v37, %v3669_v7  ;;  %v3670_v20 = vmul.f32 %v5056_v9, %v6682_v50 }
0x125a   : > { %v3697_v14 = vadd.f32 %v4043_v31, %v3683_v49  ;;  %v3684_v46 = vmul.f32 %v4042_v37, %v3670_v20 }
0x125c   : > { %3705 = vst [vmem:[%s5985_s28 + $0x30] sm:$0xff] %v3697_v14  ;;  %v3698_v28 = vadd.f32 %v4043_v31, %v3684_v46 }
0x125e   : > { %3706 = vst [vmem:[%s5985_s28 + $0x38] sm:$0xff] %v3698_v28 }
0x125f   : > { %5308 = shalt.err (!%p5305_p10)
}
0x1260   : > { %s5309_s28 = scalar_lea.hbm %s6712_s23, 1024  ;;  %s5313_s13 = scalar_lea.hbm %s6899_s26, 4096 }
0x1261   : > { %p5310_p12 = scmp.ne.s32.totalorder %s6712_s23, %s5309_s28  ;;  %p5314_p5 = scmp.lt.u32.totalorder %s6712_s23, %s6899_s26 }
0x1262   : > { %p5315_p6 = scmp.lt.u32.totalorder %s5313_s13, %s5309_s28  ;;  %p5317_p4 = scmp.lt.u32.totalorder %s5309_s28, %s6712_s23 }
0x1263   : > { %p5311_p13 = pnand %p5310_p12, %p6900_p8 }
0x1264   : > { %p5316_p3 = por %p5315_p6, %p5314_p5 }
0x1265   : > { %p5312_p1 = pneg %p5311_p13 }
0x1266   : > { %p5318_p0 = por %p5317_p4, %p5316_p3 }
0x1268   : > { %p5319_p9 = pnand %p5318_p0, %p5312_p1 }
0x126a   : > { %5322 = shalt.err (!%p5319_p9)
}
0x126b   : > { %s5456_s29 = smov 128   ;;  %s5457_s2 = smov 8  }
0x126c   : > { %4667 = dma.vmem_to_hbm [thread:$0]  (%p6900_p8), %s6714_s6, 1024, %s6712_s23, %s3708_s27, %s5456_s29, %s5456_s29, %s5457_s2  }
0x126d PF: > { %p4712_p11 = scmp.ge.s32.totalorder %s5437_s3, 2  ;;  %s3738_s8 = sand.u32 1, %s5409_s21  }
0x126e   : > { %p6901_p7 = scmp.ne.s32.totalorder %s6858_s15, 0  ;;  %s3739_s17 = scalar_lea.sflag [#allocation6], %s3738_s8 }
0x1270   : > { %p4696_p2 = pnand %p4712_p11, %p6901_p7 }
0x1272   : > { %5392 = dma.done.wait (!%p4696_p2), %s3739_s17, 1024  }
0x1273   : > { %5394 = vsyncadd (!%p4696_p2), %s3739_s17, 4294966272  ;;  %s41_s3 = sadd.s32 1, %s5437_s3   ;;  %s6902_s4 = smov %s5826_s0 }
0x1274   : > { %p38_p10 = scmp.ge.s32.totalorder %s41_s3, 6   ;;  %s6903_s18 = sld [smem:[#allocation30_spill]] }
0x1275   : > { %s6904_s0 = smov %s5401_s30  ;;  %s6905_s30 = smov %s5405_s20 }
0x1276   : > { %s6906_s20 = smov %s5882_s12  ;;  %s6907_s21 = smov %s5413_s1 }
0x1277   : > { %s6908_s1 = smov %s5417_s22  ;;  %s6909_s22 = smov %s6902_s4 }
0x1278   : > { %s6910_s2 = smov %s5429_s24  ;;  %s6911_s23 = smov %s5433_s25 }
0x1279   : > { %s6912_s24 = smov %s6915_s19  ;;  %40 = sbr.rel (!%p38_p10) target bundleno = 35 (0x23), region = 188 }
0x127a   : > { %s6913_s25 = smov %s6903_s18 }
0x1280   :  { %3744 = vsyncpa [#allocation5], 1 }
0x1281   :  { %3746 = vsyncpa [#allocation5 + $0x1], 1 }
0x1282   :  { %3747 = vsyncpa [#allocation8], 1 }
0x1283   :  { %3749 = vsyncpa [#allocation8 + $0x1], 1 }
0x1284   :  { %3750 = vsyncpa [#allocation11], 1 }
0x1285   :  { %3751 = vsyncpa [#allocation14], 1 }
0x1286   :  { %3752 = vsyncpa [#allocation17], 1 }
0x1287   :  { %3753 = vsyncpa [#allocation6], 1 }
0x1288   :  { %3755 = vsyncpa [#allocation6 + $0x1], 1 }

</bundles_post_ra>
